<compile_context>
chip_gen: v7x
topology: tpu7x:2x2x1
jax: 0.10.0
libtpu: 0.0.40
codegen_flags: <defaults>
</compile_context>

<pallas_src>
import jax
import jax.numpy as jnp
from jax import lax
from jax.experimental import pallas as pl
from jax.experimental.pallas import tpu as pltpu

L, C, CLASSES = 50, 1, 2
VMEM_LIMIT = 32 * 1024 * 1024


# ----------------------------------------------------------------------------
# small helpers
# ----------------------------------------------------------------------------
def _leaky(x, slope=0.01):
    return jnp.where(x > 0, x, slope * x)


def _softmax_last(x):
    x = x - jnp.max(x, axis=-1, keepdims=True)
    e = jnp.exp(x)
    return e / jnp.sum(e, axis=-1, keepdims=True)


def _whole(shape):
    nd = len(shape)
    return pl.BlockSpec(tuple(shape), lambda i, _nd=nd: (0,) * _nd)


# ----------------------------------------------------------------------------
# Kernel 1: conv1 + bias + ReLU + 2x2 max-pool, all K instances in one step
#   o = relu(max_{4 pool-window corners}(patches @ W1) + b1), M = K*121
# ----------------------------------------------------------------------------
def conv1_pool_kernel(p00, p01, p10, p11, w_ref, b_ref, o_ref):
    w = w_ref[...]

    def mm(p):
        return jnp.dot(p[...], w, preferred_element_type=jnp.float32)

    m = jnp.maximum(jnp.maximum(mm(p00), mm(p01)), jnp.maximum(mm(p10), mm(p11)))
    o_ref[...] = jnp.maximum(m + b_ref[...], 0.0).astype(o_ref.dtype)


# ----------------------------------------------------------------------------
# Kernel 2: conv2+pool+fc1 + full GNN + losses + classifier, fully fused
# ----------------------------------------------------------------------------
def make_tail_kernel(k):
    kk = float(k)

    def kernel(q00, q01, q10, q11, w2_ref, b2_ref, fc1w_ref, fc1b_ref,
               we_rel_ref, we_root_ref, we_b_ref,
               wp_rel_ref, wp_root_ref, wp_b_ref,
               mlp_w_ref, mlp_b_ref,
               l1_w_ref, l1_b_ref, l2_w_ref, l2_b_ref,
               y_ref, loss_ref, tall_ref):
        w2 = w2_ref[...]

        def mm(q):
            return jnp.dot(q[...], w2, preferred_element_type=jnp.float32)

        # conv2 + bias + ReLU + 2x2 max-pool: 4 matmuls of (K*9, 500)@(500, 50)
        m = jnp.maximum(jnp.maximum(mm(q00), mm(q01)), jnp.maximum(mm(q10), mm(q11)))
        pooled = jnp.maximum(m + b2_ref[...], 0.0)            # (K*9, 50), rows (s, k)

        # fc1 as ONE contraction: (K*9, 50)@(50, 9L), then block-diagonal gather.
        # fc1w_ref[c, s*L + l] == fc1_w[c*9 + s, l]  (NCHW flatten absorbed).
        tall_ref[...] = jnp.dot(pooled.astype(fc1w_ref.dtype), fc1w_ref[...],
                                preferred_element_type=jnp.float32)
        acc = tall_ref[pl.ds(0, k), pl.ds(0, L)]
        for s in range(1, 9):
            acc = acc + tall_ref[pl.ds(s * k, k), pl.ds(s * L, L)]
        h = jnp.maximum(acc + fc1b_ref[...], 0.0)             # (k, L)

        # DenseSAGEConv heads.  A == ones(k,k)  =>  aggregation is the row mean.
        mean_h = jnp.sum(h, axis=0, keepdims=True) * (1.0 / kk)     # (1, L)
        z = _leaky(jnp.dot(mean_h, we_rel_ref[...], preferred_element_type=jnp.float32)
                   + jnp.dot(h, we_root_ref[...], preferred_element_type=jnp.float32)
                   + we_b_ref[...])                                 # (k, L)
        s_pre = _leaky(jnp.dot(mean_h, wp_rel_ref[...], preferred_element_type=jnp.float32)
                       + jnp.dot(h, wp_root_ref[...], preferred_element_type=jnp.float32)
                       + wp_b_ref[...])                             # (k, C)
        # mlp is (1,1): scalar multiply on the VPU, no MXU push
        s_pool = _leaky(s_pre * mlp_w_ref[...] + mlp_b_ref[...])    # (k, C)

        # auxiliary_loss(ones, Z) = ||1 - softmax(Z) softmax(Z)^T||_F / k^2
        zs = _softmax_last(z)
        zzt = lax.dot_general(zs, zs, (((1,), (1,)), ((), ())),
                              preferred_element_type=jnp.float32)   # (k, k)
        d1 = 1.0 - zzt
        loss_emb1 = jnp.sqrt(jnp.sum(d1 * d1, keepdims=True)) / (kk * kk)

        # dense_diff_pool(Z, ones, S) with C == 1 (no MXU for the degenerate parts)
        ss = _softmax_last(s_pool)                                  # (k, 1)
        xp = jnp.sum(ss * z, axis=0, keepdims=True)                 # (1, L)  = S^T Z
        col = jnp.sum(ss, axis=0, keepdims=True)                    # (1, 1)  = S^T 1
        ap = col * col                                              # (1, 1)  = S^T A S
        sst = lax.dot_general(ss, ss, (((1,), (1,)), ((), ())),
                              preferred_element_type=jnp.float32)   # (k, k)
        d2 = 1.0 - sst
        link_loss = jnp.sqrt(jnp.sum(d2 * d2, keepdims=True)) / (kk * kk)

        # second gnn_embd (shared weights) on the pooled graph; adj is (1,1)
        deg = jnp.maximum(ap, 1.0)
        agg = (ap * xp) / deg                                       # (1, L)
        x2 = _leaky(jnp.dot(agg, we_rel_ref[...], preferred_element_type=jnp.float32)
                    + jnp.dot(xp, we_root_ref[...], preferred_element_type=jnp.float32)
                    + we_b_ref[...])                                # (1, L)

        # auxiliary_loss(Ap, X2) with Ap a (1,1) scalar
        xs = _softmax_last(x2)
        xxt = jnp.sum(xs * xs, keepdims=True)                       # (1, 1)
        d3 = ap - xxt
        loss_emb2 = jnp.sqrt(d3 * d3) / float(C * C)

        # classifier head.  C == 1 so x2 already equals X.view(1, -1).
        # TODO(synk): a general C>1 flatten (C, L) -> (1, C*L) would need an
        # in-kernel reshape; not required for this module (C == 1).
        xf = _leaky(jnp.dot(x2, l1_w_ref[...], preferred_element_type=jnp.float32)
                    + l1_b_ref[...])
        xf = _leaky(jnp.dot(xf, l2_w_ref[...], preferred_element_type=jnp.float32)
                    + l2_b_ref[...])
        y_ref[...] = _softmax_last(xf)
        loss_ref[...] = link_loss + loss_emb1 + loss_emb2

    return kernel


# ----------------------------------------------------------------------------
# Wrapper-side data movement (im2col / pool-corner selection), pure JAX
# ----------------------------------------------------------------------------
def _im2col(x, kh, kw):
    """(K,H,W,Cin) -> (K,OH,OW,kh*kw*Cin), column order (dy, dx, cin)."""
    kb, h, w, cin = x.shape
    oh, ow = h - kh + 1, w - kw + 1
    cols = [x[:, dy:dy + oh, dx:dx + ow, :]
            for dy in range(kh) for dx in range(kw)]
    return jnp.stack(cols, axis=3).reshape(kb, oh, ow, kh * kw * cin)


def _pool_corner_patches(p, ph, pw):
    """p: (K,OH,OW,P) patches at every conv position; returns the four
    (K,ph,pw,P) corner selections feeding each 2x2/stride-2 pool cell."""
    return [p[:, a:a + 2 * ph:2, b:b + 2 * pw:2, :]
            for a in range(2) for b in range(2)]


# ----------------------------------------------------------------------------
# Model parameters (deterministic synthetic init; shapes from __init__)
# ----------------------------------------------------------------------------
def init_params(key):
    ks = jax.random.split(key, 18)
    p = lambda k_, s: 0.1 * jax.random.normal(k_, s, dtype=jnp.float32)
    return dict(
        conv1_w=p(ks[0], (5, 5, 3, 20)),   conv1_b=p(ks[1], (1, 20)),
        conv2_w=p(ks[2], (5, 5, 20, 50)),  conv2_b=p(ks[3], (1, 50)),
        fc1_w=p(ks[4], (450, L)),          fc1_b=p(ks[5], (1, L)),
        sage_e_wrel=p(ks[6], (L, L)), sage_e_wroot=p(ks[7], (L, L)),
        sage_e_b=p(ks[8], (1, L)),
        sage_p_wrel=p(ks[9], (L, C)), sage_p_wroot=p(ks[10], (L, C)),
        sage_p_b=p(ks[11], (1, C)),
        mlp_w=p(ks[12], (C, C)),           mlp_b=p(ks[13], (1, C)),
        lin1_w=p(ks[14], (L * C, L * C // 2)), lin1_b=p(ks[15], (1, L * C // 2)),
        lin2_w=p(ks[16], (L * C // 2, CLASSES)), lin2_b=p(ks[17], (1, CLASSES)),
    )


# ----------------------------------------------------------------------------
# Forward pass (jitted; exactly two pallas_call launches, both grid=(1,))
# ----------------------------------------------------------------------------
def _forward(x_nchw, params):
    # NCHW -> NHWC; conv operands in bf16 (f32 accumulation inside the kernels)
    x = jnp.transpose(x_nchw, (0, 2, 3, 1)).astype(jnp.bfloat16)    # (K,27,27,3)
    k = x.shape[0]

    # ---- stage 1: conv1 + ReLU + 2x2 max-pool, K folded into the M dim ------
    p1 = _im2col(x, 5, 5)                                           # (K,23,23,75)
    p1c = [c.reshape(k * 121, 75) for c in _pool_corner_patches(p1, 11, 11)]
    w1 = params["conv1_w"].reshape(75, 20).astype(jnp.bfloat16)
    in1 = p1c + [w1, params["conv1_b"]]
    pool1 = pl.pallas_call(
        conv1_pool_kernel,
        grid=(1,),
        in_specs=[_whole(a.shape) for a in in1],
        out_specs=_whole((k * 121, 20)),
        out_shape=jax.ShapeDtypeStruct((k * 121, 20), jnp.bfloat16),
        compiler_params=pltpu.CompilerParams(
            dimension_semantics=("arbitrary",), vmem_limit_bytes=VMEM_LIMIT),
        cost_estimate=pl.CostEstimate(
            flops=8 * k * 121 * 75 * 20,
            transcendentals=0,
            bytes_accessed=8 * k * 121 * 75 + 2 * k * 121 * 20 + 4000),
    )(*in1)
    pool1 = pool1.reshape(k, 11, 11, 20)                            # (K,11,11,20)

    # ---- stage 2: conv2/pool/fc1 + GNN + losses + classifier, fully fused ---
    p2 = _im2col(pool1, 5, 5)                                       # (K,7,7,500)
    # pool-corner patches flattened to (K*9, 500) with rows ordered (s, k)
    p2c = [jnp.transpose(c.reshape(k, 9, 500), (1, 0, 2)).reshape(k * 9, 500)
           for c in _pool_corner_patches(p2, 3, 3)]
    w2 = params["conv2_w"].reshape(500, 50).astype(jnp.bfloat16)
    # fc1 rows follow the NCHW flatten (c*9 + s); reshape(50, 9*L) lays the
    # per-spatial 50xL blocks side by side along the lane dim so the kernel can
    # run fc1 as one matmul + block-diagonal gather (free wrapper reshape).
    fc1_wcat = params["fc1_w"].reshape(50, 9 * L).astype(jnp.bfloat16)

    inputs = p2c + [
        w2, params["conv2_b"], fc1_wcat, params["fc1_b"],
        params["sage_e_wrel"], params["sage_e_wroot"], params["sage_e_b"],
        params["sage_p_wrel"], params["sage_p_wroot"], params["sage_p_b"],
        params["mlp_w"], params["mlp_b"],
        params["lin1_w"], params["lin1_b"],
        params["lin2_w"], params["lin2_b"],
    ]
    out_shape = (jax.ShapeDtypeStruct((1, CLASSES), jnp.float32),
                 jax.ShapeDtypeStruct((1, 1), jnp.float32))
    y2, total_loss = pl.pallas_call(
        make_tail_kernel(k),
        grid=(1,),
        in_specs=[_whole(a.shape) for a in inputs],
        out_specs=tuple(_whole(o.shape) for o in out_shape),
        out_shape=out_shape,
        scratch_shapes=[pltpu.VMEM((9 * k, 9 * L), jnp.float32)],
        compiler_params=pltpu.CompilerParams(
            dimension_semantics=("arbitrary",), vmem_limit_bytes=VMEM_LIMIT),
        cost_estimate=pl.CostEstimate(
            flops=10_000_000, transcendentals=512, bytes_accessed=400_000),
    )(*inputs)

    return y2.reshape(CLASSES), total_loss.reshape(())


forward = jax.jit(_forward)


# ----------------------------------------------------------------------------
if __name__ == "__main__":
    key = jax.random.PRNGKey(0)
    k_param, k_x = jax.random.split(key)

    params = init_params(k_param)
    # Bag of K=4 instances of 3x27x27 images
    # (27 -conv5-> 23 -pool-> 11 -conv5-> 7 -pool-> 3, as the module requires).
    x = jax.random.normal(k_x, (4, 3, 27, 27), dtype=jnp.float32)

    y_prob, loss = forward(x, params)
    jax.block_until_ready((y_prob, loss))

    assert y_prob.shape == (CLASSES,) and loss.shape == ()
    print("KERNEL_OK")
</pallas_src>

<mosaic_0001>
module attributes {stable_mosaic.version = 11 : i64} {
  func.func @conv1_pool_kernel(%arg0: i32, %arg1: memref<484x75xbf16, #tpu.memory_space<vmem>>, %arg2: memref<484x75xbf16, #tpu.memory_space<vmem>>, %arg3: memref<484x75xbf16, #tpu.memory_space<vmem>>, %arg4: memref<484x75xbf16, #tpu.memory_space<vmem>>, %arg5: memref<75x20xbf16, #tpu.memory_space<vmem>>, %arg6: memref<1x20xf32, #tpu.memory_space<vmem>>, %arg7: memref<484x20xbf16, #tpu.memory_space<vmem>>) attributes {dimension_semantics = [#tpu.dimension_semantics<arbitrary>], iteration_bounds = array<i64: 1>, scalar_prefetch = 0 : i64, scratch_operands = 0 : i64, tpu.core_type = #tpu.core_type<tc>, window_params = [{pipeline_mode = #tpu.pipeline_mode<synchronous>, transform_indices = @transform_0, window_bounds = array<i64: 484, 75>}, {pipeline_mode = #tpu.pipeline_mode<synchronous>, transform_indices = @transform_1, window_bounds = array<i64: 484, 75>}, {pipeline_mode = #tpu.pipeline_mode<synchronous>, transform_indices = @transform_2, window_bounds = array<i64: 484, 75>}, {pipeline_mode = #tpu.pipeline_mode<synchronous>, transform_indices = @transform_3, window_bounds = array<i64: 484, 75>}, {pipeline_mode = #tpu.pipeline_mode<synchronous>, transform_indices = @transform_4, window_bounds = array<i64: 75, 20>}, {pipeline_mode = #tpu.pipeline_mode<synchronous>, transform_indices = @transform_5, window_bounds = array<i64: 1, 20>}, {pipeline_mode = #tpu.pipeline_mode<synchronous>, transform_indices = @transform_6, window_bounds = array<i64: 484, 20>}]} {
    %c0 = arith.constant 0 : index
    %c0_0 = arith.constant 0 : index
    %0 = vector.load %arg5[%c0, %c0_0] : memref<75x20xbf16, #tpu.memory_space<vmem>>, vector<75x20xbf16>
    %c0_1 = arith.constant 0 : index
    %c0_2 = arith.constant 0 : index
    %1 = vector.load %arg1[%c0_1, %c0_2] : memref<484x75xbf16, #tpu.memory_space<vmem>>, vector<484x75xbf16>
    %cst = arith.constant dense<0.000000e+00> : vector<484x20xf32>
    %2 = tpu.matmul %1, %0, %cst {dimension_numbers = #tpu.dot_dimension_numbers<[1], [0], [0], [1], [0, 0, 1, 1], [], []>} : vector<484x75xbf16>, vector<75x20xbf16>, vector<484x20xf32> -> vector<484x20xf32>
    %c0_3 = arith.constant 0 : index
    %c0_4 = arith.constant 0 : index
    %3 = vector.load %arg2[%c0_3, %c0_4] : memref<484x75xbf16, #tpu.memory_space<vmem>>, vector<484x75xbf16>
    %cst_5 = arith.constant dense<0.000000e+00> : vector<484x20xf32>
    %4 = tpu.matmul %3, %0, %cst_5 {dimension_numbers = #tpu.dot_dimension_numbers<[1], [0], [0], [1], [0, 0, 1, 1], [], []>} : vector<484x75xbf16>, vector<75x20xbf16>, vector<484x20xf32> -> vector<484x20xf32>
    %5 = arith.maximumf %2, %4 : vector<484x20xf32>
    %c0_6 = arith.constant 0 : index
    %c0_7 = arith.constant 0 : index
    %6 = vector.load %arg3[%c0_6, %c0_7] : memref<484x75xbf16, #tpu.memory_space<vmem>>, vector<484x75xbf16>
    %cst_8 = arith.constant dense<0.000000e+00> : vector<484x20xf32>
    %7 = tpu.matmul %6, %0, %cst_8 {dimension_numbers = #tpu.dot_dimension_numbers<[1], [0], [0], [1], [0, 0, 1, 1], [], []>} : vector<484x75xbf16>, vector<75x20xbf16>, vector<484x20xf32> -> vector<484x20xf32>
    %c0_9 = arith.constant 0 : index
    %c0_10 = arith.constant 0 : index
    %8 = vector.load %arg4[%c0_9, %c0_10] : memref<484x75xbf16, #tpu.memory_space<vmem>>, vector<484x75xbf16>
    %cst_11 = arith.constant dense<0.000000e+00> : vector<484x20xf32>
    %9 = tpu.matmul %8, %0, %cst_11 {dimension_numbers = #tpu.dot_dimension_numbers<[1], [0], [0], [1], [0, 0, 1, 1], [], []>} : vector<484x75xbf16>, vector<75x20xbf16>, vector<484x20xf32> -> vector<484x20xf32>
    %10 = arith.maximumf %7, %9 : vector<484x20xf32>
    %11 = arith.maximumf %5, %10 : vector<484x20xf32>
    %c0_12 = arith.constant 0 : index
    %c0_13 = arith.constant 0 : index
    %12 = vector.load %arg6[%c0_12, %c0_13] : memref<1x20xf32, #tpu.memory_space<vmem>>, vector<1x20xf32>
    %13 = vector.broadcast %12 : vector<1x20xf32> to vector<484x20xf32>
    %14 = arith.addf %11, %13 : vector<484x20xf32>
    %cst_14 = arith.constant 0.000000e+00 : f32
    %15 = vector.broadcast %cst_14 : f32 to vector<484x20xf32>
    %16 = arith.maximumf %14, %15 : vector<484x20xf32>
    %17 = arith.truncf %16 : vector<484x20xf32> to vector<484x20xbf16>
    %c0_15 = arith.constant 0 : index
    %c0_16 = arith.constant 0 : index
    %18 = vector.load %arg7[%c0_15, %c0_16] : memref<484x20xbf16, #tpu.memory_space<vmem>>, vector<484x20xbf16>
    tpu.vector_store %arg7[%c0_15, %c0_16], %17 {strides = array<i32>} : memref<484x20xbf16, #tpu.memory_space<vmem>>, vector<484x20xbf16>,
    return
  }
  func.func @transform_0(%arg0: i32) -> (i32, i32) {
    %c0_i32 = arith.constant 0 : i32
    %c0_i32_0 = arith.constant 0 : i32
    %c0_i32_1 = arith.constant 0 : i32
    return %c0_i32, %c0_i32_0 : i32, i32
  }
  func.func @transform_1(%arg0: i32) -> (i32, i32) {
    %c0_i32 = arith.constant 0 : i32
    %c0_i32_0 = arith.constant 0 : i32
    %c0_i32_1 = arith.constant 0 : i32
    return %c0_i32, %c0_i32_0 : i32, i32
  }
  func.func @transform_2(%arg0: i32) -> (i32, i32) {
    %c0_i32 = arith.constant 0 : i32
    %c0_i32_0 = arith.constant 0 : i32
    %c0_i32_1 = arith.constant 0 : i32
    return %c0_i32, %c0_i32_0 : i32, i32
  }
  func.func @transform_3(%arg0: i32) -> (i32, i32) {
    %c0_i32 = arith.constant 0 : i32
    %c0_i32_0 = arith.constant 0 : i32
    %c0_i32_1 = arith.constant 0 : i32
    return %c0_i32, %c0_i32_0 : i32, i32
  }
  func.func @transform_4(%arg0: i32) -> (i32, i32) {
    %c0_i32 = arith.constant 0 : i32
    %c0_i32_0 = arith.constant 0 : i32
    %c0_i32_1 = arith.constant 0 : i32
    return %c0_i32, %c0_i32_0 : i32, i32
  }
  func.func @transform_5(%arg0: i32) -> (i32, i32) {
    %c0_i32 = arith.constant 0 : i32
    %c0_i32_0 = arith.constant 0 : i32
    %c0_i32_1 = arith.constant 0 : i32
    return %c0_i32, %c0_i32_0 : i32, i32
  }
  func.func @transform_6(%arg0: i32) -> (i32, i32) {
    %c0_i32 = arith.constant 0 : i32
    %c0_i32_0 = arith.constant 0 : i32
    %c0_i32_1 = arith.constant 0 : i32
    return %c0_i32, %c0_i32_0 : i32, i32
  }
}

module attributes {stable_mosaic.version = 11 : i64} {
  func.func @kernel(%arg0: i32, %arg1: memref<36x500xbf16, #tpu.memory_space<vmem>>, %arg2: memref<36x500xbf16, #tpu.memory_space<vmem>>, %arg3: memref<36x500xbf16, #tpu.memory_space<vmem>>, %arg4: memref<36x500xbf16, #tpu.memory_space<vmem>>, %arg5: memref<500x50xbf16, #tpu.memory_space<vmem>>, %arg6: memref<1x50xf32, #tpu.memory_space<vmem>>, %arg7: memref<50x450xbf16, #tpu.memory_space<vmem>>, %arg8: memref<1x50xf32, #tpu.memory_space<vmem>>, %arg9: memref<50x50xf32, #tpu.memory_space<vmem>>, %arg10: memref<50x50xf32, #tpu.memory_space<vmem>>, %arg11: memref<1x50xf32, #tpu.memory_space<vmem>>, %arg12: memref<50x1xf32, #tpu.memory_space<vmem>>, %arg13: memref<50x1xf32, #tpu.memory_space<vmem>>, %arg14: memref<1x1xf32, #tpu.memory_space<vmem>>, %arg15: memref<1x1xf32, #tpu.memory_space<vmem>>, %arg16: memref<1x1xf32, #tpu.memory_space<vmem>>, %arg17: memref<50x25xf32, #tpu.memory_space<vmem>>, %arg18: memref<1x25xf32, #tpu.memory_space<vmem>>, %arg19: memref<25x2xf32, #tpu.memory_space<vmem>>, %arg20: memref<1x2xf32, #tpu.memory_space<vmem>>, %arg21: memref<1x2xf32, #tpu.memory_space<vmem>>, %arg22: memref<1x1xf32, #tpu.memory_space<vmem>>, %arg23: memref<36x450xf32, #tpu.memory_space<vmem>>) attributes {dimension_semantics = [#tpu.dimension_semantics<arbitrary>], iteration_bounds = array<i64: 1>, scalar_prefetch = 0 : i64, scratch_operands = 1 : i64, tpu.core_type = #tpu.core_type<tc>, window_params = [{pipeline_mode = #tpu.pipeline_mode<synchronous>, transform_indices = @transform_0, window_bounds = array<i64: 36, 500>}, {pipeline_mode = #tpu.pipeline_mode<synchronous>, transform_indices = @transform_1, window_bounds = array<i64: 36, 500>}, {pipeline_mode = #tpu.pipeline_mode<synchronous>, transform_indices = @transform_2, window_bounds = array<i64: 36, 500>}, {pipeline_mode = #tpu.pipeline_mode<synchronous>, transform_indices = @transform_3, window_bounds = array<i64: 36, 500>}, {pipeline_mode = #tpu.pipeline_mode<synchronous>, transform_indices = @transform_4, window_bounds = array<i64: 500, 50>}, {pipeline_mode = #tpu.pipeline_mode<synchronous>, transform_indices = @transform_5, window_bounds = array<i64: 1, 50>}, {pipeline_mode = #tpu.pipeline_mode<synchronous>, transform_indices = @transform_6, window_bounds = array<i64: 50, 450>}, {pipeline_mode = #tpu.pipeline_mode<synchronous>, transform_indices = @transform_7, window_bounds = array<i64: 1, 50>}, {pipeline_mode = #tpu.pipeline_mode<synchronous>, transform_indices = @transform_8, window_bounds = array<i64: 50, 50>}, {pipeline_mode = #tpu.pipeline_mode<synchronous>, transform_indices = @transform_9, window_bounds = array<i64: 50, 50>}, {pipeline_mode = #tpu.pipeline_mode<synchronous>, transform_indices = @transform_10, window_bounds = array<i64: 1, 50>}, {pipeline_mode = #tpu.pipeline_mode<synchronous>, transform_indices = @transform_11, window_bounds = array<i64: 50, 1>}, {pipeline_mode = #tpu.pipeline_mode<synchronous>, transform_indices = @transform_12, window_bounds = array<i64: 50, 1>}, {pipeline_mode = #tpu.pipeline_mode<synchronous>, transform_indices = @transform_13, window_bounds = array<i64: 1, 1>}, {pipeline_mode = #tpu.pipeline_mode<synchronous>, transform_indices = @transform_14, window_bounds = array<i64: 1, 1>}, {pipeline_mode = #tpu.pipeline_mode<synchronous>, transform_indices = @transform_15, window_bounds = array<i64: 1, 1>}, {pipeline_mode = #tpu.pipeline_mode<synchronous>, transform_indices = @transform_16, window_bounds = array<i64: 50, 25>}, {pipeline_mode = #tpu.pipeline_mode<synchronous>, transform_indices = @transform_17, window_bounds = array<i64: 1, 25>}, {pipeline_mode = #tpu.pipeline_mode<synchronous>, transform_indices = @transform_18, window_bounds = array<i64: 25, 2>}, {pipeline_mode = #tpu.pipeline_mode<synchronous>, transform_indices = @transform_19, window_bounds = array<i64: 1, 2>}, {pipeline_mode = #tpu.pipeline_mode<synchronous>, transform_indices = @transform_20, window_bounds = array<i64: 1, 2>}, {pipeline_mode = #tpu.pipeline_mode<synchronous>, transform_indices = @transform_21, window_bounds = array<i64: 1, 1>}]} {
    %c0 = arith.constant 0 : index
    %c0_0 = arith.constant 0 : index
    %0 = vector.load %arg5[%c0, %c0_0] : memref<500x50xbf16, #tpu.memory_space<vmem>>, vector<500x50xbf16>
    %c0_1 = arith.constant 0 : index
    %c0_2 = arith.constant 0 : index
    %1 = vector.load %arg1[%c0_1, %c0_2] : memref<36x500xbf16, #tpu.memory_space<vmem>>, vector<36x500xbf16>
    %cst = arith.constant dense<0.000000e+00> : vector<36x50xf32>
    %2 = tpu.matmul %1, %0, %cst {dimension_numbers = #tpu.dot_dimension_numbers<[1], [0], [0], [1], [0, 0, 1, 1], [], []>} : vector<36x500xbf16>, vector<500x50xbf16>, vector<36x50xf32> -> vector<36x50xf32>
    %c0_3 = arith.constant 0 : index
    %c0_4 = arith.constant 0 : index
    %3 = vector.load %arg2[%c0_3, %c0_4] : memref<36x500xbf16, #tpu.memory_space<vmem>>, vector<36x500xbf16>
    %cst_5 = arith.constant dense<0.000000e+00> : vector<36x50xf32>
    %4 = tpu.matmul %3, %0, %cst_5 {dimension_numbers = #tpu.dot_dimension_numbers<[1], [0], [0], [1], [0, 0, 1, 1], [], []>} : vector<36x500xbf16>, vector<500x50xbf16>, vector<36x50xf32> -> vector<36x50xf32>
    %5 = arith.maximumf %2, %4 : vector<36x50xf32>
    %c0_6 = arith.constant 0 : index
    %c0_7 = arith.constant 0 : index
    %6 = vector.load %arg3[%c0_6, %c0_7] : memref<36x500xbf16, #tpu.memory_space<vmem>>, vector<36x500xbf16>
    %cst_8 = arith.constant dense<0.000000e+00> : vector<36x50xf32>
    %7 = tpu.matmul %6, %0, %cst_8 {dimension_numbers = #tpu.dot_dimension_numbers<[1], [0], [0], [1], [0, 0, 1, 1], [], []>} : vector<36x500xbf16>, vector<500x50xbf16>, vector<36x50xf32> -> vector<36x50xf32>
    %c0_9 = arith.constant 0 : index
    %c0_10 = arith.constant 0 : index
    %8 = vector.load %arg4[%c0_9, %c0_10] : memref<36x500xbf16, #tpu.memory_space<vmem>>, vector<36x500xbf16>
    %cst_11 = arith.constant dense<0.000000e+00> : vector<36x50xf32>
    %9 = tpu.matmul %8, %0, %cst_11 {dimension_numbers = #tpu.dot_dimension_numbers<[1], [0], [0], [1], [0, 0, 1, 1], [], []>} : vector<36x500xbf16>, vector<500x50xbf16>, vector<36x50xf32> -> vector<36x50xf32>
    %10 = arith.maximumf %7, %9 : vector<36x50xf32>
    %11 = arith.maximumf %5, %10 : vector<36x50xf32>
    %c0_12 = arith.constant 0 : index
    %c0_13 = arith.constant 0 : index
    %12 = vector.load %arg6[%c0_12, %c0_13] : memref<1x50xf32, #tpu.memory_space<vmem>>, vector<1x50xf32>
    %13 = vector.broadcast %12 : vector<1x50xf32> to vector<36x50xf32>
    %14 = arith.addf %11, %13 : vector<36x50xf32>
    %cst_14 = arith.constant 0.000000e+00 : f32
    %15 = vector.broadcast %cst_14 : f32 to vector<36x50xf32>
    %16 = arith.maximumf %14, %15 : vector<36x50xf32>
    %17 = arith.truncf %16 : vector<36x50xf32> to vector<36x50xbf16>
    %c0_15 = arith.constant 0 : index
    %c0_16 = arith.constant 0 : index
    %18 = vector.load %arg7[%c0_15, %c0_16] : memref<50x450xbf16, #tpu.memory_space<vmem>>, vector<50x450xbf16>
    %cst_17 = arith.constant dense<0.000000e+00> : vector<36x450xf32>
    %19 = tpu.matmul %17, %18, %cst_17 {dimension_numbers = #tpu.dot_dimension_numbers<[1], [0], [0], [1], [0, 0, 1, 1], [], []>} : vector<36x50xbf16>, vector<50x450xbf16>, vector<36x450xf32> -> vector<36x450xf32>
    %c0_18 = arith.constant 0 : index
    %c0_19 = arith.constant 0 : index
    %20 = vector.load %arg23[%c0_18, %c0_19] : memref<36x450xf32, #tpu.memory_space<vmem>>, vector<36x450xf32>
    tpu.vector_store %arg23[%c0_18, %c0_19], %19 {strides = array<i32>} : memref<36x450xf32, #tpu.memory_space<vmem>>, vector<36x450xf32>,
    %c0_20 = arith.constant 0 : index
    %c0_21 = arith.constant 0 : index
    %21 = vector.load %arg23[%c0_20, %c0_21] : memref<36x450xf32, #tpu.memory_space<vmem>>, vector<4x50xf32>
    %c4 = arith.constant 4 : index
    %c50 = arith.constant 50 : index
    %22 = vector.load %arg23[%c4, %c50] : memref<36x450xf32, #tpu.memory_space<vmem>>, vector<4x50xf32>
    %23 = arith.addf %21, %22 : vector<4x50xf32>
    %c8 = arith.constant 8 : index
    %c100 = arith.constant 100 : index
    %24 = vector.load %arg23[%c8, %c100] : memref<36x450xf32, #tpu.memory_space<vmem>>, vector<4x50xf32>
    %25 = arith.addf %23, %24 : vector<4x50xf32>
    %c12 = arith.constant 12 : index
    %c150 = arith.constant 150 : index
    %26 = vector.load %arg23[%c12, %c150] : memref<36x450xf32, #tpu.memory_space<vmem>>, vector<4x50xf32>
    %27 = arith.addf %25, %26 : vector<4x50xf32>
    %c16 = arith.constant 16 : index
    %c200 = arith.constant 200 : index
    %28 = vector.load %arg23[%c16, %c200] : memref<36x450xf32, #tpu.memory_space<vmem>>, vector<4x50xf32>
    %29 = arith.addf %27, %28 : vector<4x50xf32>
    %c20 = arith.constant 20 : index
    %c250 = arith.constant 250 : index
    %30 = vector.load %arg23[%c20, %c250] : memref<36x450xf32, #tpu.memory_space<vmem>>, vector<4x50xf32>
    %31 = arith.addf %29, %30 : vector<4x50xf32>
    %c24 = arith.constant 24 : index
    %c300 = arith.constant 300 : index
    %32 = vector.load %arg23[%c24, %c300] : memref<36x450xf32, #tpu.memory_space<vmem>>, vector<4x50xf32>
    %33 = arith.addf %31, %32 : vector<4x50xf32>
    %c28 = arith.constant 28 : index
    %c350 = arith.constant 350 : index
    %34 = vector.load %arg23[%c28, %c350] : memref<36x450xf32, #tpu.memory_space<vmem>>, vector<4x50xf32>
    %35 = arith.addf %33, %34 : vector<4x50xf32>
    %c32 = arith.constant 32 : index
    %c400 = arith.constant 400 : index
    %36 = vector.load %arg23[%c32, %c400] : memref<36x450xf32, #tpu.memory_space<vmem>>, vector<4x50xf32>
    %37 = arith.addf %35, %36 : vector<4x50xf32>
    %c0_22 = arith.constant 0 : index
    %c0_23 = arith.constant 0 : index
    %38 = vector.load %arg8[%c0_22, %c0_23] : memref<1x50xf32, #tpu.memory_space<vmem>>, vector<1x50xf32>
    %39 = vector.broadcast %38 : vector<1x50xf32> to vector<4x50xf32>
    %40 = arith.addf %37, %39 : vector<4x50xf32>
    %cst_24 = arith.constant 0.000000e+00 : f32
    %41 = vector.broadcast %cst_24 : f32 to vector<4x50xf32>
    %42 = arith.maximumf %40, %41 : vector<4x50xf32>
    %cst_25 = arith.constant dense<0.000000e+00> : vector<50xf32>
    %43 = vector.multi_reduction <add>, %42, %cst_25 [0] : vector<4x50xf32> to vector<50xf32>
    %44 = vector.shape_cast %43 : vector<50xf32> to vector<1x50xf32>
    %cst_26 = arith.constant 2.500000e-01 : f32
    %45 = vector.broadcast %cst_26 : f32 to vector<1x50xf32>
    %46 = arith.mulf %44, %45 : vector<1x50xf32>
    %c0_27 = arith.constant 0 : index
    %c0_28 = arith.constant 0 : index
    %47 = vector.load %arg9[%c0_27, %c0_28] : memref<50x50xf32, #tpu.memory_space<vmem>>, vector<50x50xf32>
    %cst_29 = arith.constant dense<0.000000e+00> : vector<1x50xf32>
    %48 = tpu.matmul %46, %47, %cst_29 {dimension_numbers = #tpu.dot_dimension_numbers<[1], [0], [0], [1], [0, 0, 1, 1], [], []>} : vector<1x50xf32>, vector<50x50xf32>, vector<1x50xf32> -> vector<1x50xf32>
    %c0_30 = arith.constant 0 : index
    %c0_31 = arith.constant 0 : index
    %49 = vector.load %arg10[%c0_30, %c0_31] : memref<50x50xf32, #tpu.memory_space<vmem>>, vector<50x50xf32>
    %cst_32 = arith.constant dense<0.000000e+00> : vector<4x50xf32>
    %50 = tpu.matmul %42, %49, %cst_32 {dimension_numbers = #tpu.dot_dimension_numbers<[1], [0], [0], [1], [0, 0, 1, 1], [], []>} : vector<4x50xf32>, vector<50x50xf32>, vector<4x50xf32> -> vector<4x50xf32>
    %51 = vector.broadcast %48 : vector<1x50xf32> to vector<4x50xf32>
    %52 = arith.addf %51, %50 : vector<4x50xf32>
    %c0_33 = arith.constant 0 : index
    %c0_34 = arith.constant 0 : index
    %53 = vector.load %arg11[%c0_33, %c0_34] : memref<1x50xf32, #tpu.memory_space<vmem>>, vector<1x50xf32>
    %54 = vector.broadcast %53 : vector<1x50xf32> to vector<4x50xf32>
    %55 = arith.addf %52, %54 : vector<4x50xf32>
    %cst_35 = arith.constant 0.000000e+00 : f32
    %56 = vector.broadcast %cst_35 : f32 to vector<4x50xf32>
    %57 = arith.cmpf ogt, %55, %56 : vector<4x50xf32>
    %cst_36 = arith.constant 0.00999999977 : f32
    %58 = vector.broadcast %cst_36 : f32 to vector<4x50xf32>
    %59 = arith.mulf %58, %55 : vector<4x50xf32>
    %60 = arith.select %57, %55, %59 : vector<4x50xi1>, vector<4x50xf32>
    %c0_37 = arith.constant 0 : index
    %c0_38 = arith.constant 0 : index
    %61 = vector.load %arg12[%c0_37, %c0_38] : memref<50x1xf32, #tpu.memory_space<vmem>>, vector<50x1xf32>
    %cst_39 = arith.constant dense<0.000000e+00> : vector<1x1xf32>
    %62 = tpu.matmul %46, %61, %cst_39 {dimension_numbers = #tpu.dot_dimension_numbers<[1], [0], [0], [1], [0, 0, 1, 1], [], []>} : vector<1x50xf32>, vector<50x1xf32>, vector<1x1xf32> -> vector<1x1xf32>
    %c0_40 = arith.constant 0 : index
    %c0_41 = arith.constant 0 : index
    %63 = vector.load %arg13[%c0_40, %c0_41] : memref<50x1xf32, #tpu.memory_space<vmem>>, vector<50x1xf32>
    %cst_42 = arith.constant dense<0.000000e+00> : vector<4x1xf32>
    %64 = tpu.matmul %42, %63, %cst_42 {dimension_numbers = #tpu.dot_dimension_numbers<[1], [0], [0], [1], [0, 0, 1, 1], [], []>} : vector<4x50xf32>, vector<50x1xf32>, vector<4x1xf32> -> vector<4x1xf32>
    %65 = vector.broadcast %62 : vector<1x1xf32> to vector<4x1xf32>
    %66 = arith.addf %65, %64 : vector<4x1xf32>
    %c0_43 = arith.constant 0 : index
    %c0_44 = arith.constant 0 : index
    %67 = vector.load %arg14[%c0_43, %c0_44] : memref<1x1xf32, #tpu.memory_space<vmem>>, vector<1x1xf32>
    %68 = vector.broadcast %67 : vector<1x1xf32> to vector<4x1xf32>
    %69 = arith.addf %66, %68 : vector<4x1xf32>
    %cst_45 = arith.constant 0.000000e+00 : f32
    %70 = vector.broadcast %cst_45 : f32 to vector<4x1xf32>
    %71 = arith.cmpf ogt, %69, %70 : vector<4x1xf32>
    %cst_46 = arith.constant 0.00999999977 : f32
    %72 = vector.broadcast %cst_46 : f32 to vector<4x1xf32>
    %73 = arith.mulf %72, %69 : vector<4x1xf32>
    %74 = arith.select %71, %69, %73 : vector<4x1xi1>, vector<4x1xf32>
    %c0_47 = arith.constant 0 : index
    %c0_48 = arith.constant 0 : index
    %75 = vector.load %arg15[%c0_47, %c0_48] : memref<1x1xf32, #tpu.memory_space<vmem>>, vector<1x1xf32>
    %76 = vector.broadcast %75 : vector<1x1xf32> to vector<4x1xf32>
    %77 = arith.mulf %74, %76 : vector<4x1xf32>
    %c0_49 = arith.constant 0 : index
    %c0_50 = arith.constant 0 : index
    %78 = vector.load %arg16[%c0_49, %c0_50] : memref<1x1xf32, #tpu.memory_space<vmem>>, vector<1x1xf32>
    %79 = vector.broadcast %78 : vector<1x1xf32> to vector<4x1xf32>
    %80 = arith.addf %77, %79 : vector<4x1xf32>
    %cst_51 = arith.constant 0.000000e+00 : f32
    %81 = vector.broadcast %cst_51 : f32 to vector<4x1xf32>
    %82 = arith.cmpf ogt, %80, %81 : vector<4x1xf32>
    %cst_52 = arith.constant 0.00999999977 : f32
    %83 = vector.broadcast %cst_52 : f32 to vector<4x1xf32>
    %84 = arith.mulf %83, %80 : vector<4x1xf32>
    %85 = arith.select %82, %80, %84 : vector<4x1xi1>, vector<4x1xf32>
    %cst_53 = arith.constant dense<0xFF800000> : vector<4xf32>
    %86 = vector.multi_reduction <maximumf>, %60, %cst_53 [1] : vector<4x50xf32> to vector<4xf32>
    %87 = vector.shape_cast %86 : vector<4xf32> to vector<4x1xf32>
    %88 = vector.broadcast %87 : vector<4x1xf32> to vector<4x50xf32>
    %89 = arith.subf %60, %88 : vector<4x50xf32>
    %90 = math.exp %89 : vector<4x50xf32>
    %cst_54 = arith.constant dense<0.000000e+00> : vector<4xf32>
    %91 = vector.multi_reduction <add>, %90, %cst_54 [1] : vector<4x50xf32> to vector<4xf32>
    %92 = vector.shape_cast %91 : vector<4xf32> to vector<4x1xf32>
    %93 = vector.broadcast %92 : vector<4x1xf32> to vector<4x50xf32>
    %94 = arith.divf %90, %93 : vector<4x50xf32>
    %cst_55 = arith.constant dense<0.000000e+00> : vector<4x4xf32>
    %95 = tpu.matmul %94, %94, %cst_55 {dimension_numbers = #tpu.dot_dimension_numbers<[1], [1], [0], [0], [0, 0, 1, 0], [], []>} : vector<4x50xf32>, vector<4x50xf32>, vector<4x4xf32> -> vector<4x4xf32>
    %cst_56 = arith.constant 1.000000e+00 : f32
    %96 = vector.broadcast %cst_56 : f32 to vector<4x4xf32>
    %97 = arith.subf %96, %95 : vector<4x4xf32>
    %98 = arith.mulf %97, %97 : vector<4x4xf32>
    %99 = vector.shape_cast %98 : vector<4x4xf32> to vector<1x4x4xf32>
    %cst_57 = arith.constant dense<0.000000e+00> : vector<1xf32>
    %100 = vector.multi_reduction <add>, %99, %cst_57 [1, 2] : vector<1x4x4xf32> to vector<1xf32>
    %101 = vector.shape_cast %100 : vector<1xf32> to vector<1x1x1xf32>
    %102 = vector.extract %101[0, 0, 0] : f32 from vector<1x1x1xf32>
    %103 = vector.broadcast %102 : f32 to vector<1x1xf32>
    %104 = math.sqrt %103 : vector<1x1xf32>
    %cst_58 = arith.constant 1.600000e+01 : f32
    %105 = vector.broadcast %cst_58 : f32 to vector<1x1xf32>
    %106 = arith.divf %104, %105 : vector<1x1xf32>
    %cst_59 = arith.constant dense<0xFF800000> : vector<4xf32>
    %107 = vector.multi_reduction <maximumf>, %85, %cst_59 [1] : vector<4x1xf32> to vector<4xf32>
    %108 = vector.shape_cast %107 : vector<4xf32> to vector<4x1xf32>
    %109 = arith.subf %85, %108 : vector<4x1xf32>
    %110 = math.exp %109 : vector<4x1xf32>
    %cst_60 = arith.constant dense<0.000000e+00> : vector<4xf32>
    %111 = vector.multi_reduction <add>, %110, %cst_60 [1] : vector<4x1xf32> to vector<4xf32>
    %112 = vector.shape_cast %111 : vector<4xf32> to vector<4x1xf32>
    %113 = arith.divf %110, %112 : vector<4x1xf32>
    %114 = vector.broadcast %113 : vector<4x1xf32> to vector<4x50xf32>
    %115 = arith.mulf %114, %60 : vector<4x50xf32>
    %cst_61 = arith.constant dense<0.000000e+00> : vector<50xf32>
    %116 = vector.multi_reduction <add>, %115, %cst_61 [0] : vector<4x50xf32> to vector<50xf32>
    %117 = vector.shape_cast %116 : vector<50xf32> to vector<1x50xf32>
    %cst_62 = arith.constant dense<0.000000e+00> : vector<1xf32>
    %118 = vector.multi_reduction <add>, %113, %cst_62 [0] : vector<4x1xf32> to vector<1xf32>
    %119 = vector.shape_cast %118 : vector<1xf32> to vector<1x1xf32>
    %120 = arith.mulf %119, %119 : vector<1x1xf32>
    %cst_63 = arith.constant dense<0.000000e+00> : vector<4x4xf32>
    %121 = tpu.matmul %113, %113, %cst_63 {dimension_numbers = #tpu.dot_dimension_numbers<[1], [1], [0], [0], [0, 0, 1, 0], [], []>} : vector<4x1xf32>, vector<4x1xf32>, vector<4x4xf32> -> vector<4x4xf32>
    %cst_64 = arith.constant 1.000000e+00 : f32
    %122 = vector.broadcast %cst_64 : f32 to vector<4x4xf32>
    %123 = arith.subf %122, %121 : vector<4x4xf32>
    %124 = arith.mulf %123, %123 : vector<4x4xf32>
    %125 = vector.shape_cast %124 : vector<4x4xf32> to vector<1x4x4xf32>
    %cst_65 = arith.constant dense<0.000000e+00> : vector<1xf32>
    %126 = vector.multi_reduction <add>, %125, %cst_65 [1, 2] : vector<1x4x4xf32> to vector<1xf32>
    %127 = vector.shape_cast %126 : vector<1xf32> to vector<1x1x1xf32>
    %128 = vector.extract %127[0, 0, 0] : f32 from vector<1x1x1xf32>
    %129 = vector.broadcast %128 : f32 to vector<1x1xf32>
    %130 = math.sqrt %129 : vector<1x1xf32>
    %cst_66 = arith.constant 1.600000e+01 : f32
    %131 = vector.broadcast %cst_66 : f32 to vector<1x1xf32>
    %132 = arith.divf %130, %131 : vector<1x1xf32>
    %cst_67 = arith.constant 1.000000e+00 : f32
    %133 = vector.broadcast %cst_67 : f32 to vector<1x1xf32>
    %134 = arith.maximumf %120, %133 : vector<1x1xf32>
    %135 = vector.broadcast %120 : vector<1x1xf32> to vector<1x50xf32>
    %136 = arith.mulf %135, %117 : vector<1x50xf32>
    %137 = vector.broadcast %134 : vector<1x1xf32> to vector<1x50xf32>
    %138 = arith.divf %136, %137 : vector<1x50xf32>
    %c0_68 = arith.constant 0 : index
    %c0_69 = arith.constant 0 : index
    %139 = vector.load %arg9[%c0_68, %c0_69] : memref<50x50xf32, #tpu.memory_space<vmem>>, vector<50x50xf32>
    %cst_70 = arith.constant dense<0.000000e+00> : vector<1x50xf32>
    %140 = tpu.matmul %138, %139, %cst_70 {dimension_numbers = #tpu.dot_dimension_numbers<[1], [0], [0], [1], [0, 0, 1, 1], [], []>} : vector<1x50xf32>, vector<50x50xf32>, vector<1x50xf32> -> vector<1x50xf32>
    %c0_71 = arith.constant 0 : index
    %c0_72 = arith.constant 0 : index
    %141 = vector.load %arg10[%c0_71, %c0_72] : memref<50x50xf32, #tpu.memory_space<vmem>>, vector<50x50xf32>
    %cst_73 = arith.constant dense<0.000000e+00> : vector<1x50xf32>
    %142 = tpu.matmul %117, %141, %cst_73 {dimension_numbers = #tpu.dot_dimension_numbers<[1], [0], [0], [1], [0, 0, 1, 1], [], []>} : vector<1x50xf32>, vector<50x50xf32>, vector<1x50xf32> -> vector<1x50xf32>
    %143 = arith.addf %140, %142 : vector<1x50xf32>
    %c0_74 = arith.constant 0 : index
    %c0_75 = arith.constant 0 : index
    %144 = vector.load %arg11[%c0_74, %c0_75] : memref<1x50xf32, #tpu.memory_space<vmem>>, vector<1x50xf32>
    %145 = arith.addf %143, %144 : vector<1x50xf32>
    %cst_76 = arith.constant 0.000000e+00 : f32
    %146 = vector.broadcast %cst_76 : f32 to vector<1x50xf32>
    %147 = arith.cmpf ogt, %145, %146 : vector<1x50xf32>
    %cst_77 = arith.constant 0.00999999977 : f32
    %148 = vector.broadcast %cst_77 : f32 to vector<1x50xf32>
    %149 = arith.mulf %148, %145 : vector<1x50xf32>
    %150 = arith.select %147, %145, %149 : vector<1x50xi1>, vector<1x50xf32>
    %cst_78 = arith.constant dense<0xFF800000> : vector<1xf32>
    %151 = vector.multi_reduction <maximumf>, %150, %cst_78 [1] : vector<1x50xf32> to vector<1xf32>
    %152 = vector.shape_cast %151 : vector<1xf32> to vector<1x1xf32>
    %153 = vector.broadcast %152 : vector<1x1xf32> to vector<1x50xf32>
    %154 = arith.subf %150, %153 : vector<1x50xf32>
    %155 = math.exp %154 : vector<1x50xf32>
    %cst_79 = arith.constant dense<0.000000e+00> : vector<1xf32>
    %156 = vector.multi_reduction <add>, %155, %cst_79 [1] : vector<1x50xf32> to vector<1xf32>
    %157 = vector.shape_cast %156 : vector<1xf32> to vector<1x1xf32>
    %158 = vector.broadcast %157 : vector<1x1xf32> to vector<1x50xf32>
    %159 = arith.divf %155, %158 : vector<1x50xf32>
    %160 = arith.mulf %159, %159 : vector<1x50xf32>
    %161 = vector.shape_cast %160 : vector<1x50xf32> to vector<1x1x50xf32>
    %cst_80 = arith.constant dense<0.000000e+00> : vector<1xf32>
    %162 = vector.multi_reduction <add>, %161, %cst_80 [1, 2] : vector<1x1x50xf32> to vector<1xf32>
    %163 = vector.shape_cast %162 : vector<1xf32> to vector<1x1x1xf32>
    %164 = vector.extract %163[0, 0, 0] : f32 from vector<1x1x1xf32>
    %165 = vector.broadcast %164 : f32 to vector<1x1xf32>
    %166 = arith.subf %120, %165 : vector<1x1xf32>
    %167 = arith.mulf %166, %166 : vector<1x1xf32>
    %168 = math.sqrt %167 : vector<1x1xf32>
    %cst_81 = arith.constant 1.000000e+00 : f32
    %169 = vector.broadcast %cst_81 : f32 to vector<1x1xf32>
    %170 = arith.divf %168, %169 : vector<1x1xf32>
    %c0_82 = arith.constant 0 : index
    %c0_83 = arith.constant 0 : index
    %171 = vector.load %arg17[%c0_82, %c0_83] : memref<50x25xf32, #tpu.memory_space<vmem>>, vector<50x25xf32>
    %cst_84 = arith.constant dense<0.000000e+00> : vector<1x25xf32>
    %172 = tpu.matmul %150, %171, %cst_84 {dimension_numbers = #tpu.dot_dimension_numbers<[1], [0], [0], [1], [0, 0, 1, 1], [], []>} : vector<1x50xf32>, vector<50x25xf32>, vector<1x25xf32> -> vector<1x25xf32>
    %c0_85 = arith.constant 0 : index
    %c0_86 = arith.constant 0 : index
    %173 = vector.load %arg18[%c0_85, %c0_86] : memref<1x25xf32, #tpu.memory_space<vmem>>, vector<1x25xf32>
    %174 = arith.addf %172, %173 : vector<1x25xf32>
    %cst_87 = arith.constant 0.000000e+00 : f32
    %175 = vector.broadcast %cst_87 : f32 to vector<1x25xf32>
    %176 = arith.cmpf ogt, %174, %175 : vector<1x25xf32>
    %cst_88 = arith.constant 0.00999999977 : f32
    %177 = vector.broadcast %cst_88 : f32 to vector<1x25xf32>
    %178 = arith.mulf %177, %174 : vector<1x25xf32>
    %179 = arith.select %176, %174, %178 : vector<1x25xi1>, vector<1x25xf32>
    %c0_89 = arith.constant 0 : index
    %c0_90 = arith.constant 0 : index
    %180 = vector.load %arg19[%c0_89, %c0_90] : memref<25x2xf32, #tpu.memory_space<vmem>>, vector<25x2xf32>
    %cst_91 = arith.constant dense<0.000000e+00> : vector<1x2xf32>
    %181 = tpu.matmul %179, %180, %cst_91 {dimension_numbers = #tpu.dot_dimension_numbers<[1], [0], [0], [1], [0, 0, 1, 1], [], []>} : vector<1x25xf32>, vector<25x2xf32>, vector<1x2xf32> -> vector<1x2xf32>
    %c0_92 = arith.constant 0 : index
    %c0_93 = arith.constant 0 : index
    %182 = vector.load %arg20[%c0_92, %c0_93] : memref<1x2xf32, #tpu.memory_space<vmem>>, vector<1x2xf32>
    %183 = arith.addf %181, %182 : vector<1x2xf32>
    %cst_94 = arith.constant 0.000000e+00 : f32
    %184 = vector.broadcast %cst_94 : f32 to vector<1x2xf32>
    %185 = arith.cmpf ogt, %183, %184 : vector<1x2xf32>
    %cst_95 = arith.constant 0.00999999977 : f32
    %186 = vector.broadcast %cst_95 : f32 to vector<1x2xf32>
    %187 = arith.mulf %186, %183 : vector<1x2xf32>
    %188 = arith.select %185, %183, %187 : vector<1x2xi1>, vector<1x2xf32>
    %cst_96 = arith.constant dense<0xFF800000> : vector<1xf32>
    %189 = vector.multi_reduction <maximumf>, %188, %cst_96 [1] : vector<1x2xf32> to vector<1xf32>
    %190 = vector.shape_cast %189 : vector<1xf32> to vector<1x1xf32>
    %191 = vector.broadcast %190 : vector<1x1xf32> to vector<1x2xf32>
    %192 = arith.subf %188, %191 : vector<1x2xf32>
    %193 = math.exp %192 : vector<1x2xf32>
    %cst_97 = arith.constant dense<0.000000e+00> : vector<1xf32>
    %194 = vector.multi_reduction <add>, %193, %cst_97 [1] : vector<1x2xf32> to vector<1xf32>
    %195 = vector.shape_cast %194 : vector<1xf32> to vector<1x1xf32>
    %196 = vector.broadcast %195 : vector<1x1xf32> to vector<1x2xf32>
    %197 = arith.divf %193, %196 : vector<1x2xf32>
    %c0_98 = arith.constant 0 : index
    %c0_99 = arith.constant 0 : index
    %198 = vector.load %arg21[%c0_98, %c0_99] : memref<1x2xf32, #tpu.memory_space<vmem>>, vector<1x2xf32>
    tpu.vector_store %arg21[%c0_98, %c0_99], %197 {strides = array<i32>} : memref<1x2xf32, #tpu.memory_space<vmem>>, vector<1x2xf32>,
    %199 = arith.addf %132, %106 : vector<1x1xf32>
    %200 = arith.addf %199, %170 : vector<1x1xf32>
    %c0_100 = arith.constant 0 : index
    %c0_101 = arith.constant 0 : index
    %201 = vector.load %arg22[%c0_100, %c0_101] : memref<1x1xf32, #tpu.memory_space<vmem>>, vector<1x1xf32>
    tpu.vector_store %arg22[%c0_100, %c0_101], %200 {strides = array<i32>} : memref<1x1xf32, #tpu.memory_space<vmem>>, vector<1x1xf32>,
    return
  }
  func.func @transform_0(%arg0: i32) -> (i32, i32) {
    %c0_i32 = arith.constant 0 : i32
    %c0_i32_0 = arith.constant 0 : i32
    %c0_i32_1 = arith.constant 0 : i32
    return %c0_i32, %c0_i32_0 : i32, i32
  }
  func.func @transform_1(%arg0: i32) -> (i32, i32) {
    %c0_i32 = arith.constant 0 : i32
    %c0_i32_0 = arith.constant 0 : i32
    %c0_i32_1 = arith.constant 0 : i32
    return %c0_i32, %c0_i32_0 : i32, i32
  }
  func.func @transform_2(%arg0: i32) -> (i32, i32) {
    %c0_i32 = arith.constant 0 : i32
    %c0_i32_0 = arith.constant 0 : i32
    %c0_i32_1 = arith.constant 0 : i32
    return %c0_i32, %c0_i32_0 : i32, i32
  }
  func.func @transform_3(%arg0: i32) -> (i32, i32) {
    %c0_i32 = arith.constant 0 : i32
    %c0_i32_0 = arith.constant 0 : i32
    %c0_i32_1 = arith.constant 0 : i32
    return %c0_i32, %c0_i32_0 : i32, i32
  }
  func.func @transform_4(%arg0: i32) -> (i32, i32) {
    %c0_i32 = arith.constant 0 : i32
    %c0_i32_0 = arith.constant 0 : i32
    %c0_i32_1 = arith.constant 0 : i32
    return %c0_i32, %c0_i32_0 : i32, i32
  }
  func.func @transform_5(%arg0: i32) -> (i32, i32) {
    %c0_i32 = arith.constant 0 : i32
    %c0_i32_0 = arith.constant 0 : i32
    %c0_i32_1 = arith.constant 0 : i32
    return %c0_i32, %c0_i32_0 : i32, i32
  }
  func.func @transform_6(%arg0: i32) -> (i32, i32) {
    %c0_i32 = arith.constant 0 : i32
    %c0_i32_0 = arith.constant 0 : i32
    %c0_i32_1 = arith.constant 0 : i32
    return %c0_i32, %c0_i32_0 : i32, i32
  }
  func.func @transform_7(%arg0: i32) -> (i32, i32) {
    %c0_i32 = arith.constant 0 : i32
    %c0_i32_0 = arith.constant 0 : i32
    %c0_i32_1 = arith.constant 0 : i32
    return %c0_i32, %c0_i32_0 : i32, i32
  }
  func.func @transform_8(%arg0: i32) -> (i32, i32) {
    %c0_i32 = arith.constant 0 : i32
    %c0_i32_0 = arith.constant 0 : i32
    %c0_i32_1 = arith.constant 0 : i32
    return %c0_i32, %c0_i32_0 : i32, i32
  }
  func.func @transform_9(%arg0: i32) -> (i32, i32) {
    %c0_i32 = arith.constant 0 : i32
    %c0_i32_0 = arith.constant 0 : i32
    %c0_i32_1 = arith.constant 0 : i32
    return %c0_i32, %c0_i32_0 : i32, i32
  }
  func.func @transform_10(%arg0: i32) -> (i32, i32) {
    %c0_i32 = arith.constant 0 : i32
    %c0_i32_0 = arith.constant 0 : i32
    %c0_i32_1 = arith.constant 0 : i32
    return %c0_i32, %c0_i32_0 : i32, i32
  }
  func.func @transform_11(%arg0: i32) -> (i32, i32) {
    %c0_i32 = arith.constant 0 : i32
    %c0_i32_0 = arith.constant 0 : i32
    %c0_i32_1 = arith.constant 0 : i32
    return %c0_i32, %c0_i32_0 : i32, i32
  }
  func.func @transform_12(%arg0: i32) -> (i32, i32) {
    %c0_i32 = arith.constant 0 : i32
    %c0_i32_0 = arith.constant 0 : i32
    %c0_i32_1 = arith.constant 0 : i32
    return %c0_i32, %c0_i32_0 : i32, i32
  }
  func.func @transform_13(%arg0: i32) -> (i32, i32) {
    %c0_i32 = arith.constant 0 : i32
    %c0_i32_0 = arith.constant 0 : i32
    %c0_i32_1 = arith.constant 0 : i32
    return %c0_i32, %c0_i32_0 : i32, i32
  }
  func.func @transform_14(%arg0: i32) -> (i32, i32) {
    %c0_i32 = arith.constant 0 : i32
    %c0_i32_0 = arith.constant 0 : i32
    %c0_i32_1 = arith.constant 0 : i32
    return %c0_i32, %c0_i32_0 : i32, i32
  }
  func.func @transform_15(%arg0: i32) -> (i32, i32) {
    %c0_i32 = arith.constant 0 : i32
    %c0_i32_0 = arith.constant 0 : i32
    %c0_i32_1 = arith.constant 0 : i32
    return %c0_i32, %c0_i32_0 : i32, i32
  }
  func.func @transform_16(%arg0: i32) -> (i32, i32) {
    %c0_i32 = arith.constant 0 : i32
    %c0_i32_0 = arith.constant 0 : i32
    %c0_i32_1 = arith.constant 0 : i32
    return %c0_i32, %c0_i32_0 : i32, i32
  }
  func.func @transform_17(%arg0: i32) -> (i32, i32) {
    %c0_i32 = arith.constant 0 : i32
    %c0_i32_0 = arith.constant 0 : i32
    %c0_i32_1 = arith.constant 0 : i32
    return %c0_i32, %c0_i32_0 : i32, i32
  }
  func.func @transform_18(%arg0: i32) -> (i32, i32) {
    %c0_i32 = arith.constant 0 : i32
    %c0_i32_0 = arith.constant 0 : i32
    %c0_i32_1 = arith.constant 0 : i32
    return %c0_i32, %c0_i32_0 : i32, i32
  }
  func.func @transform_19(%arg0: i32) -> (i32, i32) {
    %c0_i32 = arith.constant 0 : i32
    %c0_i32_0 = arith.constant 0 : i32
    %c0_i32_1 = arith.constant 0 : i32
    return %c0_i32, %c0_i32_0 : i32, i32
  }
  func.func @transform_20(%arg0: i32) -> (i32, i32) {
    %c0_i32 = arith.constant 0 : i32
    %c0_i32_0 = arith.constant 0 : i32
    %c0_i32_1 = arith.constant 0 : i32
    return %c0_i32, %c0_i32_0 : i32, i32
  }
  func.func @transform_21(%arg0: i32) -> (i32, i32) {
    %c0_i32 = arith.constant 0 : i32
    %c0_i32_0 = arith.constant 0 : i32
    %c0_i32_1 = arith.constant 0 : i32
    return %c0_i32, %c0_i32_0 : i32, i32
  }
}

</mosaic_0001>

<bundles_post_ra>
// kernel: _forward.2
= control target key start
LH: loop header
LB: loop body
LE: loop exit
PB: predicated region body
PF: predicated region fallthrough
CT: control target
= control target key end

     0   :  { %v5919_v0 = vmov 0.0   ;;  %vm4233_vm0 = vmmov 0   ;;  %vm371_vm1 = vcmask 1044480   ;;  %vm372_vm2 = vcmask 1045504   ;;  %s5912_s4 = inlined_call_operand.vmem [shape: bf16[75,20], index: 4, kind: input, shape index: {}]   ;;  %s5913_s0 = inlined_call_operand.vmem [shape: bf16[484,75], index: 0, kind: input, shape index: {}]   ;;  %s5914_s1 = inlined_call_operand.vmem [shape: bf16[484,75], index: 1, kind: input, shape index: {}]   ;;  %s5915_s2 = inlined_call_operand.vmem [shape: bf16[484,75], index: 2, kind: input, shape index: {}]   ;;  %s5916_s3 = inlined_call_operand.vmem [shape: bf16[484,75], index: 3, kind: input, shape index: {}]   ;;  %s5917_s5 = inlined_call_operand.vmem [shape: f32[1,20], index: 5, kind: input, shape index: {}]   ;;  %s5918_s6 = inlined_call_operand.vmem [shape: bf16[484,20], index: 6, kind: output, shape index: {}]  }
   0x1   :  { %3563 = vmatprep.subr.bf16.mxu0 %v5919_v0  ;;  %3697 = vmatprep.subr.bf16.mxu1 %v5919_v0  ;;  %v4102_v1 = vld [vmem:[%s5912_s4] sm:$0xff]   ;;  %v4103_v2 = vld [vmem:[%s5912_s4 + $0x8] sm:$0xff]   ;;  %v4104_v3 = vld [vmem:[%s5912_s4 + $0x10] sm:$0xff]   ;;  %v4234_v4 = vmov 65535   ;;  %vm277_vm3 = vcmask 613376   ;;  %vm2976_vm4 = vcmask 158720  }
   0x2   :  { %3564 = vmatpush3.bf16.msra.mxu0 %v4102_v1  ;;  %3698 = vmatpush3.bf16.msra.mxu1 %v4102_v1  ;;  %v373_v5 = vsel %vm371_vm1, 4294967295, %v4234_v4  ;;  %v4105_v6 = vld [vmem:[%s5912_s4 + $0x18] sm:$0xff]   ;;  %v4106_v7 = vld [vmem:[%s5912_s4 + $0x20] sm:$0x3f]   ;;  %v4109_v12 = vld [vmem:[%s5913_s0 + $0x8] sm:$0xff]   ;;  %vm3037_vm5 = vcmask 156672  }
   0x3   :  { %3565 = vmatprep.subr.bf16.mxu0 %v5919_v0  ;;  %3699 = vmatprep.subr.bf16.mxu1 %v5919_v0  ;;  %v374_v8 = vsel %vm372_vm2, %v373_v5, 0  ;;  %v4107_v10 = vld [vmem:[%s5913_s0] sm:$0xff]   ;;  %v4110_v13 = vld [vmem:[%s5914_s1 + $0x8] sm:$0xff]   ;;  %v4111_v14 = vld [vmem:[%s5913_s0 + $0x10] sm:$0xff]  }
   0x4   :  { %3573 = vmatprep.mubr.msk.bf16.mxu0 %vm4233_vm0, %v5919_v0  ;;  %3707 = vmatprep.mubr.msk.bf16.mxu1 %vm4233_vm0, %v5919_v0  ;;  %v376_v9 = vand.u32 %v4106_v7, %v374_v8  ;;  %v4108_v11 = vld [vmem:[%s5914_s1] sm:$0xff]   ;;  %v4112_v15 = vld [vmem:[%s5914_s1 + $0x10] sm:$0xff]   ;;  %v4113_v16 = vld [vmem:[%s5913_s0 + $0x18] sm:$0xff]  }
   0x5   :  { %v4114_v17 = vld [vmem:[%s5914_s1 + $0x18] sm:$0xff]   ;;  %v4115_v18 = vld [vmem:[%s5913_s0 + $0x20] sm:$0xff]   ;;  %v4117_v20 = vld [vmem:[%s5913_s0 + $0x28] sm:$0xff]  }
   0x6   :  { %3566 = vmatpush3.bf16.msra.mxu0 %v4103_v2  ;;  %3700 = vmatpush3.bf16.msra.mxu1 %v4103_v2  ;;  %v4116_v19 = vld [vmem:[%s5914_s1 + $0x20] sm:$0xff]   ;;  %v4118_v21 = vld [vmem:[%s5914_s1 + $0x28] sm:$0xff]   ;;  %v4119_v22 = vld [vmem:[%s5913_s0 + $0x30] sm:$0xff]  }
   0x7   :  { %3567 = vmatprep.subr.bf16.mxu0 %v5919_v0  ;;  %3701 = vmatprep.subr.bf16.mxu1 %v5919_v0  ;;  %v4120_v23 = vld [vmem:[%s5914_s1 + $0x30] sm:$0xff]   ;;  %v4121_v24 = vld [vmem:[%s5913_s0 + $0x38] sm:$0xff]   ;;  %v4123_v26 = vld [vmem:[%s5913_s0 + $0x40] sm:$0xff]  }
   0x8   :  { %v4122_v25 = vld [vmem:[%s5914_s1 + $0x38] sm:$0xff]   ;;  %v4124_v27 = vld [vmem:[%s5914_s1 + $0x40] sm:$0xff]   ;;  %v4125_v28 = vld [vmem:[%s5913_s0 + $0x48] sm:$0xff]  }
   0x9   :  { %v4126_v29 = vld [vmem:[%s5914_s1 + $0x48] sm:$0xff]   ;;  %v4127_v30 = vld [vmem:[%s5913_s0 + $0x50] sm:$0xff]   ;;  %v4129_v32 = vld [vmem:[%s5913_s0 + $0x58] sm:$0xff]  }
   0xa   :  { %3568 = vmatpush3.bf16.msra.mxu0 %v4104_v3  ;;  %3702 = vmatpush3.bf16.msra.mxu1 %v4104_v3  ;;  %v4128_v31 = vld [vmem:[%s5914_s1 + $0x50] sm:$0xff]   ;;  %v4130_v33 = vld [vmem:[%s5914_s1 + $0x58] sm:$0xff]   ;;  %v4131_v34 = vld [vmem:[%s5913_s0 + $0x60] sm:$0xff]  }
   0xb   :  { %3569 = vmatprep.subr.bf16.mxu0 %v5919_v0  ;;  %3703 = vmatprep.subr.bf16.mxu1 %v5919_v0  ;;  %v4132_v35 = vld [vmem:[%s5914_s1 + $0x60] sm:$0xff]   ;;  %v4133_v36 = vld [vmem:[%s5913_s0 + $0x68] sm:$0xff]   ;;  %v4135_v38 = vld [vmem:[%s5913_s0 + $0x70] sm:$0xff]  }
   0xc   :  { %v4134_v37 = vld [vmem:[%s5914_s1 + $0x68] sm:$0xff]   ;;  %v4136_v39 = vld [vmem:[%s5914_s1 + $0x70] sm:$0xff]   ;;  %v4137_v40 = vld [vmem:[%s5913_s0 + $0x78] sm:$0xff]  }
   0xd   :  { %v4138_v41 = vld [vmem:[%s5914_s1 + $0x78] sm:$0xff]   ;;  %v4139_v42 = vld [vmem:[%s5913_s0 + $0x80] sm:$0xff]   ;;  %v4141_v44 = vld [vmem:[%s5913_s0 + $0x88] sm:$0xff]  }
   0xe   :  { %3570 = vmatpush3.bf16.msra.mxu0 %v4105_v6  ;;  %3704 = vmatpush3.bf16.msra.mxu1 %v4105_v6  ;;  %v4140_v43 = vld [vmem:[%s5914_s1 + $0x80] sm:$0xff]   ;;  %v4142_v45 = vld [vmem:[%s5914_s1 + $0x88] sm:$0xff]   ;;  %v4143_v46 = vld [vmem:[%s5913_s0 + $0x90] sm:$0xff]  }
   0xf   :  { %3571 = vmatprep.subr.bf16.mxu0 %v5919_v0  ;;  %3705 = vmatprep.subr.bf16.mxu1 %v5919_v0  ;;  %v4144_v47 = vld [vmem:[%s5914_s1 + $0x90] sm:$0xff]   ;;  %v4145_v48 = vld [vmem:[%s5913_s0 + $0x98] sm:$0xff]   ;;  %v4147_v50 = vld [vmem:[%s5913_s0 + $0xa0] sm:$0xff]  }
  0x10   :  { %v4146_v49 = vld [vmem:[%s5914_s1 + $0x98] sm:$0xff]   ;;  %v4148_v51 = vld [vmem:[%s5914_s1 + $0xa0] sm:$0xff]   ;;  %v4149_v52 = vld [vmem:[%s5913_s0 + $0xa8] sm:$0xff]  }
  0x11   :  { %v4150_v53 = vld [vmem:[%s5914_s1 + $0xa8] sm:$0xff]   ;;  %v4151_v54 = vld [vmem:[%s5913_s0 + $0xb0] sm:$0xff]   ;;  %v4153_v56 = vld [vmem:[%s5913_s0 + $0xb8] sm:$0xff]  }
  0x12   :  { %3572 = vmatpush3.bf16.msra.mxu0 %v376_v9  ;;  %3706 = vmatpush3.bf16.msra.mxu1 %v376_v9  ;;  %v4152_v55 = vld [vmem:[%s5914_s1 + $0xb0] sm:$0xff]   ;;  %v4154_v57 = vld [vmem:[%s5914_s1 + $0xb8] sm:$0xff]   ;;  %v4155_v58 = vld [vmem:[%s5913_s0 + $0xc0] sm:$0xff]  }
  0x13   :  { %3831 = vmatprep.subr.bf16.mxu0 %v5919_v0  ;;  %3965 = vmatprep.subr.bf16.mxu1 %v5919_v0  ;;  %v4156_v59 = vld [vmem:[%s5914_s1 + $0xc0] sm:$0xff]   ;;  %v4157_v60 = vld [vmem:[%s5913_s0 + $0xc8] sm:$0xff]   ;;  %v4159_v62 = vld [vmem:[%s5913_s0 + $0xd0] sm:$0xff]  }
  0x14   :  { %v4158_v61 = vld [vmem:[%s5914_s1 + $0xc8] sm:$0xff]   ;;  %v4160_v63 = vld [vmem:[%s5914_s1 + $0xd0] sm:$0xff]   ;;  %v4162_v7 = vld [vmem:[%s5914_s1 + $0xd8] sm:$0xff]  }
  0x15   :  { %3574 = vmatmul.mubr.msk.bf16.vlgmr.msra.gmra.mrb[0].mxu0 %vm277_vm3, %v4107_v10  ;;  %3708 = vmatmul.mubr.msk.bf16.vlgmr.msra.gmra.mrb[0].mxu1 %vm277_vm3, %v4108_v11 }
  0x16   :  { %3832 = vmatpush3.bf16.msra.mxu0 %v4102_v1  ;;  %3966 = vmatpush3.bf16.msra.mxu1 %v4102_v1 }
  0x17   :  { %3577 = vmatprep.mubr.msk.bf16.mxu0 %vm4233_vm0, %v5919_v0  ;;  %3711 = vmatprep.mubr.msk.bf16.mxu1 %vm4233_vm0, %v5919_v0 }
  0x18   :  { %3833 = vmatprep.subr.bf16.mxu0 %v5919_v0  ;;  %3967 = vmatprep.subr.bf16.mxu1 %v5919_v0 }
  0x1a   :  { %3834 = vmatpush3.bf16.msra.mxu0 %v4103_v2  ;;  %3968 = vmatpush3.bf16.msra.mxu1 %v4103_v2 }
  0x1b   :  { %3835 = vmatprep.subr.bf16.mxu0 %v5919_v0  ;;  %3969 = vmatprep.subr.bf16.mxu1 %v5919_v0 }
  0x1d   :  { %3578 = vmatmul.mubr.msk.bf16.gmra.mrb[4].mxu0 %vm277_vm3, %v4109_v12  ;;  %3712 = vmatmul.mubr.msk.bf16.gmra.mrb[4].mxu1 %vm277_vm3, %v4110_v13 }
  0x1e   :  { %3581 = vmatprep.mubr.msk.bf16.mxu0 %vm4233_vm0, %v5919_v0  ;;  %3715 = vmatprep.mubr.msk.bf16.mxu1 %vm4233_vm0, %v5919_v0 }
  0x1f   :  { %3836 = vmatpush3.bf16.msra.mxu0 %v4104_v3  ;;  %3970 = vmatpush3.bf16.msra.mxu1 %v4104_v3 }
  0x20   :  { %3837 = vmatprep.subr.bf16.mxu0 %v5919_v0  ;;  %3971 = vmatprep.subr.bf16.mxu1 %v5919_v0 }
  0x23   :  { %3838 = vmatpush3.bf16.msra.mxu0 %v4105_v6  ;;  %3972 = vmatpush3.bf16.msra.mxu1 %v4105_v6  ;;  %v4161_v6 = vld [vmem:[%s5913_s0 + $0xd8] sm:$0xff]  }
  0x24   :  { %3839 = vmatprep.subr.bf16.mxu0 %v5919_v0  ;;  %3973 = vmatprep.subr.bf16.mxu1 %v5919_v0 }
  0x25   :  { %3582 = vmatmul.mubr.msk.bf16.gmra.mrb[8].mxu0 %vm277_vm3, %v4111_v14  ;;  %3716 = vmatmul.mubr.msk.bf16.gmra.mrb[8].mxu1 %vm277_vm3, %v4112_v15 }
  0x26   :  { %3585 = vmatprep.mubr.msk.bf16.mxu0 %vm4233_vm0, %v5919_v0  ;;  %3719 = vmatprep.mubr.msk.bf16.mxu1 %vm4233_vm0, %v5919_v0 }
  0x27   :  { %3840 = vmatpush3.bf16.msra.mxu0 %v376_v9  ;;  %3974 = vmatpush3.bf16.msra.mxu1 %v376_v9 }
  0x2d   :  { %3586 = vmatmul.mubr.msk.bf16.gmra.mrb[12].mxu0 %vm277_vm3, %v4113_v16  ;;  %3720 = vmatmul.mubr.msk.bf16.gmra.mrb[12].mxu1 %vm277_vm3, %v4114_v17 }
  0x2e   :  { %3589 = vmatprep.mubr.msk.bf16.mxu0 %vm4233_vm0, %v5919_v0  ;;  %3723 = vmatprep.mubr.msk.bf16.mxu1 %vm4233_vm0, %v5919_v0 }
  0x35   :  { %3590 = vmatmul.mubr.msk.bf16.gmra.mrb[16].mxu0 %vm277_vm3, %v4115_v18  ;;  %3724 = vmatmul.mubr.msk.bf16.gmra.mrb[16].mxu1 %vm277_vm3, %v4116_v19  ;;  %v4163_v18 = vld [vmem:[%s5913_s0 + $0xe0] sm:$0xff]  }
  0x36   :  { %3593 = vmatprep.mubr.msk.bf16.mxu0 %vm4233_vm0, %v5919_v0  ;;  %3727 = vmatprep.mubr.msk.bf16.mxu1 %vm4233_vm0, %v5919_v0  ;;  %v4164_v19 = vld [vmem:[%s5914_s1 + $0xe0] sm:$0xff]  }
  0x3d   :  { %3594 = vmatmul.mubr.msk.bf16.gmra.mrb[20].mxu0 %vm277_vm3, %v4117_v20  ;;  %3728 = vmatmul.mubr.msk.bf16.gmra.mrb[20].mxu1 %vm277_vm3, %v4118_v21 }
  0x3e   :  { %3597 = vmatprep.mubr.msk.bf16.mxu0 %vm4233_vm0, %v5919_v0  ;;  %3731 = vmatprep.mubr.msk.bf16.mxu1 %vm4233_vm0, %v5919_v0 }
  0x45   :  { %3598 = vmatmul.mubr.msk.bf16.gmra.mrb[24].mxu0 %vm277_vm3, %v4119_v22  ;;  %3732 = vmatmul.mubr.msk.bf16.gmra.mrb[24].mxu1 %vm277_vm3, %v4120_v23 }
  0x46   :  { %3601 = vmatprep.mubr.msk.bf16.mxu0 %vm4233_vm0, %v5919_v0  ;;  %3735 = vmatprep.mubr.msk.bf16.mxu1 %vm4233_vm0, %v5919_v0 }
  0x4d   :  { %3602 = vmatmul.mubr.msk.bf16.gmra.mrb[28].mxu0 %vm277_vm3, %v4121_v24  ;;  %3736 = vmatmul.mubr.msk.bf16.gmra.mrb[28].mxu1 %vm277_vm3, %v4122_v25 }
  0x4e   :  { %3605 = vmatprep.mubr.msk.bf16.mxu0 %vm4233_vm0, %v5919_v0  ;;  %3739 = vmatprep.mubr.msk.bf16.mxu1 %vm4233_vm0, %v5919_v0 }
  0x55   :  { %3606 = vmatmul.mubr.msk.bf16.gmra.mrb[32].mxu0 %vm277_vm3, %v4123_v26  ;;  %3740 = vmatmul.mubr.msk.bf16.gmra.mrb[32].mxu1 %vm277_vm3, %v4124_v27 }
  0x56   :  { %3609 = vmatprep.mubr.msk.bf16.mxu0 %vm4233_vm0, %v5919_v0  ;;  %3743 = vmatprep.mubr.msk.bf16.mxu1 %vm4233_vm0, %v5919_v0 }
  0x5d   :  { %3610 = vmatmul.mubr.msk.bf16.gmra.mrb[36].mxu0 %vm277_vm3, %v4125_v28  ;;  %3744 = vmatmul.mubr.msk.bf16.gmra.mrb[36].mxu1 %vm277_vm3, %v4126_v29 }
  0x5e   :  { %3613 = vmatprep.mubr.msk.bf16.mxu0 %vm4233_vm0, %v5919_v0  ;;  %3747 = vmatprep.mubr.msk.bf16.mxu1 %vm4233_vm0, %v5919_v0 }
  0x65   :  { %3614 = vmatmul.mubr.msk.bf16.gmra.mrb[40].mxu0 %vm277_vm3, %v4127_v30  ;;  %3748 = vmatmul.mubr.msk.bf16.gmra.mrb[40].mxu1 %vm277_vm3, %v4128_v31  ;;  %v4165_v30 = vld [vmem:[%s5913_s0 + $0xe8] sm:$0xff]  }
  0x66   :  { %3617 = vmatprep.mubr.msk.bf16.mxu0 %vm4233_vm0, %v5919_v0  ;;  %3751 = vmatprep.mubr.msk.bf16.mxu1 %vm4233_vm0, %v5919_v0  ;;  %v4166_v31 = vld [vmem:[%s5914_s1 + $0xe8] sm:$0xff]  }
  0x6d   :  { %3618 = vmatmul.mubr.msk.bf16.gmra.mrb[44].mxu0 %vm277_vm3, %v4129_v32  ;;  %3752 = vmatmul.mubr.msk.bf16.gmra.mrb[44].mxu1 %vm277_vm3, %v4130_v33 }
  0x6e   :  { %3621 = vmatprep.mubr.msk.bf16.mxu0 %vm4233_vm0, %v5919_v0  ;;  %3755 = vmatprep.mubr.msk.bf16.mxu1 %vm4233_vm0, %v5919_v0 }
  0x75   :  { %3622 = vmatmul.mubr.msk.bf16.gmra.mrb[48].mxu0 %vm277_vm3, %v4131_v34  ;;  %3756 = vmatmul.mubr.msk.bf16.gmra.mrb[48].mxu1 %vm277_vm3, %v4132_v35 }
  0x76   :  { %3625 = vmatprep.mubr.msk.bf16.mxu0 %vm4233_vm0, %v5919_v0  ;;  %3759 = vmatprep.mubr.msk.bf16.mxu1 %vm4233_vm0, %v5919_v0 }
  0x7d   :  { %3626 = vmatmul.mubr.msk.bf16.gmra.mrb[52].mxu0 %vm277_vm3, %v4133_v36  ;;  %3760 = vmatmul.mubr.msk.bf16.gmra.mrb[52].mxu1 %vm277_vm3, %v4134_v37 }
  0x7e   :  { %3629 = vmatprep.mubr.msk.bf16.mxu0 %vm4233_vm0, %v5919_v0  ;;  %3763 = vmatprep.mubr.msk.bf16.mxu1 %vm4233_vm0, %v5919_v0 }
  0x85   :  { %3630 = vmatmul.mubr.msk.bf16.gmra.mrb[56].mxu0 %vm277_vm3, %v4135_v38  ;;  %3764 = vmatmul.mubr.msk.bf16.gmra.mrb[56].mxu1 %vm277_vm3, %v4136_v39  ;;  %v4167_v39 = vld [vmem:[%s5913_s0 + $0xf0] ss:$0 sps:$4 sm:$0x33]  }
  0x86   :  { %3633 = vmatprep.mubr.msk.bf16.mxu0 %vm4233_vm0, %v5919_v0  ;;  %3767 = vmatprep.mubr.msk.bf16.mxu1 %vm4233_vm0, %v5919_v0 }
  0x8d   :  { %3634 = vmatmul.mubr.msk.bf16.gmra.mrb[60].mxu0 %vm277_vm3, %v4137_v40  ;;  %3768 = vmatmul.mubr.msk.bf16.gmra.mrb[60].mxu1 %vm277_vm3, %v4138_v41 }
  0x8e   :  { %3637 = vmatprep.mubr.msk.bf16.mxu0 %vm4233_vm0, %v5919_v0  ;;  %3771 = vmatprep.mubr.msk.bf16.mxu1 %vm4233_vm0, %v5919_v0 }
  0x95   :  { %3638 = vmatmul.mubr.msk.bf16.gmra.mrb[64].mxu0 %vm277_vm3, %v4139_v42  ;;  %3772 = vmatmul.mubr.msk.bf16.gmra.mrb[64].mxu1 %vm277_vm3, %v4140_v43  ;;  %v4168_v43 = vld [vmem:[%s5914_s1 + $0xf0] ss:$0 sps:$4 sm:$0x33]  }
  0x96   :  { %3641 = vmatprep.mubr.msk.bf16.mxu0 %vm4233_vm0, %v5919_v0  ;;  %3775 = vmatprep.mubr.msk.bf16.mxu1 %vm4233_vm0, %v5919_v0 }
  0x9d   :  { %3642 = vmatmul.mubr.msk.bf16.gmra.mrb[68].mxu0 %vm277_vm3, %v4141_v44  ;;  %3776 = vmatmul.mubr.msk.bf16.gmra.mrb[68].mxu1 %vm277_vm3, %v4142_v45 }
  0x9e   :  { %3645 = vmatprep.mubr.msk.bf16.mxu0 %vm4233_vm0, %v5919_v0  ;;  %3779 = vmatprep.mubr.msk.bf16.mxu1 %vm4233_vm0, %v5919_v0 }
  0xa5   :  { %3646 = vmatmul.mubr.msk.bf16.gmra.mrb[72].mxu0 %vm277_vm3, %v4143_v46  ;;  %3780 = vmatmul.mubr.msk.bf16.gmra.mrb[72].mxu1 %vm277_vm3, %v4144_v47 }
  0xa6   :  { %3649 = vmatprep.mubr.msk.bf16.mxu0 %vm4233_vm0, %v5919_v0  ;;  %3783 = vmatprep.mubr.msk.bf16.mxu1 %vm4233_vm0, %v5919_v0 }
  0xad   :  { %3650 = vmatmul.mubr.msk.bf16.gmra.mrb[76].mxu0 %vm277_vm3, %v4145_v48  ;;  %3784 = vmatmul.mubr.msk.bf16.gmra.mrb[76].mxu1 %vm277_vm3, %v4146_v49 }
  0xae   :  { %3653 = vmatprep.mubr.msk.bf16.mxu0 %vm4233_vm0, %v5919_v0  ;;  %3787 = vmatprep.mubr.msk.bf16.mxu1 %vm4233_vm0, %v5919_v0 }
  0xb5   :  { %3654 = vmatmul.mubr.msk.bf16.gmra.mrb[80].mxu0 %vm277_vm3, %v4147_v50  ;;  %3788 = vmatmul.mubr.msk.bf16.gmra.mrb[80].mxu1 %vm277_vm3, %v4148_v51 }
  0xb6   :  { %3657 = vmatprep.mubr.msk.bf16.mxu0 %vm4233_vm0, %v5919_v0  ;;  %3791 = vmatprep.mubr.msk.bf16.mxu1 %vm4233_vm0, %v5919_v0 }
  0xbd   :  { %3658 = vmatmul.mubr.msk.bf16.gmra.mrb[84].mxu0 %vm277_vm3, %v4149_v52  ;;  %3792 = vmatmul.mubr.msk.bf16.gmra.mrb[84].mxu1 %vm277_vm3, %v4150_v53 }
  0xbe   :  { %3661 = vmatprep.mubr.msk.bf16.mxu0 %vm4233_vm0, %v5919_v0  ;;  %3795 = vmatprep.mubr.msk.bf16.mxu1 %vm4233_vm0, %v5919_v0 }
  0xc5   :  { %3662 = vmatmul.mubr.msk.bf16.gmra.mrb[88].mxu0 %vm277_vm3, %v4151_v54  ;;  %3796 = vmatmul.mubr.msk.bf16.gmra.mrb[88].mxu1 %vm277_vm3, %v4152_v55  ;;  %v4169_v54 = vld [vmem:[%s5915_s2] sm:$0xff]  }
  0xc6   :  { %3665 = vmatprep.mubr.msk.bf16.mxu0 %vm4233_vm0, %v5919_v0  ;;  %3799 = vmatprep.mubr.msk.bf16.mxu1 %vm4233_vm0, %v5919_v0  ;;  %v4170_v55 = vld [vmem:[%s5916_s3] sm:$0xff]  }
  0xcd   :  { %3666 = vmatmul.mubr.msk.bf16.gmra.mrb[92].mxu0 %vm277_vm3, %v4153_v56  ;;  %3800 = vmatmul.mubr.msk.bf16.gmra.mrb[92].mxu1 %vm277_vm3, %v4154_v57 }
  0xce   :  { %3669 = vmatprep.mubr.msk.bf16.mxu0 %vm4233_vm0, %v5919_v0  ;;  %3803 = vmatprep.mubr.msk.bf16.mxu1 %vm4233_vm0, %v5919_v0 }
  0xd5   :  { %3670 = vmatmul.mubr.msk.bf16.gmra.mrb[96].mxu0 %vm277_vm3, %v4155_v58  ;;  %3804 = vmatmul.mubr.msk.bf16.gmra.mrb[96].mxu1 %vm277_vm3, %v4156_v59 }
  0xd6   :  { %3673 = vmatprep.mubr.msk.bf16.mxu0 %vm4233_vm0, %v5919_v0  ;;  %3807 = vmatprep.mubr.msk.bf16.mxu1 %vm4233_vm0, %v5919_v0 }
  0xdd   :  { %3674 = vmatmul.mubr.msk.bf16.gmra.mrb[100].mxu0 %vm277_vm3, %v4157_v60  ;;  %3808 = vmatmul.mubr.msk.bf16.gmra.mrb[100].mxu1 %vm277_vm3, %v4158_v61 }
  0xde   :  { %3677 = vmatprep.mubr.msk.bf16.mxu0 %vm4233_vm0, %v5919_v0  ;;  %3811 = vmatprep.mubr.msk.bf16.mxu1 %vm4233_vm0, %v5919_v0 }
  0xe5   :  { %3678 = vmatmul.mubr.msk.bf16.gmra.mrb[104].mxu0 %vm277_vm3, %v4159_v62  ;;  %3812 = vmatmul.mubr.msk.bf16.gmra.mrb[104].mxu1 %vm277_vm3, %v4160_v63 }
  0xe6   :  { %3681 = vmatprep.mubr.msk.bf16.mxu0 %vm4233_vm0, %v5919_v0  ;;  %3815 = vmatprep.mubr.msk.bf16.mxu1 %vm4233_vm0, %v5919_v0 }
  0xe8   :  { %v4633_v1 = vpop.f32.mrb[0].mxu0  ;;  %v4635_v2 = vpop.f32.mrb[0].mxu1 }
  0xe9   :  { %v3575_v4 = vpop.f32.mrb[1].mxu0  ;;  %v3709_v5 = vpop.f32.mrb[1].mxu1 }
  0xea   :  { %v4645_v8 = vpop.f32.mrb[2].mxu0  ;;  %v4647_v9 = vpop.f32.mrb[2].mxu1 }
  0xeb   :  { %v3576_v11 = vpop.f32.mrb[3].mxu0  ;;  %v3710_v12 = vpop.f32.mrb[3].mxu1 }
  0xed   :  { %3682 = vmatmul.mubr.msk.bf16.gmra.mrb[108].mxu0 %vm277_vm3, %v4161_v6  ;;  %3816 = vmatmul.mubr.msk.bf16.gmra.mrb[108].mxu1 %vm277_vm3, %v4162_v7  ;;  %v4171_v6 = vld [vmem:[%s5915_s2 + $0x8] sm:$0xff]  }
  0xee   :  { %3685 = vmatprep.mubr.msk.bf16.mxu0 %vm4233_vm0, %v5919_v0  ;;  %3819 = vmatprep.mubr.msk.bf16.mxu1 %vm4233_vm0, %v5919_v0  ;;  %v4172_v7 = vld [vmem:[%s5916_s3 + $0x8] sm:$0xff]  }
  0xf0   :  { %v4657_v13 = vpop.f32.mrb[4].mxu0  ;;  %v4659_v14 = vpop.f32.mrb[4].mxu1 }
  0xf1   :  { %v3579_v16 = vpop.f32.mrb[5].mxu0  ;;  %v3713_v17 = vpop.f32.mrb[5].mxu1 }
  0xf2   :  { %v4669_v20 = vpop.f32.mrb[6].mxu0  ;;  %v4671_v21 = vpop.f32.mrb[6].mxu1 }
  0xf3   :  { %v3580_v23 = vpop.f32.mrb[7].mxu0  ;;  %v3714_v24 = vpop.f32.mrb[7].mxu1 }
  0xf5   :  { %3686 = vmatmul.mubr.msk.bf16.gmra.mrb[112].mxu0 %vm277_vm3, %v4163_v18  ;;  %3820 = vmatmul.mubr.msk.bf16.gmra.mrb[112].mxu1 %vm277_vm3, %v4164_v19 }
  0xf6   :  { %3689 = vmatprep.mubr.msk.bf16.mxu0 %vm4233_vm0, %v5919_v0  ;;  %3823 = vmatprep.mubr.msk.bf16.mxu1 %vm4233_vm0, %v5919_v0 }
  0xf8   :  { %v4681_v25 = vpop.f32.mrb[8].mxu0  ;;  %v4683_v26 = vpop.f32.mrb[8].mxu1 }
  0xf9   :  { %v3583_v28 = vpop.f32.mrb[9].mxu0  ;;  %v3717_v29 = vpop.f32.mrb[9].mxu1 }
  0xfa   :  { %v4693_v32 = vpop.f32.mrb[10].mxu0  ;;  %v4695_v33 = vpop.f32.mrb[10].mxu1 }
  0xfb   :  { %v3584_v35 = vpop.f32.mrb[11].mxu0  ;;  %v3718_v36 = vpop.f32.mrb[11].mxu1 }
  0xfd   :  { %3690 = vmatmul.mubr.msk.bf16.gmra.mrb[116].mxu0 %vm277_vm3, %v4165_v30  ;;  %3824 = vmatmul.mubr.msk.bf16.gmra.mrb[116].mxu1 %vm277_vm3, %v4166_v31  ;;  %v4173_v30 = vld [vmem:[%s5915_s2 + $0x10] sm:$0xff]  }
  0xfe   :  { %3693 = vmatprep.mubr.msk.bf16.mxu0 %vm4233_vm0, %v5919_v0  ;;  %3827 = vmatprep.mubr.msk.bf16.mxu1 %vm4233_vm0, %v5919_v0  ;;  %v4174_v31 = vld [vmem:[%s5916_s3 + $0x10] sm:$0xff]  }
 0x100   :  { %v4705_v37 = vpop.f32.mrb[12].mxu0  ;;  %v4707_v38 = vpop.f32.mrb[12].mxu1 }
 0x101   :  { %v3587_v41 = vpop.f32.mrb[13].mxu0  ;;  %v3721_v42 = vpop.f32.mrb[13].mxu1 }
 0x102   :  { %v4717_v44 = vpop.f32.mrb[14].mxu0  ;;  %v4719_v45 = vpop.f32.mrb[14].mxu1 }
 0x103   :  { %v3588_v47 = vpop.f32.mrb[15].mxu0  ;;  %v3722_v48 = vpop.f32.mrb[15].mxu1 }
 0x105   :  { %3694 = vmatmul.mubr.msk.bf16.gmra.mrb[120].mxu0 %vm277_vm3, %v4167_v39  ;;  %3828 = vmatmul.mubr.msk.bf16.gmra.mrb[120].mxu1 %vm277_vm3, %v4168_v43 }
 0x106   :  { %3841 = vmatprep.mubr.msk.bf16.mxu0 %vm4233_vm0, %v5919_v0  ;;  %3975 = vmatprep.mubr.msk.bf16.mxu1 %vm4233_vm0, %v5919_v0 }
 0x108   :  { %v4729_v49 = vpop.f32.mrb[16].mxu0  ;;  %v4731_v50 = vpop.f32.mrb[16].mxu1 }
 0x109   :  { %v3591_v52 = vpop.f32.mrb[17].mxu0  ;;  %v3725_v53 = vpop.f32.mrb[17].mxu1 }
 0x10a   :  { %v4741_v56 = vpop.f32.mrb[18].mxu0  ;;  %v4743_v57 = vpop.f32.mrb[18].mxu1 }
 0x10b   :  { %v3592_v59 = vpop.f32.mrb[19].mxu0  ;;  %v3726_v60 = vpop.f32.mrb[19].mxu1 }
 0x10d   :  { %3842 = vmatmul.mubr.msk.bf16.vlgmr.msra.gmra.mrb[124].mxu0 %vm277_vm3, %v4169_v54  ;;  %3976 = vmatmul.mubr.msk.bf16.vlgmr.msra.gmra.mrb[124].mxu1 %vm277_vm3, %v4170_v55  ;;  %v4175_v54 = vld [vmem:[%s5915_s2 + $0x18] sm:$0xff]  }
 0x10e   :  { %3845 = vmatprep.mubr.msk.bf16.mxu0 %vm4233_vm0, %v5919_v0  ;;  %3979 = vmatprep.mubr.msk.bf16.mxu1 %vm4233_vm0, %v5919_v0  ;;  %v4176_v55 = vld [vmem:[%s5916_s3 + $0x18] sm:$0xff]  }
 0x110   :  { %v4753_v61 = vpop.f32.mrb[20].mxu0  ;;  %v4755_v62 = vpop.f32.mrb[20].mxu1 }
 0x111   :  { %v3595_v4 = vpop.f32.mrb[21].mxu0  ;;  %v3729_v5 = vpop.f32.mrb[21].mxu1 }
 0x112   :  { %v4765_v11 = vpop.f32.mrb[22].mxu0  ;;  %v4767_v12 = vpop.f32.mrb[22].mxu1 }
 0x113   :  { %v3596_v17 = vpop.f32.mrb[23].mxu0  ;;  %v3730_v18 = vpop.f32.mrb[23].mxu1 }
 0x115   :  { %3846 = vmatmul.mubr.msk.bf16.gmra.mrb[128].mxu0 %vm277_vm3, %v4171_v6  ;;  %3980 = vmatmul.mubr.msk.bf16.gmra.mrb[128].mxu1 %vm277_vm3, %v4172_v7 }
 0x116   :  { %3849 = vmatprep.mubr.msk.bf16.mxu0 %vm4233_vm0, %v5919_v0  ;;  %3983 = vmatprep.mubr.msk.bf16.mxu1 %vm4233_vm0, %v5919_v0 }
 0x118   :  { %v4777_v19 = vpop.f32.mrb[24].mxu0  ;;  %v4779_v23 = vpop.f32.mrb[24].mxu1 }
 0x119   :  { %v3599_v28 = vpop.f32.mrb[25].mxu0  ;;  %v3733_v29 = vpop.f32.mrb[25].mxu1 }
 0x11a   :  { %v4789_v35 = vpop.f32.mrb[26].mxu0  ;;  %v4791_v36 = vpop.f32.mrb[26].mxu1 }
 0x11b   :  { %v3600_v41 = vpop.f32.mrb[27].mxu0  ;;  %v3734_v42 = vpop.f32.mrb[27].mxu1 }
 0x11d   :  { %3850 = vmatmul.mubr.msk.bf16.gmra.mrb[132].mxu0 %vm277_vm3, %v4173_v30  ;;  %3984 = vmatmul.mubr.msk.bf16.gmra.mrb[132].mxu1 %vm277_vm3, %v4174_v31  ;;  %v4177_v30 = vld [vmem:[%s5915_s2 + $0x20] sm:$0xff]  }
 0x11e   :  { %3853 = vmatprep.mubr.msk.bf16.mxu0 %vm4233_vm0, %v5919_v0  ;;  %3987 = vmatprep.mubr.msk.bf16.mxu1 %vm4233_vm0, %v5919_v0  ;;  %v4178_v31 = vld [vmem:[%s5916_s3 + $0x20] sm:$0xff]  }
 0x120   :  { %v4801_v43 = vpop.f32.mrb[28].mxu0  ;;  %v4803_v47 = vpop.f32.mrb[28].mxu1 }
 0x121   :  { %v3603_v52 = vpop.f32.mrb[29].mxu0  ;;  %v3737_v53 = vpop.f32.mrb[29].mxu1 }
 0x122   :  { %v4813_v59 = vpop.f32.mrb[30].mxu0  ;;  %v4815_v60 = vpop.f32.mrb[30].mxu1 }
 0x123   :  { %v3604_v5 = vpop.f32.mrb[31].mxu0  ;;  %v3738_v6 = vpop.f32.mrb[31].mxu1 }
 0x125   :  { %3854 = vmatmul.mubr.msk.bf16.gmra.mrb[136].mxu0 %vm277_vm3, %v4175_v54  ;;  %3988 = vmatmul.mubr.msk.bf16.gmra.mrb[136].mxu1 %vm277_vm3, %v4176_v55 }
 0x126   :  { %3857 = vmatprep.mubr.msk.bf16.mxu0 %vm4233_vm0, %v5919_v0  ;;  %3991 = vmatprep.mubr.msk.bf16.mxu1 %vm4233_vm0, %v5919_v0 }
 0x128   :  { %v4825_v7 = vpop.f32.mrb[32].mxu0  ;;  %v4827_v17 = vpop.f32.mrb[32].mxu1 }
 0x129   :  { %v3607_v28 = vpop.f32.mrb[33].mxu0  ;;  %v3741_v29 = vpop.f32.mrb[33].mxu1 }
 0x12a   :  { %v4837_v41 = vpop.f32.mrb[34].mxu0  ;;  %v4839_v42 = vpop.f32.mrb[34].mxu1 }
 0x12b   :  { %v3608_v53 = vpop.f32.mrb[35].mxu0  ;;  %v3742_v54 = vpop.f32.mrb[35].mxu1 }
 0x12d   :  { %3858 = vmatmul.mubr.msk.bf16.gmra.mrb[140].mxu0 %vm277_vm3, %v4177_v30  ;;  %3992 = vmatmul.mubr.msk.bf16.gmra.mrb[140].mxu1 %vm277_vm3, %v4178_v31  ;;  %v4179_v30 = vld [vmem:[%s5915_s2 + $0x28] sm:$0xff]  }
 0x12e   :  { %3861 = vmatprep.mubr.msk.bf16.mxu0 %vm4233_vm0, %v5919_v0  ;;  %3995 = vmatprep.mubr.msk.bf16.mxu1 %vm4233_vm0, %v5919_v0  ;;  %v4180_v31 = vld [vmem:[%s5916_s3 + $0x28] sm:$0xff]  }
 0x130   :  { %v4849_v55 = vpop.f32.mrb[36].mxu0  ;;  %v4851_v5 = vpop.f32.mrb[36].mxu1 }
 0x131   :  { %v3611_v28 = vpop.f32.mrb[37].mxu0  ;;  %v3745_v29 = vpop.f32.mrb[37].mxu1 }
 0x132   :  { %v4861_v53 = vpop.f32.mrb[38].mxu0  ;;  %v4863_v54 = vpop.f32.mrb[38].mxu1 }
 0x133   :  { %v3612_v18 = vpop.f32.mrb[39].mxu0  ;;  %v3746_v4 = vpop.f32.mrb[39].mxu1 }
 0x134   :  { %v4181_v4 = vld [vmem:[%s5915_s2 + $0x30] sm:$0xff]  }
 0x135   :  { %3862 = vmatmul.mubr.msk.bf16.gmra.mrb[144].mxu0 %vm277_vm3, %v4179_v30  ;;  %3996 = vmatmul.mubr.msk.bf16.gmra.mrb[144].mxu1 %vm277_vm3, %v4180_v31  ;;  %v4182_v30 = vld [vmem:[%s5916_s3 + $0x30] sm:$0xff]  }
 0x136   :  { %3865 = vmatprep.mubr.msk.bf16.mxu0 %vm4233_vm0, %v5919_v0  ;;  %3999 = vmatprep.mubr.msk.bf16.mxu1 %vm4233_vm0, %v5919_v0 }
 0x138   :  { %v4873_v28 = vpop.f32.mrb[40].mxu0  ;;  %v4875_v29 = vpop.f32.mrb[40].mxu1 }
 0x139   :  { %v3615_v52 = vpop.f32.mrb[41].mxu0  ;;  %v3749_v18 = vpop.f32.mrb[41].mxu1 }
 0x13a   :  { %v4885_v31 = vpop.f32.mrb[42].mxu0  ;;  %v4887_v48 = vpop.f32.mrb[42].mxu1 }
 0x13b   :  { %v3616_v24 = vpop.f32.mrb[43].mxu0  ;;  %v3750_v16 = vpop.f32.mrb[43].mxu1 }
 0x13c   :  { %v4183_v16 = vld [vmem:[%s5915_s2 + $0x38] sm:$0xff]  }
 0x13d   :  { %3866 = vmatmul.mubr.msk.bf16.gmra.mrb[148].mxu0 %vm277_vm3, %v4181_v4  ;;  %4000 = vmatmul.mubr.msk.bf16.gmra.mrb[148].mxu1 %vm277_vm3, %v4182_v30  ;;  %v4184_v4 = vld [vmem:[%s5916_s3 + $0x38] sm:$0xff]  }
 0x13e   :  { %3869 = vmatprep.mubr.msk.bf16.mxu0 %vm4233_vm0, %v5919_v0  ;;  %4003 = vmatprep.mubr.msk.bf16.mxu1 %vm4233_vm0, %v5919_v0 }
 0x140   :  { %v4897_v52 = vpop.f32.mrb[44].mxu0  ;;  %v4899_v18 = vpop.f32.mrb[44].mxu1 }
 0x141   :  { %v3619_v39 = vpop.f32.mrb[45].mxu0  ;;  %v3753_v24 = vpop.f32.mrb[45].mxu1 }
 0x142   :  { %v4909_v30 = vpop.f32.mrb[46].mxu0  ;;  %v4911_v63 = vpop.f32.mrb[46].mxu1 }
 0x143   :  { %v3620_v51 = vpop.f32.mrb[47].mxu0  ;;  %v3754_v46 = vpop.f32.mrb[47].mxu1 }
 0x144   :  { %v4185_v46 = vld [vmem:[%s5915_s2 + $0x40] sm:$0xff]  }
 0x145   :  { %3870 = vmatmul.mubr.msk.bf16.gmra.mrb[152].mxu0 %vm277_vm3, %v4183_v16  ;;  %4004 = vmatmul.mubr.msk.bf16.gmra.mrb[152].mxu1 %vm277_vm3, %v4184_v4  ;;  %v4186_v16 = vld [vmem:[%s5916_s3 + $0x40] sm:$0xff]  }
 0x146   :  { %3873 = vmatprep.mubr.msk.bf16.mxu0 %vm4233_vm0, %v5919_v0  ;;  %4007 = vmatprep.mubr.msk.bf16.mxu1 %vm4233_vm0, %v5919_v0 }
 0x148   :  { %v4921_v39 = vpop.f32.mrb[48].mxu0  ;;  %v4923_v24 = vpop.f32.mrb[48].mxu1 }
 0x149   :  { %5994 = vst [vmem:[#allocation2_spill] sm:$0xff] %v4923_v24  ;;  %v3623_v58 = vpop.f32.mrb[49].mxu0  ;;  %v3757_v51 = vpop.f32.mrb[49].mxu1 }
 0x14a   :  { %v4933_v4 = vpop.f32.mrb[50].mxu0  ;;  %v4935_v40 = vpop.f32.mrb[50].mxu1 }
 0x14b   :  { %5995 = vst [vmem:[#allocation3_spill] sm:$0xff] %v4933_v4  ;;  %5996 = vst [vmem:[#allocation4_spill] sm:$0xff] %v4935_v40  ;;  %v3624_v27 = vpop.f32.mrb[51].mxu0  ;;  %v3758_v22 = vpop.f32.mrb[51].mxu1  ;;  %v6069_v4 = vmax.f32 %v4645_v8, %v4647_v9 }
 0x14c   :  { %v4187_v22 = vld [vmem:[%s5915_s2 + $0x48] sm:$0xff]  }
 0x14d   :  { %3874 = vmatmul.mubr.msk.bf16.gmra.mrb[156].mxu0 %vm277_vm3, %v4185_v46  ;;  %4008 = vmatmul.mubr.msk.bf16.gmra.mrb[156].mxu1 %vm277_vm3, %v4186_v16  ;;  %v4188_v46 = vld [vmem:[%s5916_s3 + $0x48] sm:$0xff]  }
 0x14e   :  { %3877 = vmatprep.mubr.msk.bf16.mxu0 %vm4233_vm0, %v5919_v0  ;;  %4011 = vmatprep.mubr.msk.bf16.mxu1 %vm4233_vm0, %v5919_v0 }
 0x150   :  { %v4945_v58 = vpop.f32.mrb[52].mxu0  ;;  %v4947_v51 = vpop.f32.mrb[52].mxu1 }
 0x151   :  { %5997 = vst [vmem:[#allocation5_spill] sm:$0xff] %v4945_v58  ;;  %5998 = vst [vmem:[#allocation6_spill] sm:$0xff] %v4947_v51  ;;  %v3627_v34 = vpop.f32.mrb[53].mxu0  ;;  %v3761_v27 = vpop.f32.mrb[53].mxu1 }
 0x152   :  { %v4957_v16 = vpop.f32.mrb[54].mxu0  ;;  %v4959_v15 = vpop.f32.mrb[54].mxu1  ;;  %v6001_v34 = vmov 0.0  }
 0x153   :  { %5999 = vst [vmem:[#allocation7_spill] sm:$0xff] %v4957_v16  ;;  %6000 = vst [vmem:[#allocation8_spill] sm:$0xff] %v4959_v15  ;;  %v3628_v3 = vpop.f32.mrb[55].mxu0  ;;  %v3762_v0 = vpop.f32.mrb[55].mxu1 }
 0x154   :  { %v4189_v0 = vld [vmem:[%s5915_s2 + $0x50] sm:$0xff]  }
 0x155   :  { %3878 = vmatmul.mubr.msk.bf16.gmra.mrb[160].mxu0 %vm277_vm3, %v4187_v22  ;;  %4012 = vmatmul.mubr.msk.bf16.gmra.mrb[160].mxu1 %vm277_vm3, %v4188_v46  ;;  %v4190_v22 = vld [vmem:[%s5916_s3 + $0x50] sm:$0xff]  }
 0x156   :  { %3881 = vmatprep.mubr.msk.bf16.mxu0 %vm4233_vm0, %v6001_v34  ;;  %4015 = vmatprep.mubr.msk.bf16.mxu1 %vm4233_vm0, %v6001_v34 }
 0x158   :  { %v4969_v27 = vpop.f32.mrb[56].mxu0  ;;  %v4971_v6 = vpop.f32.mrb[56].mxu1 }
 0x159   :  { %6002 = vst [vmem:[#allocation9_spill] sm:$0xff] %v4969_v27  ;;  %6003 = vst [vmem:[#allocation10_spill] sm:$0xff] %v4971_v6  ;;  %v3631_v10 = vpop.f32.mrb[57].mxu0  ;;  %v3765_v3 = vpop.f32.mrb[57].mxu1 }
 0x15a   :  { %v4981_v46 = vpop.f32.mrb[58].mxu0  ;;  %v4983_v15 = vpop.f32.mrb[58].mxu1 }
 0x15b   :  { %6004 = vst [vmem:[#allocation11_spill] sm:$0xff] %v4981_v46  ;;  %6005 = vst [vmem:[#allocation12_spill] sm:$0xff] %v4983_v15  ;;  %v3632_v58 = vpop.f32.mrb[59].mxu0  ;;  %v3766_v40 = vpop.f32.mrb[59].mxu1 }
 0x15c   :  { %v4191_v40 = vld [vmem:[%s5915_s2 + $0x58] sm:$0xff]  }
 0x15d   :  { %3882 = vmatmul.mubr.msk.bf16.gmra.mrb[164].mxu0 %vm277_vm3, %v4189_v0  ;;  %4016 = vmatmul.mubr.msk.bf16.gmra.mrb[164].mxu1 %vm277_vm3, %v4190_v22  ;;  %v4192_v0 = vld [vmem:[%s5916_s3 + $0x58] sm:$0xff]  }
 0x15e   :  { %3885 = vmatprep.mubr.msk.bf16.mxu0 %vm4233_vm0, %v6001_v34  ;;  %4019 = vmatprep.mubr.msk.bf16.mxu1 %vm4233_vm0, %v6001_v34 }
 0x160   :  { %v4993_v10 = vpop.f32.mrb[60].mxu0  ;;  %v4995_v3 = vpop.f32.mrb[60].mxu1 }
 0x161   :  { %6006 = vst [vmem:[#allocation13_spill] sm:$0xff] %v4993_v10  ;;  %6007 = vst [vmem:[#allocation14_spill] sm:$0xff] %v4995_v3  ;;  %v3635_v16 = vpop.f32.mrb[61].mxu0  ;;  %v3769_v58 = vpop.f32.mrb[61].mxu1 }
 0x162   :  { %v5005_v22 = vpop.f32.mrb[62].mxu0  ;;  %v5007_v15 = vpop.f32.mrb[62].mxu1 }
 0x163   :  { %6008 = vst [vmem:[#allocation15_spill] sm:$0xff] %v5005_v22  ;;  %6009 = vst [vmem:[#allocation16_spill] sm:$0xff] %v5007_v15  ;;  %v3636_v6 = vpop.f32.mrb[63].mxu0  ;;  %v3770_v27 = vpop.f32.mrb[63].mxu1 }
 0x164   :  { %v4193_v27 = vld [vmem:[%s5915_s2 + $0x60] sm:$0xff]  }
 0x165   :  { %3886 = vmatmul.mubr.msk.bf16.gmra.mrb[168].mxu0 %vm277_vm3, %v4191_v40  ;;  %4020 = vmatmul.mubr.msk.bf16.gmra.mrb[168].mxu1 %vm277_vm3, %v4192_v0  ;;  %v4194_v40 = vld [vmem:[%s5916_s3 + $0x60] sm:$0xff]  }
 0x166   :  { %3889 = vmatprep.mubr.msk.bf16.mxu0 %vm4233_vm0, %v6001_v34  ;;  %4023 = vmatprep.mubr.msk.bf16.mxu1 %vm4233_vm0, %v6001_v34 }
 0x168   :  { %v5017_v16 = vpop.f32.mrb[64].mxu0  ;;  %v5019_v58 = vpop.f32.mrb[64].mxu1 }
 0x169   :  { %6010 = vst [vmem:[#allocation17_spill] sm:$0xff] %v5017_v16  ;;  %6011 = vst [vmem:[#allocation18_spill] sm:$0xff] %v5019_v58  ;;  %v3639_v46 = vpop.f32.mrb[65].mxu0  ;;  %v3773_v6 = vpop.f32.mrb[65].mxu1 }
 0x16a   :  { %v5029_v0 = vpop.f32.mrb[66].mxu0  ;;  %v5031_v15 = vpop.f32.mrb[66].mxu1 }
 0x16b   :  { %6012 = vst [vmem:[#allocation19_spill] sm:$0xff] %v5029_v0  ;;  %6013 = vst [vmem:[#allocation20_spill] sm:$0xff] %v5031_v15  ;;  %v3640_v3 = vpop.f32.mrb[67].mxu0  ;;  %v3774_v10 = vpop.f32.mrb[67].mxu1 }
 0x16c   :  { %v4195_v10 = vld [vmem:[%s5915_s2 + $0x68] sm:$0xff]  }
 0x16d   :  { %3890 = vmatmul.mubr.msk.bf16.gmra.mrb[172].mxu0 %vm277_vm3, %v4193_v27  ;;  %4024 = vmatmul.mubr.msk.bf16.gmra.mrb[172].mxu1 %vm277_vm3, %v4194_v40  ;;  %v4196_v27 = vld [vmem:[%s5916_s3 + $0x68] sm:$0xff]  }
 0x16e   :  { %3893 = vmatprep.mubr.msk.bf16.mxu0 %vm4233_vm0, %v6001_v34  ;;  %4027 = vmatprep.mubr.msk.bf16.mxu1 %vm4233_vm0, %v6001_v34 }
 0x170   :  { %v5041_v46 = vpop.f32.mrb[68].mxu0  ;;  %v5043_v6 = vpop.f32.mrb[68].mxu1 }
 0x171   :  { %6014 = vst [vmem:[#allocation21_spill] sm:$0xff] %v5041_v46  ;;  %6015 = vst [vmem:[#allocation22_spill] sm:$0xff] %v5043_v6  ;;  %v3643_v22 = vpop.f32.mrb[69].mxu0  ;;  %v3777_v3 = vpop.f32.mrb[69].mxu1 }
 0x172   :  { %v5053_v40 = vpop.f32.mrb[70].mxu0  ;;  %v5055_v15 = vpop.f32.mrb[70].mxu1 }
 0x173   :  { %6016 = vst [vmem:[#allocation23_spill] sm:$0xff] %v5053_v40  ;;  %6017 = vst [vmem:[#allocation24_spill] sm:$0xff] %v5055_v15  ;;  %v3644_v58 = vpop.f32.mrb[71].mxu0  ;;  %v3778_v16 = vpop.f32.mrb[71].mxu1 }
 0x174   :  { %v4197_v16 = vld [vmem:[%s5915_s2 + $0x70] sm:$0xff]  }
 0x175   :  { %3894 = vmatmul.mubr.msk.bf16.gmra.mrb[176].mxu0 %vm277_vm3, %v4195_v10  ;;  %4028 = vmatmul.mubr.msk.bf16.gmra.mrb[176].mxu1 %vm277_vm3, %v4196_v27  ;;  %v4198_v10 = vld [vmem:[%s5916_s3 + $0x70] sm:$0xff]  }
 0x176   :  { %3897 = vmatprep.mubr.msk.bf16.mxu0 %vm4233_vm0, %v6001_v34  ;;  %4031 = vmatprep.mubr.msk.bf16.mxu1 %vm4233_vm0, %v6001_v34 }
 0x178   :  { %v5065_v22 = vpop.f32.mrb[72].mxu0  ;;  %v5067_v3 = vpop.f32.mrb[72].mxu1 }
 0x179   :  { %6018 = vst [vmem:[#allocation25_spill] sm:$0xff] %v5065_v22  ;;  %6019 = vst [vmem:[#allocation26_spill] sm:$0xff] %v5067_v3  ;;  %v3647_v0 = vpop.f32.mrb[73].mxu0  ;;  %v3781_v58 = vpop.f32.mrb[73].mxu1 }
 0x17a   :  { %v5077_v27 = vpop.f32.mrb[74].mxu0  ;;  %v5079_v15 = vpop.f32.mrb[74].mxu1 }
 0x17b   :  { %6020 = vst [vmem:[#allocation27_spill] sm:$0xff] %v5077_v27  ;;  %6021 = vst [vmem:[#allocation28_spill] sm:$0xff] %v5079_v15  ;;  %v3648_v6 = vpop.f32.mrb[75].mxu0  ;;  %v3782_v46 = vpop.f32.mrb[75].mxu1 }
 0x17c   :  { %v4199_v46 = vld [vmem:[%s5915_s2 + $0x78] sm:$0xff]  }
 0x17d   :  { %3898 = vmatmul.mubr.msk.bf16.gmra.mrb[180].mxu0 %vm277_vm3, %v4197_v16  ;;  %4032 = vmatmul.mubr.msk.bf16.gmra.mrb[180].mxu1 %vm277_vm3, %v4198_v10  ;;  %v4200_v16 = vld [vmem:[%s5916_s3 + $0x78] sm:$0xff]  }
 0x17e   :  { %3901 = vmatprep.mubr.msk.bf16.mxu0 %vm4233_vm0, %v6001_v34  ;;  %4035 = vmatprep.mubr.msk.bf16.mxu1 %vm4233_vm0, %v6001_v34 }
 0x180   :  { %v5089_v0 = vpop.f32.mrb[76].mxu0  ;;  %v5091_v58 = vpop.f32.mrb[76].mxu1 }
 0x181   :  { %6022 = vst [vmem:[#allocation29_spill] sm:$0xff] %v5089_v0  ;;  %6023 = vst [vmem:[#allocation30_spill] sm:$0xff] %v5091_v58  ;;  %v3651_v40 = vpop.f32.mrb[77].mxu0  ;;  %v3785_v6 = vpop.f32.mrb[77].mxu1 }
 0x182   :  { %v5101_v10 = vpop.f32.mrb[78].mxu0  ;;  %v5103_v15 = vpop.f32.mrb[78].mxu1 }
 0x183   :  { %6024 = vst [vmem:[#allocation31_spill] sm:$0xff] %v5101_v10  ;;  %6025 = vst [vmem:[#allocation32_spill] sm:$0xff] %v5103_v15  ;;  %v3652_v3 = vpop.f32.mrb[79].mxu0  ;;  %v3786_v22 = vpop.f32.mrb[79].mxu1 }
 0x184   :  { %v4201_v22 = vld [vmem:[%s5915_s2 + $0x80] sm:$0xff]  }
 0x185   :  { %3902 = vmatmul.mubr.msk.bf16.gmra.mrb[184].mxu0 %vm277_vm3, %v4199_v46  ;;  %4036 = vmatmul.mubr.msk.bf16.gmra.mrb[184].mxu1 %vm277_vm3, %v4200_v16  ;;  %v4202_v46 = vld [vmem:[%s5916_s3 + $0x80] sm:$0xff]  }
 0x186   :  { %3905 = vmatprep.mubr.msk.bf16.mxu0 %vm4233_vm0, %v6001_v34  ;;  %4039 = vmatprep.mubr.msk.bf16.mxu1 %vm4233_vm0, %v6001_v34 }
 0x188   :  { %v5113_v40 = vpop.f32.mrb[80].mxu0  ;;  %v5115_v6 = vpop.f32.mrb[80].mxu1 }
 0x189   :  { %6026 = vst [vmem:[#allocation33_spill] sm:$0xff] %v5113_v40  ;;  %6027 = vst [vmem:[#allocation34_spill] sm:$0xff] %v5115_v6  ;;  %v3655_v27 = vpop.f32.mrb[81].mxu0  ;;  %v3789_v3 = vpop.f32.mrb[81].mxu1 }
 0x18a   :  { %v5125_v16 = vpop.f32.mrb[82].mxu0  ;;  %v5127_v15 = vpop.f32.mrb[82].mxu1 }
 0x18b   :  { %6028 = vst [vmem:[#allocation35_spill] sm:$0xff] %v5125_v16  ;;  %6029 = vst [vmem:[#allocation36_spill] sm:$0xff] %v5127_v15  ;;  %v3656_v58 = vpop.f32.mrb[83].mxu0  ;;  %v3790_v0 = vpop.f32.mrb[83].mxu1 }
 0x18c   :  { %v4203_v0 = vld [vmem:[%s5915_s2 + $0x88] sm:$0xff]  }
 0x18d   :  { %3906 = vmatmul.mubr.msk.bf16.gmra.mrb[188].mxu0 %vm277_vm3, %v4201_v22  ;;  %4040 = vmatmul.mubr.msk.bf16.gmra.mrb[188].mxu1 %vm277_vm3, %v4202_v46  ;;  %v4204_v22 = vld [vmem:[%s5916_s3 + $0x88] sm:$0xff]  }
 0x18e   :  { %3909 = vmatprep.mubr.msk.bf16.mxu0 %vm4233_vm0, %v6001_v34  ;;  %4043 = vmatprep.mubr.msk.bf16.mxu1 %vm4233_vm0, %v6001_v34 }
 0x190   :  { %v5137_v27 = vpop.f32.mrb[84].mxu0  ;;  %v5139_v3 = vpop.f32.mrb[84].mxu1 }
 0x191   :  { %6030 = vst [vmem:[#allocation37_spill] sm:$0xff] %v5137_v27  ;;  %6031 = vst [vmem:[#allocation38_spill] sm:$0xff] %v5139_v3  ;;  %v3659_v10 = vpop.f32.mrb[85].mxu0  ;;  %v3793_v58 = vpop.f32.mrb[85].mxu1 }
 0x192   :  { %v5149_v46 = vpop.f32.mrb[86].mxu0  ;;  %v5151_v15 = vpop.f32.mrb[86].mxu1 }
 0x193   :  { %6032 = vst [vmem:[#allocation39_spill] sm:$0xff] %v5149_v46  ;;  %6033 = vst [vmem:[#allocation40_spill] sm:$0xff] %v5151_v15  ;;  %v3660_v6 = vpop.f32.mrb[87].mxu0  ;;  %v3794_v40 = vpop.f32.mrb[87].mxu1 }
 0x194   :  { %v4205_v40 = vld [vmem:[%s5915_s2 + $0x90] sm:$0xff]  }
 0x195   :  { %3910 = vmatmul.mubr.msk.bf16.gmra.mrb[192].mxu0 %vm277_vm3, %v4203_v0  ;;  %4044 = vmatmul.mubr.msk.bf16.gmra.mrb[192].mxu1 %vm277_vm3, %v4204_v22  ;;  %v4206_v0 = vld [vmem:[%s5916_s3 + $0x90] sm:$0xff]  }
 0x196   :  { %3913 = vmatprep.mubr.msk.bf16.mxu0 %vm4233_vm0, %v6001_v34  ;;  %4047 = vmatprep.mubr.msk.bf16.mxu1 %vm4233_vm0, %v6001_v34 }
 0x198   :  { %v5161_v10 = vpop.f32.mrb[88].mxu0  ;;  %v5163_v58 = vpop.f32.mrb[88].mxu1 }
 0x199   :  { %6034 = vst [vmem:[#allocation41_spill] sm:$0xff] %v5161_v10  ;;  %6035 = vst [vmem:[#allocation42_spill] sm:$0xff] %v5163_v58  ;;  %v3663_v16 = vpop.f32.mrb[89].mxu0  ;;  %v3797_v6 = vpop.f32.mrb[89].mxu1 }
 0x19a   :  { %v5173_v22 = vpop.f32.mrb[90].mxu0  ;;  %v5175_v15 = vpop.f32.mrb[90].mxu1 }
 0x19b   :  { %6036 = vst [vmem:[#allocation43_spill] sm:$0xff] %v5173_v22  ;;  %6037 = vst [vmem:[#allocation44_spill] sm:$0xff] %v5175_v15  ;;  %v3664_v3 = vpop.f32.mrb[91].mxu0  ;;  %v3798_v27 = vpop.f32.mrb[91].mxu1 }
 0x19c   :  { %v4207_v27 = vld [vmem:[%s5915_s2 + $0x98] sm:$0xff]  }
 0x19d   :  { %3914 = vmatmul.mubr.msk.bf16.gmra.mrb[196].mxu0 %vm277_vm3, %v4205_v40  ;;  %4048 = vmatmul.mubr.msk.bf16.gmra.mrb[196].mxu1 %vm277_vm3, %v4206_v0  ;;  %v4208_v40 = vld [vmem:[%s5916_s3 + $0x98] sm:$0xff]  }
 0x19e   :  { %3917 = vmatprep.mubr.msk.bf16.mxu0 %vm4233_vm0, %v6001_v34  ;;  %4051 = vmatprep.mubr.msk.bf16.mxu1 %vm4233_vm0, %v6001_v34 }
 0x1a0   :  { %v5185_v16 = vpop.f32.mrb[92].mxu0  ;;  %v5187_v6 = vpop.f32.mrb[92].mxu1 }
 0x1a1   :  { %6038 = vst [vmem:[#allocation45_spill] sm:$0xff] %v5185_v16  ;;  %6039 = vst [vmem:[#allocation46_spill] sm:$0xff] %v5187_v6  ;;  %v3667_v46 = vpop.f32.mrb[93].mxu0  ;;  %v3801_v3 = vpop.f32.mrb[93].mxu1 }
 0x1a2   :  { %v5197_v0 = vpop.f32.mrb[94].mxu0  ;;  %v5199_v15 = vpop.f32.mrb[94].mxu1 }
 0x1a3   :  { %6040 = vst [vmem:[#allocation47_spill] sm:$0xff] %v5197_v0  ;;  %6041 = vst [vmem:[#allocation48_spill] sm:$0xff] %v5199_v15  ;;  %v3668_v58 = vpop.f32.mrb[95].mxu0  ;;  %v3802_v10 = vpop.f32.mrb[95].mxu1 }
 0x1a4   :  { %v4209_v10 = vld [vmem:[%s5915_s2 + $0xa0] sm:$0xff]  }
 0x1a5   :  { %3918 = vmatmul.mubr.msk.bf16.gmra.mrb[200].mxu0 %vm277_vm3, %v4207_v27  ;;  %4052 = vmatmul.mubr.msk.bf16.gmra.mrb[200].mxu1 %vm277_vm3, %v4208_v40  ;;  %v4210_v27 = vld [vmem:[%s5916_s3 + $0xa0] sm:$0xff]  }
 0x1a6   :  { %3921 = vmatprep.mubr.msk.bf16.mxu0 %vm4233_vm0, %v6001_v34  ;;  %4055 = vmatprep.mubr.msk.bf16.mxu1 %vm4233_vm0, %v6001_v34 }
 0x1a8   :  { %v5209_v46 = vpop.f32.mrb[96].mxu0  ;;  %v5211_v3 = vpop.f32.mrb[96].mxu1 }
 0x1a9   :  { %6042 = vst [vmem:[#allocation49_spill] sm:$0xff] %v5209_v46  ;;  %6043 = vst [vmem:[#allocation50_spill] sm:$0xff] %v5211_v3  ;;  %v3671_v22 = vpop.f32.mrb[97].mxu0  ;;  %v3805_v58 = vpop.f32.mrb[97].mxu1 }
 0x1aa   :  { %v5221_v40 = vpop.f32.mrb[98].mxu0  ;;  %v5223_v15 = vpop.f32.mrb[98].mxu1 }
 0x1ab   :  { %6044 = vst [vmem:[#allocation51_spill] sm:$0xff] %v5221_v40  ;;  %6045 = vst [vmem:[#allocation52_spill] sm:$0xff] %v5223_v15  ;;  %v3672_v6 = vpop.f32.mrb[99].mxu0  ;;  %v3806_v16 = vpop.f32.mrb[99].mxu1 }
 0x1ac   :  { %v4211_v16 = vld [vmem:[%s5915_s2 + $0xa8] sm:$0xff]  }
 0x1ad   :  { %3922 = vmatmul.mubr.msk.bf16.gmra.mrb[204].mxu0 %vm277_vm3, %v4209_v10  ;;  %4056 = vmatmul.mubr.msk.bf16.gmra.mrb[204].mxu1 %vm277_vm3, %v4210_v27  ;;  %v4212_v10 = vld [vmem:[%s5916_s3 + $0xa8] sm:$0xff]  }
 0x1ae   :  { %3925 = vmatprep.mubr.msk.bf16.mxu0 %vm4233_vm0, %v6001_v34  ;;  %4059 = vmatprep.mubr.msk.bf16.mxu1 %vm4233_vm0, %v6001_v34 }
 0x1b0   :  { %v5233_v22 = vpop.f32.mrb[100].mxu0  ;;  %v5235_v58 = vpop.f32.mrb[100].mxu1 }
 0x1b1   :  { %6046 = vst [vmem:[#allocation53_spill] sm:$0xff] %v5233_v22  ;;  %6047 = vst [vmem:[#allocation54_spill] sm:$0xff] %v5235_v58  ;;  %v3675_v0 = vpop.f32.mrb[101].mxu0  ;;  %v3809_v6 = vpop.f32.mrb[101].mxu1 }
 0x1b2   :  { %v5245_v27 = vpop.f32.mrb[102].mxu0  ;;  %v5247_v15 = vpop.f32.mrb[102].mxu1 }
 0x1b3   :  { %6048 = vst [vmem:[#allocation55_spill] sm:$0xff] %v5245_v27  ;;  %6049 = vst [vmem:[#allocation56_spill] sm:$0xff] %v5247_v15  ;;  %v3676_v3 = vpop.f32.mrb[103].mxu0  ;;  %v3810_v46 = vpop.f32.mrb[103].mxu1 }
 0x1b4   :  { %v4213_v46 = vld [vmem:[%s5915_s2 + $0xb0] sm:$0xff]  }
 0x1b5   :  { %3926 = vmatmul.mubr.msk.bf16.gmra.mrb[208].mxu0 %vm277_vm3, %v4211_v16  ;;  %4060 = vmatmul.mubr.msk.bf16.gmra.mrb[208].mxu1 %vm277_vm3, %v4212_v10  ;;  %v4214_v16 = vld [vmem:[%s5916_s3 + $0xb0] sm:$0xff]  }
 0x1b6   :  { %3929 = vmatprep.mubr.msk.bf16.mxu0 %vm4233_vm0, %v6001_v34  ;;  %4063 = vmatprep.mubr.msk.bf16.mxu1 %vm4233_vm0, %v6001_v34 }
 0x1b8   :  { %v5257_v0 = vpop.f32.mrb[104].mxu0  ;;  %v5259_v6 = vpop.f32.mrb[104].mxu1 }
 0x1b9   :  { %6050 = vst [vmem:[#allocation57_spill] sm:$0xff] %v5257_v0  ;;  %6051 = vst [vmem:[#allocation58_spill] sm:$0xff] %v5259_v6  ;;  %v3679_v40 = vpop.f32.mrb[105].mxu0  ;;  %v3813_v3 = vpop.f32.mrb[105].mxu1 }
 0x1ba   :  { %v5269_v10 = vpop.f32.mrb[106].mxu0  ;;  %v5271_v15 = vpop.f32.mrb[106].mxu1 }
 0x1bb   :  { %6052 = vst [vmem:[#allocation59_spill] sm:$0xff] %v5269_v10  ;;  %6053 = vst [vmem:[#allocation60_spill] sm:$0xff] %v5271_v15  ;;  %v3680_v58 = vpop.f32.mrb[107].mxu0  ;;  %v3814_v22 = vpop.f32.mrb[107].mxu1 }
 0x1bc   :  { %v4215_v22 = vld [vmem:[%s5915_s2 + $0xb8] sm:$0xff]  }
 0x1bd   :  { %3930 = vmatmul.mubr.msk.bf16.gmra.mrb[212].mxu0 %vm277_vm3, %v4213_v46  ;;  %4064 = vmatmul.mubr.msk.bf16.gmra.mrb[212].mxu1 %vm277_vm3, %v4214_v16  ;;  %v4216_v46 = vld [vmem:[%s5916_s3 + $0xb8] sm:$0xff]  }
 0x1be   :  { %3933 = vmatprep.mubr.msk.bf16.mxu0 %vm4233_vm0, %v6001_v34  ;;  %4067 = vmatprep.mubr.msk.bf16.mxu1 %vm4233_vm0, %v6001_v34 }
 0x1c0   :  { %v5281_v40 = vpop.f32.mrb[108].mxu0  ;;  %v5283_v3 = vpop.f32.mrb[108].mxu1 }
 0x1c1   :  { %6054 = vst [vmem:[#allocation61_spill] sm:$0xff] %v5281_v40  ;;  %6055 = vst [vmem:[#allocation62_spill] sm:$0xff] %v5283_v3  ;;  %v3683_v27 = vpop.f32.mrb[109].mxu0  ;;  %v3817_v58 = vpop.f32.mrb[109].mxu1 }
 0x1c2   :  { %v5293_v16 = vpop.f32.mrb[110].mxu0  ;;  %v5295_v15 = vpop.f32.mrb[110].mxu1 }
 0x1c3   :  { %6056 = vst [vmem:[#allocation63_spill] sm:$0xff] %v5293_v16  ;;  %6057 = vst [vmem:[#allocation64_spill] sm:$0xff] %v5295_v15  ;;  %v3684_v6 = vpop.f32.mrb[111].mxu0  ;;  %v3818_v0 = vpop.f32.mrb[111].mxu1 }
 0x1c4   :  { %v4217_v0 = vld [vmem:[%s5915_s2 + $0xc0] sm:$0xff]  }
 0x1c5   :  { %3934 = vmatmul.mubr.msk.bf16.gmra.mrb[216].mxu0 %vm277_vm3, %v4215_v22  ;;  %4068 = vmatmul.mubr.msk.bf16.gmra.mrb[216].mxu1 %vm277_vm3, %v4216_v46  ;;  %v4218_v22 = vld [vmem:[%s5916_s3 + $0xc0] sm:$0xff]  }
 0x1c6   :  { %3937 = vmatprep.mubr.msk.bf16.mxu0 %vm4233_vm0, %v6001_v34  ;;  %4071 = vmatprep.mubr.msk.bf16.mxu1 %vm4233_vm0, %v6001_v34 }
 0x1c8   :  { %v5305_v27 = vpop.f32.mrb[112].mxu0  ;;  %v5307_v58 = vpop.f32.mrb[112].mxu1 }
 0x1c9   :  { %6058 = vst [vmem:[#allocation65_spill] sm:$0xff] %v5305_v27  ;;  %6059 = vst [vmem:[#allocation66_spill] sm:$0xff] %v5307_v58  ;;  %v3687_v10 = vpop.f32.mrb[113].mxu0  ;;  %v3821_v6 = vpop.f32.mrb[113].mxu1 }
 0x1ca   :  { %v5317_v46 = vpop.f32.mrb[114].mxu0  ;;  %v5319_v15 = vpop.f32.mrb[114].mxu1 }
 0x1cb   :  { %6060 = vst [vmem:[#allocation67_spill] sm:$0xff] %v5317_v46  ;;  %6061 = vst [vmem:[#allocation68_spill] sm:$0xff] %v5319_v15  ;;  %v3688_v3 = vpop.f32.mrb[115].mxu0  ;;  %v3822_v40 = vpop.f32.mrb[115].mxu1 }
 0x1cc   :  { %v4219_v40 = vld [vmem:[%s5915_s2 + $0xc8] sm:$0xff]  }
 0x1cd   :  { %3938 = vmatmul.mubr.msk.bf16.gmra.mrb[220].mxu0 %vm277_vm3, %v4217_v0  ;;  %4072 = vmatmul.mubr.msk.bf16.gmra.mrb[220].mxu1 %vm277_vm3, %v4218_v22  ;;  %v4220_v0 = vld [vmem:[%s5916_s3 + $0xc8] sm:$0xff]  }
 0x1ce   :  { %3941 = vmatprep.mubr.msk.bf16.mxu0 %vm4233_vm0, %v6001_v34  ;;  %4075 = vmatprep.mubr.msk.bf16.mxu1 %vm4233_vm0, %v6001_v34 }
 0x1d0   :  { %v5329_v10 = vpop.f32.mrb[116].mxu0  ;;  %v5331_v6 = vpop.f32.mrb[116].mxu1 }
 0x1d1   :  { %6062 = vst [vmem:[#allocation69_spill] sm:$0xff] %v5329_v10  ;;  %6063 = vst [vmem:[#allocation70_spill] sm:$0xff] %v5331_v6  ;;  %v3691_v16 = vpop.f32.mrb[117].mxu0  ;;  %v3825_v3 = vpop.f32.mrb[117].mxu1 }
 0x1d2   :  { %v5341_v22 = vpop.f32.mrb[118].mxu0  ;;  %v5343_v15 = vpop.f32.mrb[118].mxu1 }
 0x1d3   :  { %6064 = vst [vmem:[#allocation71_spill] sm:$0xff] %v5341_v22  ;;  %6065 = vst [vmem:[#allocation72_spill] sm:$0xff] %v5343_v15  ;;  %v3692_v58 = vpop.f32.mrb[119].mxu0  ;;  %v3826_v27 = vpop.f32.mrb[119].mxu1 }
 0x1d4   :  { %v4221_v27 = vld [vmem:[%s5915_s2 + $0xd0] sm:$0xff]  }
 0x1d5   :  { %3942 = vmatmul.mubr.msk.bf16.gmra.mrb[224].mxu0 %vm277_vm3, %v4219_v40  ;;  %4076 = vmatmul.mubr.msk.bf16.gmra.mrb[224].mxu1 %vm277_vm3, %v4220_v0  ;;  %v4222_v40 = vld [vmem:[%s5916_s3 + $0xd0] sm:$0xff]  }
 0x1d6   :  { %3945 = vmatprep.mubr.msk.bf16.mxu0 %vm4233_vm0, %v6001_v34  ;;  %4079 = vmatprep.mubr.msk.bf16.mxu1 %vm4233_vm0, %v6001_v34 }
 0x1d8   :  { %v5353_v16 = vpop.f32.mrb[120].mxu0  ;;  %v5355_v3 = vpop.f32.mrb[120].mxu1 }
 0x1d9   :  { %6066 = vst [vmem:[#allocation73_spill] sm:$0xff] %v5353_v16  ;;  %6067 = vst [vmem:[#allocation74_spill] sm:$0xff] %v5355_v3  ;;  %v3695_v46 = vpop.f32.mrb[121].mxu0  ;;  %v3829_v58 = vpop.f32.mrb[121].mxu1 }
 0x1da   :  { %v655_v0 = vpop.f32.mrb[122].mxu0  ;;  %v1242_v15 = vpop.f32.mrb[122].mxu1 }
 0x1db   :  { %v3696_v22 = vpop.f32.mrb[123].mxu0  ;;  %v3830_v6 = vpop.f32.mrb[123].mxu1  ;;  %v4223_v15 = vld [vmem:[%s5915_s2 + $0xd8] sm:$0xff]   ;;  %v6068_v0 = vmax.f32 %v4633_v1, %v4635_v2 }
 0x1dc   :  { %v4224_v6 = vld [vmem:[%s5916_s3 + $0xd8] sm:$0xff]   ;;  %v5380_v22 = vld [vmem:[%s5917_s5] ss:$0 sm:$0xff] }
 0x1dd   :  { %3946 = vmatmul.mubr.msk.bf16.gmra.mrb[228].mxu0 %vm277_vm3, %v4221_v27  ;;  %4080 = vmatmul.mubr.msk.bf16.gmra.mrb[228].mxu1 %vm277_vm3, %v4222_v40 }
 0x1de   :  { %3949 = vmatprep.mubr.msk.bf16.mxu0 %vm4233_vm0, %v6001_v34  ;;  %4083 = vmatprep.mubr.msk.bf16.mxu1 %vm4233_vm0, %v6001_v34 }
 0x1e0   :  { %v1647_v46 = vpop.f32.mrb[124].mxu0  ;;  %v2234_v58 = vpop.f32.mrb[124].mxu1 }
 0x1e1   :  { %v2480_v51 = vmax.f32 %v1647_v46, %v2234_v58  ;;  %v3843_v3 = vpop.f32.mrb[125].mxu0  ;;  %v3977_v16 = vpop.f32.mrb[125].mxu1 }
 0x1e2   :  { %v1650_v27 = vpop.f32.mrb[126].mxu0  ;;  %v2237_v40 = vpop.f32.mrb[126].mxu1 }
 0x1e3   :  { %v2541_v3 = vmax.f32 %v6068_v0, %v2480_v51  ;;  %v2481_v16 = vmax.f32 %v1650_v27, %v2237_v40  ;;  %v3844_v46 = vpop.f32.mrb[127].mxu0  ;;  %v3978_v58 = vpop.f32.mrb[127].mxu1 }
 0x1e5   :  { %v2609_v10 = vadd.f32 %v5380_v22, %v2541_v3  ;;  %v2542_v24 = vmax.f32 %v6069_v4, %v2481_v16  ;;  %3950 = vmatmul.mubr.msk.bf16.gmra.mrb[232].mxu0 %vm277_vm3, %v4223_v15  ;;  %4084 = vmatmul.mubr.msk.bf16.gmra.mrb[232].mxu1 %vm277_vm3, %v4224_v6  ;;  %v4225_v15 = vld [vmem:[%s5915_s2 + $0xe0] sm:$0xff]   ;;  %v6070_v16 = vmax.f32 %v4657_v13, %v4659_v14 }
 0x1e6   :  { %3953 = vmatprep.mubr.msk.bf16.mxu0 %vm4233_vm0, %v6001_v34  ;;  %4087 = vmatprep.mubr.msk.bf16.mxu1 %vm4233_vm0, %v6001_v34  ;;  %v4226_v6 = vld [vmem:[%s5916_s3 + $0xe0] sm:$0xff]  }
 0x1e7   :  { %v2670_v1 = vmax.f32 %v2609_v10, 0.0  ;;  %v2610_v2 = vadd.f32 %v5380_v22, %v2542_v24 }
 0x1e8   :  { %v1655_v51 = vpop.f32.mrb[128].mxu0  ;;  %v2242_v27 = vpop.f32.mrb[128].mxu1 }
 0x1e9   :  { %v3358_v40 = vpack.c.bf16 %v2670_v1, %v2670_v1  ;;  %v2671_v0 = vmax.f32 %v2610_v2, 0.0  ;;  %v2482_v8 = vmax.f32 %v1655_v51, %v2242_v27  ;;  %v3847_v9 = vpop.f32.mrb[129].mxu0  ;;  %v3981_v4 = vpop.f32.mrb[129].mxu1  ;;  %v6071_v27 = vmax.f32 %v4669_v20, %v4671_v21 }
 0x1ea   :  { %v1658_v3 = vpop.f32.mrb[130].mxu0  ;;  %v2245_v10 = vpop.f32.mrb[130].mxu1 }
 0x1eb   :  { %2977 = vst.msk [vmem:[%s5918_s6] sm:$0xf] %vm2976_vm4, %v3358_v40  ;;  %v3359_v24 = vpack.c.bf16 %v2671_v0, %v2671_v0  ;;  %v2543_v46 = vmax.f32 %v6070_v16, %v2482_v8  ;;  %v2483_v58 = vmax.f32 %v1658_v3, %v2245_v10  ;;  %v3848_v1 = vpop.f32.mrb[131].mxu0  ;;  %v3982_v2 = vpop.f32.mrb[131].mxu1 }
 0x1ed   :  { %2978 = vst.msk [vmem:[%s5918_s6 + $0x4] sm:$0xf] %vm2976_vm4, %v3359_v24  ;;  %v2611_v51 = vadd.f32 %v5380_v22, %v2543_v46  ;;  %v2544_v9 = vmax.f32 %v6071_v27, %v2483_v58  ;;  %3954 = vmatmul.mubr.msk.bf16.gmra.mrb[236].mxu0 %vm277_vm3, %v4225_v15  ;;  %4088 = vmatmul.mubr.msk.bf16.gmra.mrb[236].mxu1 %vm277_vm3, %v4226_v6  ;;  %v4227_v15 = vld [vmem:[%s5915_s2 + $0xe8] sm:$0xff]  }
 0x1ee   :  { %3957 = vmatprep.mubr.msk.bf16.mxu0 %vm4233_vm0, %v6001_v34  ;;  %4091 = vmatprep.mubr.msk.bf16.mxu1 %vm4233_vm0, %v6001_v34  ;;  %v4228_v6 = vld [vmem:[%s5916_s3 + $0xe8] sm:$0xff]   ;;  %v6072_v46 = vmax.f32 %v4681_v25, %v4683_v26 }
 0x1ef   :  { %v2672_v13 = vmax.f32 %v2611_v51, 0.0  ;;  %v2612_v14 = vadd.f32 %v5380_v22, %v2544_v9  ;;  %v6073_v9 = vmax.f32 %v4693_v32, %v4695_v33  ;;  %v4229_v32 = vld [vmem:[%s5915_s2 + $0xf0] ss:$0 sps:$4 sm:$0x33]  }
 0x1f0   :  { %v1663_v40 = vpop.f32.mrb[132].mxu0  ;;  %v2250_v0 = vpop.f32.mrb[132].mxu1 }
 0x1f1   :  { %v3360_v8 = vpack.c.bf16 %v2672_v13, %v2672_v13  ;;  %v2673_v4 = vmax.f32 %v2612_v14, 0.0  ;;  %v2484_v3 = vmax.f32 %v1663_v40, %v2250_v0  ;;  %v3851_v20 = vpop.f32.mrb[133].mxu0  ;;  %v3985_v21 = vpop.f32.mrb[133].mxu1 }
 0x1f2   :  { %v1666_v10 = vpop.f32.mrb[134].mxu0  ;;  %v2253_v24 = vpop.f32.mrb[134].mxu1  ;;  %v4230_v20 = vld [vmem:[%s5916_s3 + $0xf0] ss:$0 sps:$4 sm:$0x33]  }
 0x1f3   :  { %2979 = vst.msk [vmem:[%s5918_s6 + $0x8] sm:$0xf] %vm2976_vm4, %v3360_v8  ;;  %v3361_v16 = vpack.c.bf16 %v2673_v4, %v2673_v4  ;;  %v2545_v58 = vmax.f32 %v6072_v46, %v2484_v3  ;;  %v2485_v1 = vmax.f32 %v1666_v10, %v2253_v24  ;;  %v3852_v2 = vpop.f32.mrb[135].mxu0  ;;  %v3986_v51 = vpop.f32.mrb[135].mxu1 }
 0x1f5   :  { %2980 = vst.msk [vmem:[%s5918_s6 + $0xc] sm:$0xf] %vm2976_vm4, %v3361_v16  ;;  %v2613_v27 = vadd.f32 %v5380_v22, %v2545_v58  ;;  %v2546_v13 = vmax.f32 %v6073_v9, %v2485_v1  ;;  %3958 = vmatmul.mubr.msk.bf16.gmra.mrb[240].mxu0 %vm277_vm3, %v4227_v15  ;;  %4092 = vmatmul.mubr.msk.bf16.gmra.mrb[240].mxu1 %vm277_vm3, %v4228_v6 }
 0x1f6   :  { %3961 = vmatprep.mubr.msk.bf16.mxu0 %vm4233_vm0, %v6001_v34  ;;  %4095 = vmatprep.mubr.msk.bf16.mxu1 %vm4233_vm0, %v6001_v34  ;;  %v6074_v6 = vmax.f32 %v4705_v37, %v4707_v38  ;;  %v6075_v1 = vmax.f32 %v4717_v44, %v4719_v45  ;;  %v6076_v45 = vmax.f32 %v4729_v49, %v4731_v50 }
 0x1f7   :  { %v2674_v25 = vmax.f32 %v2613_v27, 0.0  ;;  %v2614_v26 = vadd.f32 %v5380_v22, %v2546_v13 }
 0x1f8   :  { %v1671_v14 = vpop.f32.mrb[136].mxu0  ;;  %v2258_v40 = vpop.f32.mrb[136].mxu1 }
 0x1f9   :  { %v3362_v33 = vpack.c.bf16 %v2674_v25, %v2674_v25  ;;  %v2675_v0 = vmax.f32 %v2614_v26, 0.0  ;;  %v2486_v8 = vmax.f32 %v1671_v14, %v2258_v40  ;;  %v3855_v4 = vpop.f32.mrb[137].mxu0  ;;  %v3989_v3 = vpop.f32.mrb[137].mxu1 }
 0x1fa   :  { %v1674_v21 = vpop.f32.mrb[138].mxu0  ;;  %v2261_v34 = vpop.f32.mrb[138].mxu1 }
 0x1fb   :  { %2981 = vst.msk [vmem:[%s5918_s6 + $0x10] sm:$0xf] %vm2976_vm4, %v3362_v33  ;;  %v3363_v15 = vpack.c.bf16 %v2675_v0, %v2675_v0  ;;  %v2547_v10 = vmax.f32 %v6074_v6, %v2486_v8  ;;  %v2487_v24 = vmax.f32 %v1674_v21, %v2261_v34  ;;  %v3856_v16 = vpop.f32.mrb[139].mxu0  ;;  %v3990_v46 = vpop.f32.mrb[139].mxu1 }
 0x1fd   :  { %2982 = vst.msk [vmem:[%s5918_s6 + $0x14] sm:$0xf] %vm2976_vm4, %v3363_v15  ;;  %v2615_v58 = vadd.f32 %v5380_v22, %v2547_v10  ;;  %v2548_v2 = vmax.f32 %v6075_v1, %v2487_v24  ;;  %3962 = vmatmul.mubr.msk.bf16.gmra.mrb[244].mxu0 %vm277_vm3, %v4229_v32  ;;  %4096 = vmatmul.mubr.msk.bf16.gmra.mrb[244].mxu1 %vm277_vm3, %v4230_v20 }
 0x1fe   :  { %v6077_v20 = vmax.f32 %v4741_v56, %v4743_v57  ;;  %v6078_v56 = vmax.f32 %v4753_v61, %v4755_v62 }
 0x1ff   :  { %v2676_v37 = vmax.f32 %v2615_v58, 0.0  ;;  %v2616_v38 = vadd.f32 %v5380_v22, %v2548_v2 }
 0x200   :  { %v1679_v51 = vpop.f32.mrb[140].mxu0  ;;  %v2266_v27 = vpop.f32.mrb[140].mxu1 }
 0x201   :  { %v3364_v9 = vpack.c.bf16 %v2676_v37, %v2676_v37  ;;  %v2677_v13 = vmax.f32 %v2616_v38, 0.0  ;;  %v2488_v25 = vmax.f32 %v1679_v51, %v2266_v27  ;;  %v3859_v26 = vpop.f32.mrb[141].mxu0  ;;  %v3993_v14 = vpop.f32.mrb[141].mxu1 }
 0x202   :  { %v1682_v40 = vpop.f32.mrb[142].mxu0  ;;  %v2269_v33 = vpop.f32.mrb[142].mxu1 }
 0x203   :  { %2983 = vst.msk [vmem:[%s5918_s6 + $0x18] sm:$0xf] %vm2976_vm4, %v3364_v9  ;;  %v3365_v44 = vpack.c.bf16 %v2677_v13, %v2677_v13  ;;  %v2549_v32 = vmax.f32 %v6076_v45, %v2488_v25  ;;  %v2489_v0 = vmax.f32 %v1682_v40, %v2269_v33  ;;  %v3860_v8 = vpop.f32.mrb[143].mxu0  ;;  %v3994_v4 = vpop.f32.mrb[143].mxu1  ;;  %v6079_v9 = vmax.f32 %v4765_v11, %v4767_v12 }
 0x204   :  { %v6080_v11 = vmax.f32 %v4777_v19, %v4779_v23 }
 0x205   :  { %2984 = vst.msk [vmem:[%s5918_s6 + $0x1c] sm:$0xf] %vm2976_vm4, %v3365_v44  ;;  %v2617_v3 = vadd.f32 %v5380_v22, %v2549_v32  ;;  %v2550_v21 = vmax.f32 %v6077_v20, %v2489_v0 }
 0x207   :  { %v2678_v34 = vmax.f32 %v2617_v3, 0.0  ;;  %v2618_v15 = vadd.f32 %v5380_v22, %v2550_v21 }
 0x208   :  { %v1687_v6 = vpop.f32.mrb[144].mxu0  ;;  %v2274_v49 = vpop.f32.mrb[144].mxu1 }
 0x209   :  { %v3366_v50 = vpack.c.bf16 %v2678_v34, %v2678_v34  ;;  %v2679_v10 = vmax.f32 %v2618_v15, 0.0  ;;  %v2490_v24 = vmax.f32 %v1687_v6, %v2274_v49  ;;  %v3863_v16 = vpop.f32.mrb[145].mxu0  ;;  %v3997_v46 = vpop.f32.mrb[145].mxu1  ;;  %v6081_v34 = vmax.f32 %v4789_v35, %v4791_v36 }
 0x20a   :  { %v1690_v58 = vpop.f32.mrb[146].mxu0  ;;  %v2277_v1 = vpop.f32.mrb[146].mxu1  ;;  %v6082_v35 = vmax.f32 %v4801_v43, %v4803_v47 }
 0x20b   :  { %2985 = vst.msk [vmem:[%s5918_s6 + $0x20] sm:$0xf] %vm2976_vm4, %v3366_v50  ;;  %v3367_v2 = vpack.c.bf16 %v2679_v10, %v2679_v10  ;;  %v2551_v57 = vmax.f32 %v6078_v56, %v2490_v24  ;;  %v2491_v37 = vmax.f32 %v1690_v58, %v2277_v1  ;;  %v3864_v38 = vpop.f32.mrb[147].mxu0  ;;  %v3998_v51 = vpop.f32.mrb[147].mxu1 }
 0x20c   :  { %v6083_v51 = vmax.f32 %v4813_v59, %v4815_v60  ;;  %v6084_v59 = vmax.f32 %v4825_v7, %v4827_v17 }
 0x20d   :  { %2986 = vst.msk [vmem:[%s5918_s6 + $0x24] sm:$0xf] %vm2976_vm4, %v3367_v2  ;;  %v2619_v27 = vadd.f32 %v5380_v22, %v2551_v57  ;;  %v2552_v13 = vmax.f32 %v6079_v9, %v2491_v37 }
 0x20f   :  { %v2680_v25 = vmax.f32 %v2619_v27, 0.0  ;;  %v2620_v26 = vadd.f32 %v5380_v22, %v2552_v13 }
 0x210   :  { %v1695_v14 = vpop.f32.mrb[148].mxu0  ;;  %v2282_v61 = vpop.f32.mrb[148].mxu1 }
 0x211   :  { %v3368_v62 = vpack.c.bf16 %v2680_v25, %v2680_v25  ;;  %v2681_v40 = vmax.f32 %v2620_v26, 0.0  ;;  %v2492_v33 = vmax.f32 %v1695_v14, %v2282_v61  ;;  %v3867_v44 = vpop.f32.mrb[149].mxu0  ;;  %v4001_v45 = vpop.f32.mrb[149].mxu1 }
 0x212   :  { %v1698_v32 = vpop.f32.mrb[150].mxu0  ;;  %v2285_v0 = vpop.f32.mrb[150].mxu1 }
 0x213   :  { %2987 = vst.msk [vmem:[%s5918_s6 + $0x28] sm:$0xf] %vm2976_vm4, %v3368_v62  ;;  %v3369_v8 = vpack.c.bf16 %v2681_v40, %v2681_v40  ;;  %v2553_v12 = vmax.f32 %v6080_v11, %v2492_v33  ;;  %v2493_v4 = vmax.f32 %v1698_v32, %v2285_v0  ;;  %v3868_v3 = vpop.f32.mrb[151].mxu0  ;;  %v4002_v20 = vpop.f32.mrb[151].mxu1  ;;  %v6085_v11 = vmax.f32 %v4837_v41, %v4839_v42 }
 0x214   :  { %v6086_v41 = vmax.f32 %v4849_v55, %v4851_v5 }
 0x215   :  { %2988 = vst.msk [vmem:[%s5918_s6 + $0x2c] sm:$0xf] %vm2976_vm4, %v3369_v8  ;;  %v2621_v21 = vadd.f32 %v5380_v22, %v2553_v12  ;;  %v2554_v15 = vmax.f32 %v6081_v34, %v2493_v4 }
 0x217   :  { %v2682_v6 = vmax.f32 %v2621_v21, 0.0  ;;  %v2622_v49 = vadd.f32 %v5380_v22, %v2554_v15 }
 0x218   :  { %v1703_v50 = vpop.f32.mrb[152].mxu0  ;;  %v2290_v19 = vpop.f32.mrb[152].mxu1 }
 0x219   :  { %v3370_v23 = vpack.c.bf16 %v2682_v6, %v2682_v6  ;;  %v2683_v10 = vmax.f32 %v2622_v49, 0.0  ;;  %v2494_v24 = vmax.f32 %v1703_v50, %v2290_v19  ;;  %v3871_v16 = vpop.f32.mrb[153].mxu0  ;;  %v4005_v46 = vpop.f32.mrb[153].mxu1 }
 0x21a   :  { %v1706_v58 = vpop.f32.mrb[154].mxu0  ;;  %v2293_v1 = vpop.f32.mrb[154].mxu1  ;;  %v6087_v46 = vmax.f32 %v4861_v53, %v4863_v54  ;;  %v6088_v53 = vmax.f32 %v4873_v28, %v4875_v29 }
 0x21b   :  { %2989 = vst.msk [vmem:[%s5918_s6 + $0x30] sm:$0xf] %vm2976_vm4, %v3370_v23  ;;  %v3371_v2 = vpack.c.bf16 %v2683_v10, %v2683_v10  ;;  %v2555_v36 = vmax.f32 %v6082_v35, %v2494_v24  ;;  %v2495_v56 = vmax.f32 %v1706_v58, %v2293_v1  ;;  %v3872_v57 = vpop.f32.mrb[155].mxu0  ;;  %v4006_v37 = vpop.f32.mrb[155].mxu1 }
 0x21d   :  { %2990 = vst.msk [vmem:[%s5918_s6 + $0x34] sm:$0xf] %vm2976_vm4, %v3371_v2  ;;  %v2623_v38 = vadd.f32 %v5380_v22, %v2555_v36  ;;  %v2556_v27 = vmax.f32 %v6083_v51, %v2495_v56 }
 0x21f   :  { %v2684_v9 = vmax.f32 %v2623_v38, 0.0  ;;  %v2624_v13 = vadd.f32 %v5380_v22, %v2556_v27 }
 0x220   :  { %v1711_v25 = vpop.f32.mrb[156].mxu0  ;;  %v2298_v43 = vpop.f32.mrb[156].mxu1 }
 0x221   :  { %v3372_v47 = vpack.c.bf16 %v2684_v9, %v2684_v9  ;;  %v2685_v26 = vmax.f32 %v2624_v13, 0.0  ;;  %v2496_v14 = vmax.f32 %v1711_v25, %v2298_v43  ;;  %v3875_v61 = vpop.f32.mrb[157].mxu0  ;;  %v4009_v62 = vpop.f32.mrb[157].mxu1 }
 0x222   :  { %v1714_v40 = vpop.f32.mrb[158].mxu0  ;;  %v2301_v33 = vpop.f32.mrb[158].mxu1 }
 0x223   :  { %2991 = vst.msk [vmem:[%s5918_s6 + $0x38] sm:$0xf] %vm2976_vm4, %v3372_v47  ;;  %v3373_v44 = vpack.c.bf16 %v2685_v26, %v2685_v26  ;;  %v2557_v60 = vmax.f32 %v6084_v59, %v2496_v14  ;;  %v2497_v45 = vmax.f32 %v1714_v40, %v2301_v33  ;;  %v3876_v32 = vpop.f32.mrb[159].mxu0  ;;  %v4010_v0 = vpop.f32.mrb[159].mxu1  ;;  %v6089_v47 = vmax.f32 %v4885_v31, %v4887_v48 }
 0x224   :  { %v6090_v48 = vmax.f32 %v4897_v52, %v4899_v18 }
 0x225   :  { %2992 = vst.msk [vmem:[%s5918_s6 + $0x3c] sm:$0xf] %vm2976_vm4, %v3373_v44  ;;  %v2625_v8 = vadd.f32 %v5380_v22, %v2557_v60  ;;  %v2558_v12 = vmax.f32 %v6085_v11, %v2497_v45 }
 0x227   :  { %v2686_v4 = vmax.f32 %v2625_v8, 0.0  ;;  %v2626_v3 = vadd.f32 %v5380_v22, %v2558_v12 }
 0x228   :  { %v1719_v20 = vpop.f32.mrb[160].mxu0  ;;  %v2306_v7 = vpop.f32.mrb[160].mxu1 }
 0x229   :  { %v3374_v17 = vpack.c.bf16 %v2686_v4, %v2686_v4  ;;  %v2687_v21 = vmax.f32 %v2626_v3, 0.0  ;;  %v2498_v34 = vmax.f32 %v1719_v20, %v2306_v7  ;;  %v3879_v15 = vpop.f32.mrb[161].mxu0  ;;  %v4013_v6 = vpop.f32.mrb[161].mxu1  ;;  %v6091_v4 = vmax.f32 %v4909_v30, %v4911_v63  ;;  %v6092_v63 = vld [vmem:[#allocation2_spill] sm:$0xff] }
 0x22a   :  { %v1722_v49 = vpop.f32.mrb[162].mxu0  ;;  %v2309_v50 = vpop.f32.mrb[162].mxu1  ;;  %v6093_v30 = vmax.f32 %v4921_v39, %v6092_v63 }
 0x22b   :  { %2993 = vst.msk [vmem:[%s5918_s6 + $0x40] sm:$0xf] %vm2976_vm4, %v3374_v17  ;;  %v3375_v19 = vpack.c.bf16 %v2687_v21, %v2687_v21  ;;  %v2559_v42 = vmax.f32 %v6086_v41, %v2498_v34  ;;  %v2499_v23 = vmax.f32 %v1722_v49, %v2309_v50  ;;  %v3880_v10 = vpop.f32.mrb[163].mxu0  ;;  %v4014_v24 = vpop.f32.mrb[163].mxu1 }
 0x22d   :  { %2994 = vst.msk [vmem:[%s5918_s6 + $0x44] sm:$0xf] %vm2976_vm4, %v3375_v19  ;;  %v2627_v16 = vadd.f32 %v5380_v22, %v2559_v42  ;;  %v2560_v58 = vmax.f32 %v6087_v46, %v2499_v23  ;;  %v6095_v46 = vld [vmem:[#allocation4_spill] sm:$0xff] }
 0x22f   :  { %v2688_v1 = vmax.f32 %v2627_v16, 0.0  ;;  %v2628_v2 = vadd.f32 %v5380_v22, %v2560_v58  ;;  %v6094_v16 = vld [vmem:[#allocation3_spill] sm:$0xff] }
 0x230   :  { %v1727_v35 = vpop.f32.mrb[164].mxu0  ;;  %v2314_v55 = vpop.f32.mrb[164].mxu1  ;;  %v6096_v58 = vmax.f32 %v6094_v16, %v6095_v46  ;;  %v6109_v46 = vld [vmem:[#allocation13_spill] sm:$0xff] }
 0x231   :  { %v3376_v5 = vpack.c.bf16 %v2688_v1, %v2688_v1  ;;  %v2689_v36 = vmax.f32 %v2628_v2, 0.0  ;;  %v2500_v56 = vmax.f32 %v1727_v35, %v2314_v55  ;;  %v3883_v57 = vpop.f32.mrb[165].mxu0  ;;  %v4017_v37 = vpop.f32.mrb[165].mxu1 }
 0x232   :  { %v1730_v38 = vpop.f32.mrb[166].mxu0  ;;  %v2317_v51 = vpop.f32.mrb[166].mxu1 }
 0x233   :  { %2995 = vst.msk [vmem:[%s5918_s6 + $0x48] sm:$0xf] %vm2976_vm4, %v3376_v5  ;;  %v3377_v27 = vpack.c.bf16 %v2689_v36, %v2689_v36  ;;  %v2561_v54 = vmax.f32 %v6088_v53, %v2500_v56  ;;  %v2501_v9 = vmax.f32 %v1730_v38, %v2317_v51  ;;  %v3884_v13 = vpop.f32.mrb[167].mxu0  ;;  %v4018_v25 = vpop.f32.mrb[167].mxu1  ;;  %v6097_v53 = vld [vmem:[#allocation5_spill] sm:$0xff] }
 0x235   :  { %2996 = vst.msk [vmem:[%s5918_s6 + $0x4c] sm:$0xf] %vm2976_vm4, %v3377_v27  ;;  %v2629_v43 = vadd.f32 %v5380_v22, %v2561_v54  ;;  %v2562_v26 = vmax.f32 %v6089_v47, %v2501_v9  ;;  %v6098_v54 = vld [vmem:[#allocation6_spill] sm:$0xff] }
 0x236   :  { %v6099_v9 = vmax.f32 %v6097_v53, %v6098_v54 }
 0x237   :  { %v2690_v14 = vmax.f32 %v2629_v43, 0.0  ;;  %v2630_v61 = vadd.f32 %v5380_v22, %v2562_v26 }
 0x238   :  { %v1735_v62 = vpop.f32.mrb[168].mxu0  ;;  %v2322_v28 = vpop.f32.mrb[168].mxu1 }
 0x239   :  { %v3378_v29 = vpack.c.bf16 %v2690_v14, %v2690_v14  ;;  %v2691_v40 = vmax.f32 %v2630_v61, 0.0  ;;  %v2502_v33 = vmax.f32 %v1735_v62, %v2322_v28  ;;  %v3887_v44 = vpop.f32.mrb[169].mxu0  ;;  %v4021_v59 = vpop.f32.mrb[169].mxu1  ;;  %v6100_v14 = vld [vmem:[#allocation7_spill] sm:$0xff]  ;;  %v6101_v61 = vld [vmem:[#allocation8_spill] sm:$0xff] }
 0x23a   :  { %v1738_v60 = vpop.f32.mrb[170].mxu0  ;;  %v2325_v45 = vpop.f32.mrb[170].mxu1  ;;  %v6102_v62 = vmax.f32 %v6100_v14, %v6101_v61  ;;  %v6115_v61 = vld [vmem:[#allocation17_spill] sm:$0xff] }
 0x23b   :  { %2997 = vst.msk [vmem:[%s5918_s6 + $0x50] sm:$0xf] %vm2976_vm4, %v3378_v29  ;;  %v3379_v32 = vpack.c.bf16 %v2691_v40, %v2691_v40  ;;  %v2563_v31 = vmax.f32 %v6090_v48, %v2502_v33  ;;  %v2503_v0 = vmax.f32 %v1738_v60, %v2325_v45  ;;  %v3888_v8 = vpop.f32.mrb[171].mxu0  ;;  %v4022_v11 = vpop.f32.mrb[171].mxu1 }
 0x23c   :  { %v6103_v11 = vld [vmem:[#allocation9_spill] sm:$0xff] }
 0x23d   :  { %2998 = vst.msk [vmem:[%s5918_s6 + $0x54] sm:$0xf] %vm2976_vm4, %v3379_v32  ;;  %v2631_v12 = vadd.f32 %v5380_v22, %v2563_v31  ;;  %v2564_v3 = vmax.f32 %v6091_v4, %v2503_v0 }
 0x23f   :  { %v2692_v20 = vmax.f32 %v2631_v12, 0.0  ;;  %v2632_v7 = vadd.f32 %v5380_v22, %v2564_v3  ;;  %v6104_v12 = vld [vmem:[#allocation10_spill] sm:$0xff] }
 0x240   :  { %v1743_v17 = vpop.f32.mrb[172].mxu0  ;;  %v2330_v52 = vpop.f32.mrb[172].mxu1  ;;  %v6105_v4 = vmax.f32 %v6103_v11, %v6104_v12 }
 0x241   :  { %v3380_v18 = vpack.c.bf16 %v2692_v20, %v2692_v20  ;;  %v2693_v21 = vmax.f32 %v2632_v7, 0.0  ;;  %v2504_v34 = vmax.f32 %v1743_v17, %v2330_v52  ;;  %v3891_v15 = vpop.f32.mrb[173].mxu0  ;;  %v4025_v6 = vpop.f32.mrb[173].mxu1 }
 0x242   :  { %v1746_v49 = vpop.f32.mrb[174].mxu0  ;;  %v2333_v50 = vpop.f32.mrb[174].mxu1 }
 0x243   :  { %2999 = vst.msk [vmem:[%s5918_s6 + $0x58] sm:$0xf] %vm2976_vm4, %v3380_v18  ;;  %v3381_v19 = vpack.c.bf16 %v2693_v21, %v2693_v21  ;;  %v2565_v41 = vmax.f32 %v6093_v30, %v2504_v34  ;;  %v2505_v42 = vmax.f32 %v1746_v49, %v2333_v50  ;;  %v3892_v23 = vpop.f32.mrb[175].mxu0  ;;  %v4026_v10 = vpop.f32.mrb[175].mxu1  ;;  %v6106_v18 = vld [vmem:[#allocation11_spill] sm:$0xff]  ;;  %v6107_v21 = vld [vmem:[#allocation12_spill] sm:$0xff] }
 0x244   :  { %v6108_v34 = vmax.f32 %v6106_v18, %v6107_v21  ;;  %v6121_v21 = vld [vmem:[#allocation21_spill] sm:$0xff] }
 0x245   :  { %3000 = vst.msk [vmem:[%s5918_s6 + $0x5c] sm:$0xf] %vm2976_vm4, %v3381_v19  ;;  %v2633_v24 = vadd.f32 %v5380_v22, %v2565_v41  ;;  %v2566_v1 = vmax.f32 %v6096_v58, %v2505_v42  ;;  %v6110_v58 = vld [vmem:[#allocation14_spill] sm:$0xff] }
 0x247   :  { %v2694_v2 = vmax.f32 %v2633_v24, 0.0  ;;  %v2634_v35 = vadd.f32 %v5380_v22, %v2566_v1  ;;  %v6111_v1 = vmax.f32 %v6109_v46, %v6110_v58 }
 0x248   :  { %v1751_v55 = vpop.f32.mrb[176].mxu0  ;;  %v2338_v39 = vpop.f32.mrb[176].mxu1 }
 0x249   :  { %v3382_v5 = vpack.c.bf16 %v2694_v2, %v2694_v2  ;;  %v2695_v36 = vmax.f32 %v2634_v35, 0.0  ;;  %v2506_v56 = vmax.f32 %v1751_v55, %v2338_v39  ;;  %v3895_v57 = vpop.f32.mrb[177].mxu0  ;;  %v4029_v37 = vpop.f32.mrb[177].mxu1 }
 0x24a   :  { %v1754_v38 = vpop.f32.mrb[178].mxu0  ;;  %v2341_v51 = vpop.f32.mrb[178].mxu1 }
 0x24b   :  { %3001 = vst.msk [vmem:[%s5918_s6 + $0x60] sm:$0xf] %vm2976_vm4, %v3382_v5  ;;  %v3383_v27 = vpack.c.bf16 %v2695_v36, %v2695_v36  ;;  %v2567_v13 = vmax.f32 %v6099_v9, %v2506_v56  ;;  %v2507_v25 = vmax.f32 %v1754_v38, %v2341_v51  ;;  %v3896_v43 = vpop.f32.mrb[179].mxu0  ;;  %v4030_v47 = vpop.f32.mrb[179].mxu1  ;;  %v6112_v36 = vld [vmem:[#allocation15_spill] sm:$0xff]  ;;  %v6113_v56 = vld [vmem:[#allocation16_spill] sm:$0xff] }
 0x24c   :  { %v6114_v57 = vmax.f32 %v6112_v36, %v6113_v56  ;;  %v6127_v56 = vld [vmem:[#allocation25_spill] sm:$0xff] }
 0x24d   :  { %3002 = vst.msk [vmem:[%s5918_s6 + $0x64] sm:$0xf] %vm2976_vm4, %v3383_v27  ;;  %v2635_v26 = vadd.f32 %v5380_v22, %v2567_v13  ;;  %v2568_v28 = vmax.f32 %v6102_v62, %v2507_v25  ;;  %v6116_v62 = vld [vmem:[#allocation18_spill] sm:$0xff] }
 0x24f   :  { %v2696_v29 = vmax.f32 %v2635_v26, 0.0  ;;  %v2636_v40 = vadd.f32 %v5380_v22, %v2568_v28  ;;  %v6117_v28 = vmax.f32 %v6115_v61, %v6116_v62 }
 0x250   :  { %v1759_v33 = vpop.f32.mrb[180].mxu0  ;;  %v2346_v44 = vpop.f32.mrb[180].mxu1 }
 0x251   :  { %v3384_v59 = vpack.c.bf16 %v2696_v29, %v2696_v29  ;;  %v2697_v60 = vmax.f32 %v2636_v40, 0.0  ;;  %v2508_v45 = vmax.f32 %v1759_v33, %v2346_v44  ;;  %v3899_v32 = vpop.f32.mrb[181].mxu0  ;;  %v4033_v48 = vpop.f32.mrb[181].mxu1 }
 0x252   :  { %v1762_v31 = vpop.f32.mrb[182].mxu0  ;;  %v2349_v0 = vpop.f32.mrb[182].mxu1 }
 0x253   :  { %3003 = vst.msk [vmem:[%s5918_s6 + $0x68] sm:$0xf] %vm2976_vm4, %v3384_v59  ;;  %v3385_v8 = vpack.c.bf16 %v2697_v60, %v2697_v60  ;;  %v2569_v3 = vmax.f32 %v6105_v4, %v2508_v45  ;;  %v2509_v20 = vmax.f32 %v1762_v31, %v2349_v0  ;;  %v3900_v7 = vpop.f32.mrb[183].mxu0  ;;  %v4034_v17 = vpop.f32.mrb[183].mxu1  ;;  %v6118_v60 = vld [vmem:[#allocation19_spill] sm:$0xff]  ;;  %v6119_v45 = vld [vmem:[#allocation20_spill] sm:$0xff] }
 0x254   :  { %v6120_v32 = vmax.f32 %v6118_v60, %v6119_v45  ;;  %v6133_v45 = vld [vmem:[#allocation29_spill] sm:$0xff] }
 0x255   :  { %3004 = vst.msk [vmem:[%s5918_s6 + $0x6c] sm:$0xf] %vm2976_vm4, %v3385_v8  ;;  %v2637_v52 = vadd.f32 %v5380_v22, %v2569_v3  ;;  %v2570_v15 = vmax.f32 %v6108_v34, %v2509_v20  ;;  %v6122_v34 = vld [vmem:[#allocation22_spill] sm:$0xff] }
 0x257   :  { %v2698_v6 = vmax.f32 %v2637_v52, 0.0  ;;  %v2638_v49 = vadd.f32 %v5380_v22, %v2570_v15  ;;  %v6123_v15 = vmax.f32 %v6121_v21, %v6122_v34 }
 0x258   :  { %v1767_v50 = vpop.f32.mrb[184].mxu0  ;;  %v2354_v19 = vpop.f32.mrb[184].mxu1 }
 0x259   :  { %v3386_v63 = vpack.c.bf16 %v2698_v6, %v2698_v6  ;;  %v2699_v30 = vmax.f32 %v2638_v49, 0.0  ;;  %v2510_v41 = vmax.f32 %v1767_v50, %v2354_v19  ;;  %v3903_v42 = vpop.f32.mrb[185].mxu0  ;;  %v4037_v23 = vpop.f32.mrb[185].mxu1 }
 0x25a   :  { %v1770_v10 = vpop.f32.mrb[186].mxu0  ;;  %v2357_v24 = vpop.f32.mrb[186].mxu1 }
 0x25b   :  { %3005 = vst.msk [vmem:[%s5918_s6 + $0x70] sm:$0xf] %vm2976_vm4, %v3386_v63  ;;  %v3387_v16 = vpack.c.bf16 %v2699_v30, %v2699_v30  ;;  %v2571_v2 = vmax.f32 %v6111_v1, %v2510_v41  ;;  %v2511_v35 = vmax.f32 %v1770_v10, %v2357_v24  ;;  %v3904_v55 = vpop.f32.mrb[187].mxu0  ;;  %v4038_v39 = vpop.f32.mrb[187].mxu1  ;;  %v6124_v30 = vld [vmem:[#allocation23_spill] sm:$0xff]  ;;  %v6125_v41 = vld [vmem:[#allocation24_spill] sm:$0xff] }
 0x25c   :  { %v6126_v42 = vmax.f32 %v6124_v30, %v6125_v41  ;;  %v6139_v41 = vld [vmem:[#allocation33_spill] sm:$0xff] }
 0x25d   :  { %3006 = vst.msk [vmem:[%s5918_s6 + $0x74] sm:$0xf] %vm2976_vm4, %v3387_v16  ;;  %v2639_v5 = vadd.f32 %v5380_v22, %v2571_v2  ;;  %v2572_v37 = vmax.f32 %v6114_v57, %v2511_v35  ;;  %v6128_v57 = vld [vmem:[#allocation26_spill] sm:$0xff] }
 0x25f   :  { %v2700_v38 = vmax.f32 %v2639_v5, 0.0  ;;  %v2640_v51 = vadd.f32 %v5380_v22, %v2572_v37  ;;  %v6129_v37 = vmax.f32 %v6127_v56, %v6128_v57 }
 0x260   :  { %v1775_v27 = vpop.f32.mrb[188].mxu0  ;;  %v2362_v53 = vpop.f32.mrb[188].mxu1 }
 0x261   :  { %v3388_v54 = vpack.c.bf16 %v2700_v38, %v2700_v38  ;;  %v2701_v9 = vmax.f32 %v2640_v51, 0.0  ;;  %v2512_v13 = vmax.f32 %v1775_v27, %v2362_v53  ;;  %v3907_v25 = vpop.f32.mrb[189].mxu0  ;;  %v4041_v43 = vpop.f32.mrb[189].mxu1 }
 0x262   :  { %v1778_v47 = vpop.f32.mrb[190].mxu0  ;;  %v2365_v26 = vpop.f32.mrb[190].mxu1 }
 0x263   :  { %3007 = vst.msk [vmem:[%s5918_s6 + $0x78] sm:$0xf] %vm2976_vm4, %v3388_v54  ;;  %v3389_v14 = vpack.c.bf16 %v2701_v9, %v2701_v9  ;;  %v2573_v29 = vmax.f32 %v6117_v28, %v2512_v13  ;;  %v2513_v40 = vmax.f32 %v1778_v47, %v2365_v26  ;;  %v3908_v33 = vpop.f32.mrb[191].mxu0  ;;  %v4042_v44 = vpop.f32.mrb[191].mxu1  ;;  %v6130_v9 = vld [vmem:[#allocation27_spill] sm:$0xff]  ;;  %v6131_v13 = vld [vmem:[#allocation28_spill] sm:$0xff] }
 0x264   :  { %v6132_v25 = vmax.f32 %v6130_v9, %v6131_v13  ;;  %v6145_v13 = vld [vmem:[#allocation37_spill] sm:$0xff] }
 0x265   :  { %3008 = vst.msk [vmem:[%s5918_s6 + $0x7c] sm:$0xf] %vm2976_vm4, %v3389_v14  ;;  %v2641_v59 = vadd.f32 %v5380_v22, %v2573_v29  ;;  %v2574_v48 = vmax.f32 %v6120_v32, %v2513_v40  ;;  %v6134_v32 = vld [vmem:[#allocation30_spill] sm:$0xff] }
 0x267   :  { %v2702_v31 = vmax.f32 %v2641_v59, 0.0  ;;  %v2642_v0 = vadd.f32 %v5380_v22, %v2574_v48  ;;  %v6135_v48 = vmax.f32 %v6133_v45, %v6134_v32 }
 0x268   :  { %v1783_v8 = vpop.f32.mrb[192].mxu0  ;;  %v2370_v11 = vpop.f32.mrb[192].mxu1 }
 0x269   :  { %v3390_v12 = vpack.c.bf16 %v2702_v31, %v2702_v31  ;;  %v2703_v4 = vmax.f32 %v2642_v0, 0.0  ;;  %v2514_v3 = vmax.f32 %v1783_v8, %v2370_v11  ;;  %v3911_v20 = vpop.f32.mrb[193].mxu0  ;;  %v4045_v7 = vpop.f32.mrb[193].mxu1 }
 0x26a   :  { %v1786_v17 = vpop.f32.mrb[194].mxu0  ;;  %v2373_v52 = vpop.f32.mrb[194].mxu1 }
 0x26b   :  { %3009 = vst.msk [vmem:[%s5918_s6 + $0x80] sm:$0xf] %vm2976_vm4, %v3390_v12  ;;  %v3391_v18 = vpack.c.bf16 %v2703_v4, %v2703_v4  ;;  %v2575_v6 = vmax.f32 %v6123_v15, %v2514_v3  ;;  %v2515_v49 = vmax.f32 %v1786_v17, %v2373_v52  ;;  %v3912_v50 = vpop.f32.mrb[195].mxu0  ;;  %v4046_v19 = vpop.f32.mrb[195].mxu1  ;;  %v6136_v4 = vld [vmem:[#allocation31_spill] sm:$0xff]  ;;  %v6137_v3 = vld [vmem:[#allocation32_spill] sm:$0xff] }
 0x26c   :  { %v6138_v20 = vmax.f32 %v6136_v4, %v6137_v3  ;;  %v6151_v3 = vld [vmem:[#allocation41_spill] sm:$0xff] }
 0x26d   :  { %3010 = vst.msk [vmem:[%s5918_s6 + $0x84] sm:$0xf] %vm2976_vm4, %v3391_v18  ;;  %v2643_v63 = vadd.f32 %v5380_v22, %v2575_v6  ;;  %v2576_v23 = vmax.f32 %v6126_v42, %v2515_v49  ;;  %v6140_v42 = vld [vmem:[#allocation34_spill] sm:$0xff] }
 0x26f   :  { %v2704_v10 = vmax.f32 %v2643_v63, 0.0  ;;  %v2644_v24 = vadd.f32 %v5380_v22, %v2576_v23  ;;  %v6141_v23 = vmax.f32 %v6139_v41, %v6140_v42 }
 0x270   :  { %v1791_v16 = vpop.f32.mrb[196].mxu0  ;;  %v2378_v46 = vpop.f32.mrb[196].mxu1 }
 0x271   :  { %v3392_v58 = vpack.c.bf16 %v2704_v10, %v2704_v10  ;;  %v2705_v1 = vmax.f32 %v2644_v24, 0.0  ;;  %v2516_v2 = vmax.f32 %v1791_v16, %v2378_v46  ;;  %v3915_v35 = vpop.f32.mrb[197].mxu0  ;;  %v4049_v55 = vpop.f32.mrb[197].mxu1 }
 0x272   :  { %v1794_v39 = vpop.f32.mrb[198].mxu0  ;;  %v2381_v5 = vpop.f32.mrb[198].mxu1 }
 0x273   :  { %3011 = vst.msk [vmem:[%s5918_s6 + $0x88] sm:$0xf] %vm2976_vm4, %v3392_v58  ;;  %v3393_v36 = vpack.c.bf16 %v2705_v1, %v2705_v1  ;;  %v2577_v38 = vmax.f32 %v6129_v37, %v2516_v2  ;;  %v2517_v51 = vmax.f32 %v1794_v39, %v2381_v5  ;;  %v3916_v27 = vpop.f32.mrb[199].mxu0  ;;  %v4050_v53 = vpop.f32.mrb[199].mxu1  ;;  %v6142_v1 = vld [vmem:[#allocation35_spill] sm:$0xff]  ;;  %v6143_v2 = vld [vmem:[#allocation36_spill] sm:$0xff] }
 0x274   :  { %v6144_v35 = vmax.f32 %v6142_v1, %v6143_v2  ;;  %v6157_v2 = vld [vmem:[#allocation45_spill] sm:$0xff] }
 0x275   :  { %3012 = vst.msk [vmem:[%s5918_s6 + $0x8c] sm:$0xf] %vm2976_vm4, %v3393_v36  ;;  %v2645_v54 = vadd.f32 %v5380_v22, %v2577_v38  ;;  %v2578_v43 = vmax.f32 %v6132_v25, %v2517_v51  ;;  %v6146_v25 = vld [vmem:[#allocation38_spill] sm:$0xff] }
 0x277   :  { %v2706_v47 = vmax.f32 %v2645_v54, 0.0  ;;  %v2646_v26 = vadd.f32 %v5380_v22, %v2578_v43  ;;  %v6147_v43 = vmax.f32 %v6145_v13, %v6146_v25 }
 0x278   :  { %v1799_v14 = vpop.f32.mrb[200].mxu0  ;;  %v2386_v61 = vpop.f32.mrb[200].mxu1 }
 0x279   :  { %v3394_v62 = vpack.c.bf16 %v2706_v47, %v2706_v47  ;;  %v2707_v28 = vmax.f32 %v2646_v26, 0.0  ;;  %v2518_v29 = vmax.f32 %v1799_v14, %v2386_v61  ;;  %v3919_v40 = vpop.f32.mrb[201].mxu0  ;;  %v4053_v33 = vpop.f32.mrb[201].mxu1 }
 0x27a   :  { %v1802_v44 = vpop.f32.mrb[202].mxu0  ;;  %v2389_v59 = vpop.f32.mrb[202].mxu1 }
 0x27b   :  { %3013 = vst.msk [vmem:[%s5918_s6 + $0x90] sm:$0xf] %vm2976_vm4, %v3394_v62  ;;  %v3395_v60 = vpack.c.bf16 %v2707_v28, %v2707_v28  ;;  %v2579_v31 = vmax.f32 %v6135_v48, %v2518_v29  ;;  %v2519_v0 = vmax.f32 %v1802_v44, %v2389_v59  ;;  %v3920_v8 = vpop.f32.mrb[203].mxu0  ;;  %v4054_v11 = vpop.f32.mrb[203].mxu1  ;;  %v6148_v28 = vld [vmem:[#allocation39_spill] sm:$0xff]  ;;  %v6149_v29 = vld [vmem:[#allocation40_spill] sm:$0xff] }
 0x27c   :  { %v6150_v40 = vmax.f32 %v6148_v28, %v6149_v29  ;;  %v6163_v29 = vld [vmem:[#allocation49_spill] sm:$0xff] }
 0x27d   :  { %3014 = vst.msk [vmem:[%s5918_s6 + $0x94] sm:$0xf] %vm2976_vm4, %v3395_v60  ;;  %v2647_v12 = vadd.f32 %v5380_v22, %v2579_v31  ;;  %v2580_v7 = vmax.f32 %v6138_v20, %v2519_v0  ;;  %v6152_v20 = vld [vmem:[#allocation42_spill] sm:$0xff] }
 0x27f   :  { %v2708_v17 = vmax.f32 %v2647_v12, 0.0  ;;  %v2648_v52 = vadd.f32 %v5380_v22, %v2580_v7  ;;  %v6153_v7 = vmax.f32 %v6151_v3, %v6152_v20 }
 0x280   :  { %v1807_v18 = vpop.f32.mrb[204].mxu0  ;;  %v2394_v21 = vpop.f32.mrb[204].mxu1 }
 0x281   :  { %v3396_v34 = vpack.c.bf16 %v2708_v17, %v2708_v17  ;;  %v2709_v15 = vmax.f32 %v2648_v52, 0.0  ;;  %v2520_v6 = vmax.f32 %v1807_v18, %v2394_v21  ;;  %v3923_v49 = vpop.f32.mrb[205].mxu0  ;;  %v4057_v50 = vpop.f32.mrb[205].mxu1 }
 0x282   :  { %v1810_v19 = vpop.f32.mrb[206].mxu0  ;;  %v2397_v63 = vpop.f32.mrb[206].mxu1 }
 0x283   :  { %3015 = vst.msk [vmem:[%s5918_s6 + $0x98] sm:$0xf] %vm2976_vm4, %v3396_v34  ;;  %v3397_v30 = vpack.c.bf16 %v2709_v15, %v2709_v15  ;;  %v2581_v10 = vmax.f32 %v6141_v23, %v2520_v6  ;;  %v2521_v24 = vmax.f32 %v1810_v19, %v2397_v63  ;;  %v3924_v16 = vpop.f32.mrb[207].mxu0  ;;  %v4058_v46 = vpop.f32.mrb[207].mxu1  ;;  %v6154_v15 = vld [vmem:[#allocation43_spill] sm:$0xff]  ;;  %v6155_v6 = vld [vmem:[#allocation44_spill] sm:$0xff] }
 0x284   :  { %v6156_v49 = vmax.f32 %v6154_v15, %v6155_v6  ;;  %v6169_v6 = vld [vmem:[#allocation53_spill] sm:$0xff] }
 0x285   :  { %3016 = vst.msk [vmem:[%s5918_s6 + $0x9c] sm:$0xf] %vm2976_vm4, %v3397_v30  ;;  %v2649_v58 = vadd.f32 %v5380_v22, %v2581_v10  ;;  %v2582_v55 = vmax.f32 %v6144_v35, %v2521_v24  ;;  %v6158_v35 = vld [vmem:[#allocation46_spill] sm:$0xff] }
 0x287   :  { %v2710_v39 = vmax.f32 %v2649_v58, 0.0  ;;  %v2650_v5 = vadd.f32 %v5380_v22, %v2582_v55  ;;  %v6159_v55 = vmax.f32 %v6157_v2, %v6158_v35 }
 0x288   :  { %v1815_v36 = vpop.f32.mrb[208].mxu0  ;;  %v2402_v56 = vpop.f32.mrb[208].mxu1 }
 0x289   :  { %v3398_v57 = vpack.c.bf16 %v2710_v39, %v2710_v39  ;;  %v2711_v37 = vmax.f32 %v2650_v5, 0.0  ;;  %v2522_v38 = vmax.f32 %v1815_v36, %v2402_v56  ;;  %v3927_v51 = vpop.f32.mrb[209].mxu0  ;;  %v4061_v27 = vpop.f32.mrb[209].mxu1 }
 0x28a   :  { %v1818_v53 = vpop.f32.mrb[210].mxu0  ;;  %v2405_v54 = vpop.f32.mrb[210].mxu1 }
 0x28b   :  { %3017 = vst.msk [vmem:[%s5918_s6 + $0xa0] sm:$0xf] %vm2976_vm4, %v3398_v57  ;;  %v3399_v9 = vpack.c.bf16 %v2711_v37, %v2711_v37  ;;  %v2583_v47 = vmax.f32 %v6147_v43, %v2522_v38  ;;  %v2523_v26 = vmax.f32 %v1818_v53, %v2405_v54  ;;  %v3928_v14 = vpop.f32.mrb[211].mxu0  ;;  %v4062_v61 = vpop.f32.mrb[211].mxu1  ;;  %v6160_v37 = vld [vmem:[#allocation47_spill] sm:$0xff]  ;;  %v6161_v38 = vld [vmem:[#allocation48_spill] sm:$0xff] }
 0x28c   :  { %v6162_v51 = vmax.f32 %v6160_v37, %v6161_v38  ;;  %v6175_v38 = vld [vmem:[#allocation57_spill] sm:$0xff] }
 0x28d   :  { %3018 = vst.msk [vmem:[%s5918_s6 + $0xa4] sm:$0xf] %vm2976_vm4, %v3399_v9  ;;  %v2651_v62 = vadd.f32 %v5380_v22, %v2583_v47  ;;  %v2584_v33 = vmax.f32 %v6150_v40, %v2523_v26  ;;  %v6164_v40 = vld [vmem:[#allocation50_spill] sm:$0xff] }
 0x28f   :  { %v2712_v44 = vmax.f32 %v2651_v62, 0.0  ;;  %v2652_v59 = vadd.f32 %v5380_v22, %v2584_v33  ;;  %v6165_v33 = vmax.f32 %v6163_v29, %v6164_v40 }
 0x290   :  { %v1823_v60 = vpop.f32.mrb[212].mxu0  ;;  %v2410_v45 = vpop.f32.mrb[212].mxu1 }
 0x291   :  { %v3400_v32 = vpack.c.bf16 %v2712_v44, %v2712_v44  ;;  %v2713_v48 = vmax.f32 %v2652_v59, 0.0  ;;  %v2524_v31 = vmax.f32 %v1823_v60, %v2410_v45  ;;  %v3931_v0 = vpop.f32.mrb[213].mxu0  ;;  %v4065_v8 = vpop.f32.mrb[213].mxu1 }
 0x292   :  { %v1826_v11 = vpop.f32.mrb[214].mxu0  ;;  %v2413_v12 = vpop.f32.mrb[214].mxu1 }
 0x293   :  { %3019 = vst.msk [vmem:[%s5918_s6 + $0xa8] sm:$0xf] %vm2976_vm4, %v3400_v32  ;;  %v3401_v4 = vpack.c.bf16 %v2713_v48, %v2713_v48  ;;  %v2585_v17 = vmax.f32 %v6153_v7, %v2524_v31  ;;  %v2525_v52 = vmax.f32 %v1826_v11, %v2413_v12  ;;  %v3932_v18 = vpop.f32.mrb[215].mxu0  ;;  %v4066_v21 = vpop.f32.mrb[215].mxu1  ;;  %v6166_v48 = vld [vmem:[#allocation51_spill] sm:$0xff]  ;;  %v6167_v31 = vld [vmem:[#allocation52_spill] sm:$0xff] }
 0x294   :  { %v6168_v0 = vmax.f32 %v6166_v48, %v6167_v31  ;;  %v5814_v12 = vld [vmem:[%s5917_s5] ss:$0 sm:$0xff]  ;;  %v6181_v31 = vld [vmem:[#allocation61_spill] sm:$0xff] }
 0x295   :  { %3020 = vst.msk [vmem:[%s5918_s6 + $0xac] sm:$0xf] %vm2976_vm4, %v3401_v4  ;;  %v2653_v34 = vadd.f32 %v5380_v22, %v2585_v17  ;;  %v2586_v50 = vmax.f32 %v6156_v49, %v2525_v52  ;;  %v6170_v49 = vld [vmem:[#allocation54_spill] sm:$0xff] }
 0x297   :  { %v2714_v19 = vmax.f32 %v2653_v34, 0.0  ;;  %v2654_v63 = vadd.f32 %v5380_v22, %v2586_v50  ;;  %v6171_v50 = vmax.f32 %v6169_v6, %v6170_v49 }
 0x298   :  { %v1831_v30 = vpop.f32.mrb[216].mxu0  ;;  %v2418_v41 = vpop.f32.mrb[216].mxu1 }
 0x299   :  { %v3402_v42 = vpack.c.bf16 %v2714_v19, %v2714_v19  ;;  %v2715_v23 = vmax.f32 %v2654_v63, 0.0  ;;  %v2526_v10 = vmax.f32 %v1831_v30, %v2418_v41  ;;  %v3935_v24 = vpop.f32.mrb[217].mxu0  ;;  %v4069_v16 = vpop.f32.mrb[217].mxu1 }
 0x29a   :  { %v1834_v46 = vpop.f32.mrb[218].mxu0  ;;  %v2421_v58 = vpop.f32.mrb[218].mxu1 }
 0x29b   :  { %3021 = vst.msk [vmem:[%s5918_s6 + $0xb0] sm:$0xf] %vm2976_vm4, %v3402_v42  ;;  %v3403_v1 = vpack.c.bf16 %v2715_v23, %v2715_v23  ;;  %v2587_v39 = vmax.f32 %v6159_v55, %v2526_v10  ;;  %v2527_v5 = vmax.f32 %v1834_v46, %v2421_v58  ;;  %v3936_v36 = vpop.f32.mrb[219].mxu0  ;;  %v4070_v56 = vpop.f32.mrb[219].mxu1  ;;  %v6172_v23 = vld [vmem:[#allocation55_spill] sm:$0xff]  ;;  %v6173_v10 = vld [vmem:[#allocation56_spill] sm:$0xff] }
 0x29c   :  { %v6174_v24 = vmax.f32 %v6172_v23, %v6173_v10  ;;  %v6187_v10 = vld [vmem:[#allocation65_spill] sm:$0xff] }
 0x29d   :  { %3022 = vst.msk [vmem:[%s5918_s6 + $0xb4] sm:$0xf] %vm2976_vm4, %v3403_v1  ;;  %v2655_v57 = vadd.f32 %v5380_v22, %v2587_v39  ;;  %v2588_v27 = vmax.f32 %v6162_v51, %v2527_v5  ;;  %v6176_v51 = vld [vmem:[#allocation58_spill] sm:$0xff] }
 0x29f   :  { %v2716_v53 = vmax.f32 %v2655_v57, 0.0  ;;  %v2656_v54 = vadd.f32 %v5380_v22, %v2588_v27  ;;  %v6177_v27 = vmax.f32 %v6175_v38, %v6176_v51 }
 0x2a0   :  { %v1839_v9 = vpop.f32.mrb[220].mxu0  ;;  %v2426_v13 = vpop.f32.mrb[220].mxu1 }
 0x2a1   :  { %v3404_v25 = vpack.c.bf16 %v2716_v53, %v2716_v53  ;;  %v2717_v43 = vmax.f32 %v2656_v54, 0.0  ;;  %v2528_v47 = vmax.f32 %v1839_v9, %v2426_v13  ;;  %v3939_v26 = vpop.f32.mrb[221].mxu0  ;;  %v4073_v14 = vpop.f32.mrb[221].mxu1 }
 0x2a2   :  { %v1842_v61 = vpop.f32.mrb[222].mxu0  ;;  %v2429_v62 = vpop.f32.mrb[222].mxu1 }
 0x2a3   :  { %3023 = vst.msk [vmem:[%s5918_s6 + $0xb8] sm:$0xf] %vm2976_vm4, %v3404_v25  ;;  %v3405_v28 = vpack.c.bf16 %v2717_v43, %v2717_v43  ;;  %v2589_v44 = vmax.f32 %v6165_v33, %v2528_v47  ;;  %v2529_v59 = vmax.f32 %v1842_v61, %v2429_v62  ;;  %v3940_v60 = vpop.f32.mrb[223].mxu0  ;;  %v4074_v45 = vpop.f32.mrb[223].mxu1  ;;  %v6178_v43 = vld [vmem:[#allocation59_spill] sm:$0xff]  ;;  %v6179_v47 = vld [vmem:[#allocation60_spill] sm:$0xff] }
 0x2a4   :  { %v6180_v26 = vmax.f32 %v6178_v43, %v6179_v47  ;;  %v6193_v47 = vld [vmem:[#allocation69_spill] sm:$0xff] }
 0x2a5   :  { %3024 = vst.msk [vmem:[%s5918_s6 + $0xbc] sm:$0xf] %vm2976_vm4, %v3405_v28  ;;  %v2657_v32 = vadd.f32 %v5380_v22, %v2589_v44  ;;  %v2590_v8 = vmax.f32 %v6168_v0, %v2529_v59  ;;  %v6182_v0 = vld [vmem:[#allocation62_spill] sm:$0xff] }
 0x2a7   :  { %v2718_v11 = vmax.f32 %v2657_v32, 0.0  ;;  %v2658_v4 = vadd.f32 %v5814_v12, %v2590_v8  ;;  %v6183_v8 = vmax.f32 %v6181_v31, %v6182_v0 }
 0x2a8   :  { %v1847_v3 = vpop.f32.mrb[224].mxu0  ;;  %v2434_v20 = vpop.f32.mrb[224].mxu1 }
 0x2a9   :  { %v3406_v7 = vpack.c.bf16 %v2718_v11, %v2718_v11  ;;  %v2719_v17 = vmax.f32 %v2658_v4, 0.0  ;;  %v2530_v52 = vmax.f32 %v1847_v3, %v2434_v20  ;;  %v3943_v18 = vpop.f32.mrb[225].mxu0  ;;  %v4077_v21 = vpop.f32.mrb[225].mxu1 }
 0x2aa   :  { %v1850_v22 = vpop.f32.mrb[226].mxu0  ;;  %v2437_v34 = vpop.f32.mrb[226].mxu1 }
 0x2ab   :  { %3025 = vst.msk [vmem:[%s5918_s6 + $0xc0] sm:$0xf] %vm2976_vm4, %v3406_v7  ;;  %v3407_v15 = vpack.c.bf16 %v2719_v17, %v2719_v17  ;;  %v2591_v19 = vmax.f32 %v6171_v50, %v2530_v52  ;;  %v2531_v63 = vmax.f32 %v1850_v22, %v2437_v34  ;;  %v3944_v30 = vpop.f32.mrb[227].mxu0  ;;  %v4078_v41 = vpop.f32.mrb[227].mxu1  ;;  %v6184_v17 = vld [vmem:[#allocation63_spill] sm:$0xff]  ;;  %v6185_v52 = vld [vmem:[#allocation64_spill] sm:$0xff] }
 0x2ac   :  { %v6186_v18 = vmax.f32 %v6184_v17, %v6185_v52  ;;  %v6199_v52 = vld [vmem:[#allocation73_spill] sm:$0xff] }
 0x2ad   :  { %3026 = vst.msk [vmem:[%s5918_s6 + $0xc4] sm:$0xf] %vm2976_vm4, %v3407_v15  ;;  %v2659_v42 = vadd.f32 %v5814_v12, %v2591_v19  ;;  %v2592_v16 = vmax.f32 %v6174_v24, %v2531_v63  ;;  %v6188_v24 = vld [vmem:[#allocation66_spill] sm:$0xff] }
 0x2af   :  { %v2720_v46 = vmax.f32 %v2659_v42, 0.0  ;;  %v2660_v58 = vadd.f32 %v5814_v12, %v2592_v16  ;;  %v6189_v16 = vmax.f32 %v6187_v10, %v6188_v24 }
 0x2b0   :  { %v1855_v1 = vpop.f32.mrb[228].mxu0  ;;  %v2442_v2 = vpop.f32.mrb[228].mxu1 }
 0x2b1   :  { %v3408_v35 = vpack.c.bf16 %v2720_v46, %v2720_v46  ;;  %v2721_v55 = vmax.f32 %v2660_v58, 0.0  ;;  %v2532_v39 = vmax.f32 %v1855_v1, %v2442_v2  ;;  %v3947_v5 = vpop.f32.mrb[229].mxu0  ;;  %v4081_v36 = vpop.f32.mrb[229].mxu1 }
 0x2b2   :  { %v1858_v56 = vpop.f32.mrb[230].mxu0  ;;  %v2445_v57 = vpop.f32.mrb[230].mxu1 }
 0x2b3   :  { %3027 = vst.msk [vmem:[%s5918_s6 + $0xc8] sm:$0xf] %vm2976_vm4, %v3408_v35  ;;  %v3409_v37 = vpack.c.bf16 %v2721_v55, %v2721_v55  ;;  %v2593_v53 = vmax.f32 %v6177_v27, %v2532_v39  ;;  %v2533_v54 = vmax.f32 %v1858_v56, %v2445_v57  ;;  %v3948_v9 = vpop.f32.mrb[231].mxu0  ;;  %v4082_v13 = vpop.f32.mrb[231].mxu1  ;;  %v6190_v55 = vld [vmem:[#allocation67_spill] sm:$0xff]  ;;  %v6191_v39 = vld [vmem:[#allocation68_spill] sm:$0xff] }
 0x2b4   :  { %v6192_v5 = vmax.f32 %v6190_v55, %v6191_v39 }
 0x2b5   :  { %3028 = vst.msk [vmem:[%s5918_s6 + $0xcc] sm:$0xf] %vm2976_vm4, %v3409_v37  ;;  %v2661_v25 = vadd.f32 %v5814_v12, %v2593_v53  ;;  %v2594_v14 = vmax.f32 %v6180_v26, %v2533_v54  ;;  %v6194_v26 = vld [vmem:[#allocation70_spill] sm:$0xff] }
 0x2b7   :  { %v2722_v61 = vmax.f32 %v2661_v25, 0.0  ;;  %v2662_v62 = vadd.f32 %v5814_v12, %v2594_v14  ;;  %v6195_v14 = vmax.f32 %v6193_v47, %v6194_v26 }
 0x2b8   :  { %v1863_v28 = vpop.f32.mrb[232].mxu0  ;;  %v2450_v29 = vpop.f32.mrb[232].mxu1 }
 0x2b9   :  { %v3410_v40 = vpack.c.bf16 %v2722_v61, %v2722_v61  ;;  %v2723_v33 = vmax.f32 %v2662_v62, 0.0  ;;  %v2534_v44 = vmax.f32 %v1863_v28, %v2450_v29  ;;  %v3951_v59 = vpop.f32.mrb[233].mxu0  ;;  %v4085_v60 = vpop.f32.mrb[233].mxu1 }
 0x2ba   :  { %v1866_v45 = vpop.f32.mrb[234].mxu0  ;;  %v2453_v32 = vpop.f32.mrb[234].mxu1 }
 0x2bb   :  { %3029 = vst.msk [vmem:[%s5918_s6 + $0xd0] sm:$0xf] %vm2976_vm4, %v3410_v40  ;;  %v3411_v48 = vpack.c.bf16 %v2723_v33, %v2723_v33  ;;  %v2595_v11 = vmax.f32 %v6183_v8, %v2534_v44  ;;  %v2535_v4 = vmax.f32 %v1866_v45, %v2453_v32  ;;  %v3952_v3 = vpop.f32.mrb[235].mxu0  ;;  %v4086_v20 = vpop.f32.mrb[235].mxu1  ;;  %v6196_v33 = vld [vmem:[#allocation71_spill] sm:$0xff]  ;;  %v6197_v44 = vld [vmem:[#allocation72_spill] sm:$0xff] }
 0x2bc   :  { %v6198_v59 = vmax.f32 %v6196_v33, %v6197_v44 }
 0x2bd   :  { %3030 = vst.msk [vmem:[%s5918_s6 + $0xd4] sm:$0xf] %vm2976_vm4, %v3411_v48  ;;  %v2663_v7 = vadd.f32 %v5814_v12, %v2595_v11  ;;  %v2596_v21 = vmax.f32 %v6186_v18, %v2535_v4  ;;  %v6200_v18 = vld [vmem:[#allocation74_spill] sm:$0xff] }
 0x2bf   :  { %v2724_v22 = vmax.f32 %v2663_v7, 0.0  ;;  %v2664_v34 = vadd.f32 %v5814_v12, %v2596_v21  ;;  %v6201_v21 = vmax.f32 %v6199_v52, %v6200_v18 }
 0x2c0   :  { %v1871_v15 = vpop.f32.mrb[236].mxu0  ;;  %v2458_v6 = vpop.f32.mrb[236].mxu1 }
 0x2c1   :  { %v3412_v49 = vpack.c.bf16 %v2724_v22, %v2724_v22  ;;  %v2725_v50 = vmax.f32 %v2664_v34, 0.0  ;;  %v2536_v19 = vmax.f32 %v1871_v15, %v2458_v6  ;;  %v3955_v63 = vpop.f32.mrb[237].mxu0  ;;  %v4089_v30 = vpop.f32.mrb[237].mxu1 }
 0x2c2   :  { %v1874_v41 = vpop.f32.mrb[238].mxu0  ;;  %v2461_v42 = vpop.f32.mrb[238].mxu1 }
 0x2c3   :  { %3031 = vst.msk [vmem:[%s5918_s6 + $0xd8] sm:$0xf] %vm2976_vm4, %v3412_v49  ;;  %v3413_v23 = vpack.c.bf16 %v2725_v50, %v2725_v50  ;;  %v2597_v46 = vmax.f32 %v6189_v16, %v2536_v19  ;;  %v2537_v58 = vmax.f32 %v1874_v41, %v2461_v42  ;;  %v3956_v1 = vpop.f32.mrb[239].mxu0  ;;  %v4090_v2 = vpop.f32.mrb[239].mxu1 }
 0x2c5   :  { %3032 = vst.msk [vmem:[%s5918_s6 + $0xdc] sm:$0xf] %vm2976_vm4, %v3413_v23  ;;  %v2665_v35 = vadd.f32 %v5814_v12, %v2597_v46  ;;  %v2598_v36 = vmax.f32 %v6192_v5, %v2537_v58 }
 0x2c7   :  { %v2726_v56 = vmax.f32 %v2665_v35, 0.0  ;;  %v2666_v57 = vadd.f32 %v5814_v12, %v2598_v36 }
 0x2c8   :  { %v1879_v37 = vpop.f32.mrb[240].mxu0  ;;  %v2466_v38 = vpop.f32.mrb[240].mxu1 }
 0x2c9   :  { %v3414_v51 = vpack.c.bf16 %v2726_v56, %v2726_v56  ;;  %v2727_v27 = vmax.f32 %v2666_v57, 0.0  ;;  %v2538_v53 = vmax.f32 %v1879_v37, %v2466_v38  ;;  %v3959_v54 = vpop.f32.mrb[241].mxu0  ;;  %v4093_v9 = vpop.f32.mrb[241].mxu1 }
 0x2ca   :  { %v1882_v13 = vpop.f32.mrb[242].mxu0  ;;  %v2469_v25 = vpop.f32.mrb[242].mxu1 }
 0x2cb   :  { %3033 = vst.msk [vmem:[%s5918_s6 + $0xe0] sm:$0xf] %vm2976_vm4, %v3414_v51  ;;  %v3415_v43 = vpack.c.bf16 %v2727_v27, %v2727_v27  ;;  %v2599_v61 = vmax.f32 %v6195_v14, %v2538_v53  ;;  %v2539_v62 = vmax.f32 %v1882_v13, %v2469_v25  ;;  %v3960_v28 = vpop.f32.mrb[243].mxu0  ;;  %v4094_v29 = vpop.f32.mrb[243].mxu1 }
 0x2cd   :  { %3034 = vst.msk [vmem:[%s5918_s6 + $0xe4] sm:$0xf] %vm2976_vm4, %v3415_v43  ;;  %v2667_v40 = vadd.f32 %v5814_v12, %v2599_v61  ;;  %v2600_v60 = vmax.f32 %v6198_v59, %v2539_v62 }
 0x2cf   :  { %v2728_v45 = vmax.f32 %v2667_v40, 0.0  ;;  %v2668_v32 = vadd.f32 %v5814_v12, %v2600_v60 }
 0x2d0   :  { %v1887_v48 = vpop.f32.mrb[244].mxu0  ;;  %v2474_v31 = vpop.f32.mrb[244].mxu1 }
 0x2d1   :  { %v3416_v0 = vpack.c.bf16 %v2728_v45, %v2728_v45  ;;  %v2729_v8 = vmax.f32 %v2668_v32, 0.0  ;;  %v2540_v11 = vmax.f32 %v1887_v48, %v2474_v31  ;;  %v3963_v4 = vpop.f32.mrb[245].mxu0  ;;  %v4097_v3 = vpop.f32.mrb[245].mxu1 }
 0x2d2   :  { %v1890_v20 = vpop.f32.mrb[246].mxu0  ;;  %v2477_v7 = vpop.f32.mrb[246].mxu1 }
 0x2d3   :  { %3035 = vst.msk [vmem:[%s5918_s6 + $0xe8] sm:$0xf] %vm2976_vm4, %v3416_v0  ;;  %v3417_v17 = vpack.c.bf16 %v2729_v8, %v2729_v8  ;;  %v2601_v22 = vmax.f32 %v6201_v21, %v2540_v11  ;;  %v3964_v34 = vpop.f32.mrb[247].mxu0  ;;  %v4098_v15 = vpop.f32.mrb[247].mxu1 }
 0x2d5   :  { %3036 = vst.msk [vmem:[%s5918_s6 + $0xec] sm:$0xf] %vm2976_vm4, %v3417_v17  ;;  %v2669_v6 = vadd.f32 %v5814_v12, %v2601_v22 }
 0x2d7   :  { %v2730_v49 = vmax.f32 %v2669_v6, 0.0 }
 0x2d9   :  { %v3418_v50 = vpack.c.bf16 %v2730_v49, %v2730_v49 }
 0x2db   :  { %3038 = vst.msk [vmem:[%s5918_s6 + $0xf0] sm:$0x3] %vm3037_vm5, %v3418_v50 }

// kernel: _forward.3
= control target key start
LH: loop header
LB: loop body
LE: loop exit
PB: predicated region body
PF: predicated region fallthrough
CT: control target
= control target key end

     0   :  { %s4313_s0 = inlined_call_operand.vmem [shape: bf16[36,500], index: 0, kind: input, shape index: {}]   ;;  %s4314_s1 = inlined_call_operand.vmem [shape: bf16[36,500], index: 1, kind: input, shape index: {}]   ;;  %s4315_s2 = inlined_call_operand.vmem [shape: bf16[36,500], index: 2, kind: input, shape index: {}]   ;;  %s4316_s3 = inlined_call_operand.vmem [shape: bf16[36,500], index: 3, kind: input, shape index: {}]   ;;  %s4317_s4 = inlined_call_operand.vmem [shape: bf16[500,50], index: 4, kind: input, shape index: {}]   ;;  %s4318_s5 = inlined_call_operand.vmem [shape: f32[1,50], index: 5, kind: input, shape index: {}]   ;;  %s4319_s6 = inlined_call_operand.vmem [shape: bf16[50,450], index: 6, kind: input, shape index: {}]   ;;  %s4320_s7 = inlined_call_operand.vmem [shape: f32[1,50], index: 7, kind: input, shape index: {}]   ;;  %s4321_s8 = inlined_call_operand.vmem [shape: f32[50,50], index: 8, kind: input, shape index: {}]   ;;  %s4322_s9 = inlined_call_operand.vmem [shape: f32[50,50], index: 9, kind: input, shape index: {}]   ;;  %s4323_s10 = inlined_call_operand.vmem [shape: f32[1,50], index: 10, kind: input, shape index: {}]   ;;  %s4324_s11 = inlined_call_operand.vmem [shape: f32[50,1], index: 11, kind: input, shape index: {}]   ;;  %s4325_s12 = inlined_call_operand.vmem [shape: f32[50,1], index: 12, kind: input, shape index: {}]   ;;  %s4326_s13 = inlined_call_operand.<no memory space> [shape: f32[1,1], index: 13, kind: input, shape index: {}]   ;;  %s4327_s16 = inlined_call_operand.vmem [shape: f32[50,25], index: 16, kind: input, shape index: {}]   ;;  %s4328_s17 = inlined_call_operand.vmem [shape: f32[1,25], index: 17, kind: input, shape index: {}]   ;;  %s4329_s18 = inlined_call_operand.vmem [shape: f32[25,2], index: 18, kind: input, shape index: {}]   ;;  %s4330_s19 = inlined_call_operand.vmem [shape: f32[1,2], index: 19, kind: input, shape index: {}]   ;;  %s4331_s20 = inlined_call_operand.hbm [shape: f32[1,2], index: 20, kind: output, shape index: {0}]   ;;  %s4332_s21 = inlined_call_operand.hbm [shape: f32[1,1], index: 21, kind: output, shape index: {1}]   ;;  %s4333_s14 = inlined_call_operand.<no memory space> [shape: f32[1,1], index: 14, kind: input, shape index: {}]   ;;  %s4334_s15 = inlined_call_operand.<no memory space> [shape: f32[1,1], index: 15, kind: input, shape index: {}]  }
   0x1   :  { %4340 = sst [smem:[#allocation12_spill]] %s4313_s0  ;;  %v27_v0 = vstv %s4326_s13  ;;  %v29_v1 = vstv %s4333_s14  ;;  %v31_v2 = vstv %s4334_s15 }
   0x2   :  { %4341 = sst [smem:[#allocation13_spill]] %s4314_s1  ;;  %28 = vst [vmem:[#allocation3] sm:$0x1] %v27_v0  ;;  %30 = vst [vmem:[#allocation4] sm:$0x1] %v29_v1 }
   0x3   :  { %4342 = sst [smem:[#allocation14_spill]] %s4315_s2  ;;  %32 = vst [vmem:[#allocation5] sm:$0x1] %v31_v2 }
   0x4   :  { %4343 = sst [smem:[#allocation15_spill]] %s4316_s3 }
   0x5   :  { %4344 = sst [smem:[#allocation16_spill]] %s4317_s4 }
   0x6   :  { %4345 = sst [smem:[#allocation17_spill]] %s4318_s5 }
   0x7   :  { %33 = vsyncpa [#allocation7], 0  ;;  %s4346_s4 = sld [smem:[#allocation16_spill]]  ;;  %vm399_vm0 = vcmask 1041408   ;;  %s4347_s3 = sld [smem:[#allocation12_spill]]  ;;  %vm389_vm1 = vcmask 949248  }
   0x8   :  { %s4348_s0 = sld [smem:[#allocation13_spill]] }
   0xd   :  { %v3500_v3 = vld [vmem:[%s4346_s4 + $0x40] sm:$0xff]   ;;  %v3523_v7 = vld [vmem:[%s4346_s4 + $0x48] sm:$0xff]   ;;  %v3547_v11 = vld [vmem:[%s4346_s4 + $0x50] sm:$0xff]  }
   0xe   :  { %v3505_v4 = vld [vmem:[%s4346_s4 + $0xc0] sm:$0xff]   ;;  %2599 = vmatprep.subr.bf16.mxu0 %v3500_v3  ;;  %v3529_v8 = vld [vmem:[%s4346_s4 + $0xc8] sm:$0xff]   ;;  %v3553_v12 = vld [vmem:[%s4346_s4 + $0xd0] sm:$0xff]  }
   0xf   :  { %v3511_v5 = vld [vmem:[%s4346_s4] sm:$0xff]   ;;  %2633 = vmatprep.subr.bf16.mxu1 %v3505_v4  ;;  %v3535_v9 = vld [vmem:[%s4346_s4 + $0x8] sm:$0xff]   ;;  %v3559_v13 = vld [vmem:[%s4346_s4 + $0x10] sm:$0xff]  }
  0x10   :  { %v3517_v6 = vld [vmem:[%s4346_s4 + $0x80] sm:$0xff]   ;;  %2600 = vmatpush3.bf16.msra.mxu0 %v3511_v5  ;;  %v3541_v10 = vld [vmem:[%s4346_s4 + $0x88] sm:$0xff]   ;;  %v3565_v14 = vld [vmem:[%s4346_s4 + $0x90] sm:$0xff]  }
  0x11   :  { %2634 = vmatpush3.bf16.msra.mxu1 %v3517_v6  ;;  %2601 = vmatprep.subr.bf16.mxu0 %v3523_v7  ;;  %v3571_v15 = vld [vmem:[%s4346_s4 + $0x58] sm:$0xff]   ;;  %v3595_v19 = vld [vmem:[%s4346_s4 + $0x60] sm:$0xff]   ;;  %v3619_v23 = vld [vmem:[%s4346_s4 + $0x68] sm:$0xff]  }
  0x12   :  { %2635 = vmatprep.subr.bf16.mxu1 %v3529_v8  ;;  %v3577_v16 = vld [vmem:[%s4346_s4 + $0xd8] sm:$0xff]   ;;  %v3601_v20 = vld [vmem:[%s4346_s4 + $0xe0] sm:$0xff]   ;;  %v3625_v24 = vld [vmem:[%s4346_s4 + $0xe8] sm:$0xff]  }
  0x13   :  { %v3583_v17 = vld [vmem:[%s4346_s4 + $0x18] sm:$0xff]   ;;  %v3607_v21 = vld [vmem:[%s4346_s4 + $0x20] sm:$0xff]   ;;  %v3631_v25 = vld [vmem:[%s4346_s4 + $0x28] sm:$0xff]  }
  0x14   :  { %2602 = vmatpush3.bf16.msra.mxu0 %v3535_v9  ;;  %v3589_v18 = vld [vmem:[%s4346_s4 + $0x98] sm:$0xff]   ;;  %v3613_v22 = vld [vmem:[%s4346_s4 + $0xa0] sm:$0xff]   ;;  %v3637_v26 = vld [vmem:[%s4346_s4 + $0xa8] sm:$0xff]  }
  0x15   :  { %2636 = vmatpush3.bf16.msra.mxu1 %v3541_v10  ;;  %2603 = vmatprep.subr.bf16.mxu0 %v3547_v11  ;;  %v3643_v27 = vld [vmem:[%s4346_s4 + $0x70] sm:$0xff]   ;;  %v3667_v31 = vld [vmem:[%s4346_s4 + $0x78] sm:$0xff]   ;;  %v147_v41 = vld [vmem:[%s4347_s3 + $0x40] sm:$0x33] }
  0x16   :  { %2637 = vmatprep.subr.bf16.mxu1 %v3553_v12  ;;  %v3649_v28 = vld [vmem:[%s4346_s4 + $0xf0] sm:$0xff]   ;;  %v3673_v32 = vld [vmem:[%s4346_s4 + $0xf8] ss:$0 sps:$4 sm:$0x33]   ;;  %v3210_v38 = vld [vmem:[%s4347_s3 + $0xc] ss:$16 sps:$4 sm:$0xff]   ;;  %v2467_v44 = vcombine.high %v147_v41, %v147_v41  ;;  %v2466_v47 = vcombine.low %v147_v41, %v147_v41 }
  0x17   :  { %v3655_v29 = vld [vmem:[%s4346_s4 + $0x30] sm:$0xff]   ;;  %v3678_v33 = vld [vmem:[%s4346_s4 + $0x38] sm:$0xff]   ;;  %2502 = vmatprep.mubr.msk.bf16.mxu1 %vm389_vm1, %v3210_v38  ;;  %v148_v43 = vld [vmem:[%s4347_s3 + $0x48] sm:$0x33] }
  0x18   :  { %2604 = vmatpush3.bf16.msra.mxu0 %v3559_v13  ;;  %v3661_v30 = vld [vmem:[%s4346_s4 + $0xb0] sm:$0xff]   ;;  %v3686_v34 = vld [vmem:[%s4346_s4 + $0xb8] sm:$0xff]   ;;  %v2469_v46 = vcombine.high %v148_v43, %v148_v43  ;;  %v2468_v49 = vcombine.low %v148_v43, %v148_v43 }
  0x19   :  { %2638 = vmatpush3.bf16.msra.mxu1 %v3565_v14  ;;  %2605 = vmatprep.subr.bf16.mxu0 %v3571_v15  ;;  %v3205_v35 = vld [vmem:[%s4347_s3] ss:$16 sps:$4 sm:$0xff]   ;;  %v3207_v36 = vld [vmem:[%s4347_s3 + $0x4] ss:$16 sps:$4 sm:$0xff]   ;;  %v3208_v37 = vld [vmem:[%s4347_s3 + $0x8] ss:$16 sps:$4 sm:$0xff]  }
  0x1a   :  { %2639 = vmatprep.subr.bf16.mxu1 %v3577_v16  ;;  %435 = vmatprep.mubr.bf16.mxu0 %v3207_v36  ;;  %v3211_v39 = vld [vmem:[%s4347_s3 + $0x24] ss:$16 sps:$4 sm:$0xff]   ;;  %v3213_v40 = vld [vmem:[%s4347_s3 + $0x2c] ss:$16 sps:$4 sm:$0xff]   ;;  %v3215_v42 = vld [vmem:[%s4347_s3 + $0x20] ss:$16 sps:$4 sm:$0xff]  }
  0x1b   :  { %v3216_v45 = vld [vmem:[%s4347_s3 + $0x28] ss:$16 sps:$4 sm:$0xff]   ;;  %v3223_v48 = vld [vmem:[%s4348_s0 + $0x4] ss:$16 sps:$4 sm:$0xff]   ;;  %v3226_v50 = vld [vmem:[%s4348_s0 + $0xc] ss:$16 sps:$4 sm:$0xff]  }
  0x1c   :  { %2606 = vmatpush3.bf16.msra.mxu0 %v3583_v17 }
  0x1d   :  { %2640 = vmatpush3.bf16.msra.mxu1 %v3589_v18  ;;  %2607 = vmatprep.subr.bf16.mxu0 %v3595_v19 }
  0x1e   :  { %2641 = vmatprep.subr.bf16.mxu1 %v3601_v20 }
  0x20   :  { %2608 = vmatpush3.bf16.msra.mxu0 %v3607_v21 }
  0x21   :  { %2642 = vmatpush3.bf16.msra.mxu1 %v3613_v22  ;;  %2609 = vmatprep.subr.bf16.mxu0 %v3619_v23 }
  0x22   :  { %2643 = vmatprep.subr.bf16.mxu1 %v3625_v24 }
  0x24   :  { %2610 = vmatpush3.bf16.msra.mxu0 %v3631_v25 }
  0x25   :  { %2644 = vmatpush3.bf16.msra.mxu1 %v3637_v26  ;;  %2611 = vmatprep.subr.bf16.mxu0 %v3643_v27 }
  0x26   :  { %2645 = vmatprep.subr.bf16.mxu1 %v3649_v28 }
  0x28   :  { %2612 = vmatpush3.bf16.msra.mxu0 %v3655_v29 }
  0x29   :  { %2646 = vmatpush3.bf16.msra.mxu1 %v3661_v30  ;;  %2613 = vmatprep.subr.bf16.mxu0 %v3667_v31 }
  0x2a   :  { %3146 = vmatprep.subr.msk.bf16.mxu1 %vm399_vm0, %v3673_v32 }
  0x2c   :  { %2614 = vmatpush3.bf16.msra.mxu0 %v3678_v33 }
  0x2d   :  { %2648 = vmatpush3.bf16.msra.mxu1 %v3686_v34  ;;  %2667 = vmatprep.subr.bf16.mxu0 %v3500_v3 }
  0x2e   :  { %2701 = vmatprep.subr.bf16.mxu1 %v3505_v4 }
  0x2f   :  { %436 = vmatmul.mubr.bf16.vlgmr.msra.gmra.mrb[0].mxu0 %v3205_v35 }
  0x30   :  { %2668 = vmatpush3.bf16.msra.mxu0 %v3511_v5  ;;  %492 = vmatmul.mubr.bf16.vlgmr.msra.gmra.mrb[0].mxu1 %v3208_v37 }
  0x31   :  { %2669 = vmatprep.subr.bf16.mxu0 %v3523_v7  ;;  %2702 = vmatpush3.bf16.msra.mxu1 %v3517_v6 }
  0x32   :  { %443 = vmatprep.mubr.bf16.mxu0 %v3211_v39  ;;  %2703 = vmatprep.subr.bf16.mxu1 %v3529_v8 }
  0x33   :  { %2503 = vmatprep.mubr.msk.bf16.mxu1 %vm389_vm1, %v3213_v40 }
  0x34   :  { %2670 = vmatpush3.bf16.msra.mxu0 %v3535_v9 }
  0x35   :  { %2671 = vmatprep.subr.bf16.mxu0 %v3547_v11  ;;  %2704 = vmatpush3.bf16.msra.mxu1 %v3541_v10 }
  0x36   :  { %2705 = vmatprep.subr.bf16.mxu1 %v3553_v12 }
  0x37   :  { %444 = vmatmul.mubr.bf16.gmra.mrb[4].mxu0 %v3215_v42 }
  0x38   :  { %2672 = vmatpush3.bf16.msra.mxu0 %v3559_v13  ;;  %451 = vmatprep.mubr.bf16.mxu0 %v2467_v44 }
  0x39   :  { %2673 = vmatprep.subr.bf16.mxu0 %v3571_v15  ;;  %500 = vmatmul.mubr.bf16.gmra.mrb[4].mxu1 %v3216_v45 }
  0x3a   :  { %2706 = vmatpush3.bf16.msra.mxu1 %v3565_v14  ;;  %2504 = vmatprep.mubr.msk.bf16.mxu1 %vm389_vm1, %v2469_v46 }
  0x3b   :  { %2707 = vmatprep.subr.bf16.mxu1 %v3577_v16 }
  0x3c   :  { %2674 = vmatpush3.bf16.msra.mxu0 %v3583_v17 }
  0x3d   :  { %2675 = vmatprep.subr.bf16.mxu0 %v3595_v19 }
  0x3e   :  { %2708 = vmatpush3.bf16.msra.mxu1 %v3589_v18 }
  0x3f   :  { %2709 = vmatprep.subr.bf16.mxu1 %v3601_v20  ;;  %452 = vmatmul.mubr.bf16.gmra.mrb[8].mxu0 %v2466_v47 }
  0x40   :  { %2676 = vmatpush3.bf16.msra.mxu0 %v3607_v21  ;;  %617 = vmatprep.mubr.bf16.mxu0 %v3223_v48 }
  0x41   :  { %2677 = vmatprep.subr.bf16.mxu0 %v3619_v23  ;;  %508 = vmatmul.mubr.bf16.gmra.mrb[8].mxu1 %v2468_v49 }
  0x42   :  { %2710 = vmatpush3.bf16.msra.mxu1 %v3613_v22  ;;  %2517 = vmatprep.mubr.msk.bf16.mxu1 %vm389_vm1, %v3226_v50 }
  0x43   :  { %2711 = vmatprep.subr.bf16.mxu1 %v3625_v24 }
  0x44   :  { %2678 = vmatpush3.bf16.msra.mxu0 %v3631_v25 }
  0x45   :  { %2679 = vmatprep.subr.bf16.mxu0 %v3643_v27 }
  0x46   :  { %2712 = vmatpush3.bf16.msra.mxu1 %v3637_v26 }
  0x47   :  { %2713 = vmatprep.subr.bf16.mxu1 %v3649_v28 }
  0x48   :  { %34 = vsyncpa [#allocation9], 0  ;;  %2680 = vmatpush3.bf16.msra.mxu0 %v3655_v29  ;;  %v3221_v51 = vld [vmem:[%s4348_s0] ss:$16 sps:$4 sm:$0xff]   ;;  %v3227_v52 = vld [vmem:[%s4348_s0 + $0x24] ss:$16 sps:$4 sm:$0xff]  }
  0x49   :  { %2681 = vmatprep.subr.bf16.mxu0 %v3667_v31  ;;  %v3224_v53 = vld [vmem:[%s4348_s0 + $0x8] ss:$16 sps:$4 sm:$0xff]   ;;  %v3229_v54 = vld [vmem:[%s4348_s0 + $0x2c] ss:$16 sps:$4 sm:$0xff]   ;;  %v523_v55 = vld [vmem:[%s4348_s0 + $0x40] sm:$0x33] }
  0x4a   :  { %2714 = vmatpush3.bf16.msra.mxu1 %v3661_v30  ;;  %v3231_v56 = vld [vmem:[%s4348_s0 + $0x20] ss:$16 sps:$4 sm:$0xff]   ;;  %v524_v57 = vld [vmem:[%s4348_s0 + $0x48] sm:$0x33]  ;;  %v2514_v58 = vcombine.high %v523_v55, %v523_v55  ;;  %v2513_v61 = vcombine.low %v523_v55, %v523_v55  ;;  %s4349_s5 = sld [smem:[#allocation14_spill]]  ;;  %s4350_s15 = sld [smem:[#allocation15_spill]] }
  0x4b   :  { %3147 = vmatprep.subr.msk.bf16.mxu1 %vm399_vm0, %v3673_v32  ;;  %v3232_v59 = vld [vmem:[%s4348_s0 + $0x28] ss:$16 sps:$4 sm:$0xff]   ;;  %v2516_v60 = vcombine.high %v524_v57, %v524_v57  ;;  %v2515_v63 = vcombine.low %v524_v57, %v524_v57  ;;  %v1108_v39 = vld [vmem:[%s4319_s6 + $0x60] sm:$0x11]  ;;  %vm1190_vm2 = vcmask 1040384   ;;  %v3363_v47 = vmov 0  }
  0x4c   :  { %2682 = vmatpush3.bf16.msra.mxu0 %v3678_v33  ;;  %v3284_v38 = vld [vmem:[%s4319_s6 + $0x48] ss:$16 sps:$4 sm:$0xff]   ;;  %v2564_v41 = vcombine.high %v1108_v39, %v1108_v39  ;;  %v2563_v42 = vcombine.low %v1108_v39, %v1108_v39  ;;  %3172 = vset.pattern.permute.xlu1 %v3363_v47  ;;  %s4351_s30 = sld [smem:[#allocation17_spill]]  ;;  %vm1180_vm3 = vcmask 408576   ;;  %vm1328_vm4 = vcmask 539648   ;;  %s3365_s14 = smov 78  }
  0x4d   :  { %2735 = vmatprep.subr.bf16.mxu0 %v3500_v3  ;;  %v1109_v40 = vld [vmem:[%s4319_s6 + $0x68] sm:$0x11]  ;;  %3171 = vset.pattern.permute.xlu0 %v3363_v47  ;;  %s3366_s22 = smov 28   ;;  %vm1345_vm5 = vcmask 535552   ;;  %s3367_s28 = smov 106   ;;  %vm3372_vm6 = vmmov 0  }
  0x4e   :  { %2716 = vmatpush3.bf16.msra.mxu1 %v3686_v34  ;;  %v2566_v43 = vcombine.high %v1109_v40, %v1109_v40  ;;  %v2565_v44 = vcombine.low %v1109_v40, %v1109_v40  ;;  %v1192_v45 = vsel %vm1190_vm2, %v2563_v42, 0  ;;  %s3368_s3 = smov 56   ;;  %s3370_s13 = smov 6   ;;  %vm1363_vm7 = vcmask 228352  }
  0x4f   :  { %618 = vmatmul.mubr.bf16.vlgmr.msra.gmra.mrb[12].mxu0 %v3221_v51  ;;  %2769 = vmatprep.subr.bf16.mxu1 %v3505_v4  ;;  %vm1390_vm8 = vcmask 48128   ;;  %vm1410_vm9 = vcmask 277504   ;;  %vm1429_vm10 = vcmask 404480   ;;  %vm1941_vm14 = vcmask 3072  }
  0x50   :  { %2736 = vmatpush3.bf16.msra.mxu0 %v3511_v5  ;;  %625 = vmatprep.mubr.bf16.mxu0 %v3227_v52  ;;  %v3239_v62 = vld [vmem:[%s4349_s5 + $0x4] ss:$16 sps:$4 sm:$0xff]   ;;  %v3242_v0 = vld [vmem:[%s4349_s5 + $0xc] ss:$16 sps:$4 sm:$0xff]   ;;  %v3237_v1 = vld [vmem:[%s4349_s5] ss:$16 sps:$4 sm:$0xff]  }
  0x51   :  { %674 = vmatmul.mubr.bf16.vlgmr.msra.gmra.mrb[12].mxu1 %v3224_v53  ;;  %2737 = vmatprep.subr.bf16.mxu0 %v3523_v7  ;;  %v3243_v2 = vld [vmem:[%s4349_s5 + $0x24] ss:$16 sps:$4 sm:$0xff]   ;;  %v3240_v35 = vld [vmem:[%s4349_s5 + $0x8] ss:$16 sps:$4 sm:$0xff]   ;;  %v3245_v36 = vld [vmem:[%s4349_s5 + $0x2c] ss:$16 sps:$4 sm:$0xff]  }
  0x52   :  { %2770 = vmatpush3.bf16.msra.mxu1 %v3517_v6  ;;  %2518 = vmatprep.mubr.msk.bf16.mxu1 %vm389_vm1, %v3229_v54  ;;  %v710_v37 = vld [vmem:[%s4349_s5 + $0x40] sm:$0x33]  ;;  %v1198_v46 = vsel %vm1190_vm2, %v2565_v44, 0  ;;  %vm1950_vm15 = vcmask 7168  }
  0x53   :  { %2771 = vmatprep.subr.bf16.mxu1 %v3529_v8 }
  0x54   :  { %2738 = vmatpush3.bf16.msra.mxu0 %v3535_v9 }
  0x55   :  { %2739 = vmatprep.subr.bf16.mxu0 %v3547_v11 }
  0x56   :  { %2772 = vmatpush3.bf16.msra.mxu1 %v3541_v10 }
  0x57   :  { %626 = vmatmul.mubr.bf16.gmra.mrb[16].mxu0 %v3231_v56  ;;  %2773 = vmatprep.subr.bf16.mxu1 %v3553_v12 }
  0x58   :  { %2740 = vmatpush3.bf16.msra.mxu0 %v3559_v13  ;;  %633 = vmatprep.mubr.bf16.mxu0 %v2514_v58 }
  0x59   :  { %682 = vmatmul.mubr.bf16.gmra.mrb[16].mxu1 %v3232_v59  ;;  %2741 = vmatprep.subr.bf16.mxu0 %v3571_v15 }
  0x5a   :  { %2774 = vmatpush3.bf16.msra.mxu1 %v3565_v14  ;;  %2519 = vmatprep.mubr.msk.bf16.mxu1 %vm389_vm1, %v2516_v60 }
  0x5b   :  { %2775 = vmatprep.subr.bf16.mxu1 %v3577_v16 }
  0x5c   :  { %2742 = vmatpush3.bf16.msra.mxu0 %v3583_v17 }
  0x5d   :  { %2743 = vmatprep.subr.bf16.mxu0 %v3595_v19 }
  0x5e   :  { %2776 = vmatpush3.bf16.msra.mxu1 %v3589_v18 }
  0x5f   :  { %634 = vmatmul.mubr.bf16.gmra.mrb[20].mxu0 %v2513_v61  ;;  %2777 = vmatprep.subr.bf16.mxu1 %v3601_v20 }
  0x60   :  { %2744 = vmatpush3.bf16.msra.mxu0 %v3607_v21  ;;  %804 = vmatprep.mubr.bf16.mxu0 %v3239_v62 }
  0x61   :  { %690 = vmatmul.mubr.bf16.gmra.mrb[20].mxu1 %v2515_v63  ;;  %2745 = vmatprep.subr.bf16.mxu0 %v3619_v23 }
  0x62   :  { %2778 = vmatpush3.bf16.msra.mxu1 %v3613_v22  ;;  %2532 = vmatprep.mubr.msk.bf16.mxu1 %vm389_vm1, %v3242_v0 }
  0x63   :  { %2779 = vmatprep.subr.bf16.mxu1 %v3625_v24 }
  0x64   :  { %2746 = vmatpush3.bf16.msra.mxu0 %v3631_v25 }
  0x65   :  { %2747 = vmatprep.subr.bf16.mxu0 %v3643_v27 }
  0x66   :  { %2780 = vmatpush3.bf16.msra.mxu1 %v3637_v26 }
  0x67   :  { %2781 = vmatprep.subr.bf16.mxu1 %v3649_v28 }
  0x68   :  { %2748 = vmatpush3.bf16.msra.mxu0 %v3655_v29 }
  0x69   :  { %2749 = vmatprep.subr.bf16.mxu0 %v3667_v31 }
  0x6a   :  { %2782 = vmatpush3.bf16.msra.mxu1 %v3661_v30 }
  0x6b   :  { %3148 = vmatprep.subr.msk.bf16.mxu1 %vm399_vm0, %v3673_v32 }
  0x6c   :  { %2750 = vmatpush3.bf16.msra.mxu0 %v3678_v33 }
  0x6d   :  { %2803 = vmatprep.subr.bf16.mxu0 %v3500_v3  ;;  %v3247_v3 = vld [vmem:[%s4349_s5 + $0x20] ss:$16 sps:$4 sm:$0xff]  }
  0x6e   :  { %2784 = vmatpush3.bf16.msra.mxu1 %v3686_v34 }
  0x6f   :  { %805 = vmatmul.mubr.bf16.vlgmr.msra.gmra.mrb[24].mxu0 %v3237_v1  ;;  %2837 = vmatprep.subr.bf16.mxu1 %v3505_v4  ;;  %v711_v4 = vld [vmem:[%s4349_s5 + $0x48] sm:$0x33] }
  0x70   :  { %2804 = vmatpush3.bf16.msra.mxu0 %v3511_v5  ;;  %812 = vmatprep.mubr.bf16.mxu0 %v3243_v2  ;;  %v2529_v5 = vcombine.high %v710_v37, %v710_v37 }
  0x71   :  { %861 = vmatmul.mubr.bf16.vlgmr.msra.gmra.mrb[24].mxu1 %v3240_v35  ;;  %2805 = vmatprep.subr.bf16.mxu0 %v3523_v7  ;;  %v2531_v7 = vcombine.high %v711_v4, %v711_v4 }
  0x72   :  { %2838 = vmatpush3.bf16.msra.mxu1 %v3517_v6  ;;  %2533 = vmatprep.mubr.msk.bf16.mxu1 %vm389_vm1, %v3245_v36  ;;  %v3248_v6 = vld [vmem:[%s4349_s5 + $0x28] ss:$16 sps:$4 sm:$0xff]  }
  0x73   :  { %2839 = vmatprep.subr.bf16.mxu1 %v3529_v8  ;;  %v2528_v8 = vcombine.low %v710_v37, %v710_v37 }
  0x74   :  { %2806 = vmatpush3.bf16.msra.mxu0 %v3535_v9  ;;  %v3255_v9 = vld [vmem:[%s4350_s15 + $0x4] ss:$16 sps:$4 sm:$0xff]  }
  0x75   :  { %2807 = vmatprep.subr.bf16.mxu0 %v3547_v11  ;;  %v3258_v11 = vld [vmem:[%s4350_s15 + $0xc] ss:$16 sps:$4 sm:$0xff]  }
  0x76   :  { %2840 = vmatpush3.bf16.msra.mxu1 %v3541_v10  ;;  %v2530_v10 = vcombine.low %v711_v4, %v711_v4 }
  0x77   :  { %2841 = vmatprep.subr.bf16.mxu1 %v3553_v12  ;;  %813 = vmatmul.mubr.bf16.gmra.mrb[28].mxu0 %v3247_v3  ;;  %v3253_v12 = vld [vmem:[%s4350_s15] ss:$16 sps:$4 sm:$0xff]  }
  0x78   :  { %2808 = vmatpush3.bf16.msra.mxu0 %v3559_v13  ;;  %820 = vmatprep.mubr.bf16.mxu0 %v2529_v5  ;;  %v3259_v13 = vld [vmem:[%s4350_s15 + $0x24] ss:$16 sps:$4 sm:$0xff]  }
  0x79   :  { %2809 = vmatprep.subr.bf16.mxu0 %v3571_v15  ;;  %869 = vmatmul.mubr.bf16.gmra.mrb[28].mxu1 %v3248_v6  ;;  %v3261_v15 = vld [vmem:[%s4350_s15 + $0x2c] ss:$16 sps:$4 sm:$0xff]  }
  0x7a   :  { %2842 = vmatpush3.bf16.msra.mxu1 %v3565_v14  ;;  %2534 = vmatprep.mubr.msk.bf16.mxu1 %vm389_vm1, %v2531_v7  ;;  %v3256_v14 = vld [vmem:[%s4350_s15 + $0x8] ss:$16 sps:$4 sm:$0xff]  }
  0x7b   :  { %2843 = vmatprep.subr.bf16.mxu1 %v3577_v16  ;;  %v892_v16 = vld [vmem:[%s4350_s15 + $0x40] sm:$0x33] }
  0x7c   :  { %2810 = vmatpush3.bf16.msra.mxu0 %v3583_v17  ;;  %v3263_v17 = vld [vmem:[%s4350_s15 + $0x20] ss:$16 sps:$4 sm:$0xff]  }
  0x7d   :  { %2811 = vmatprep.subr.bf16.mxu0 %v3595_v19  ;;  %v2544_v19 = vcombine.high %v892_v16, %v892_v16 }
  0x7e   :  { %2844 = vmatpush3.bf16.msra.mxu1 %v3589_v18  ;;  %v893_v18 = vld [vmem:[%s4350_s15 + $0x48] sm:$0x33] }
  0x7f   :  { %2845 = vmatprep.subr.bf16.mxu1 %v3601_v20  ;;  %821 = vmatmul.mubr.bf16.gmra.mrb[32].mxu0 %v2528_v8  ;;  %v3264_v20 = vld [vmem:[%s4350_s15 + $0x28] ss:$16 sps:$4 sm:$0xff]  }
  0x80   :  { %2812 = vmatpush3.bf16.msra.mxu0 %v3607_v21  ;;  %986 = vmatprep.mubr.bf16.mxu0 %v3255_v9  ;;  %v2546_v21 = vcombine.high %v893_v18, %v893_v18 }
  0x81   :  { %2813 = vmatprep.subr.bf16.mxu0 %v3619_v23  ;;  %877 = vmatmul.mubr.bf16.gmra.mrb[32].mxu1 %v2530_v10  ;;  %v2545_v23 = vcombine.low %v893_v18, %v893_v18 }
  0x82   :  { %2846 = vmatpush3.bf16.msra.mxu1 %v3613_v22  ;;  %2547 = vmatprep.mubr.msk.bf16.mxu1 %vm389_vm1, %v3258_v11  ;;  %v2543_v22 = vcombine.low %v892_v16, %v892_v16 }
  0x83   :  { %2847 = vmatprep.subr.bf16.mxu1 %v3625_v24  ;;  %v3269_v24 = vld [vmem:[%s4319_s6] ss:$16 sps:$4 sm:$0xff]  }
  0x84   :  { %2814 = vmatpush3.bf16.msra.mxu0 %v3631_v25  ;;  %v3271_v25 = vld [vmem:[%s4319_s6 + $0x4] ss:$16 sps:$4 sm:$0xff]  }
  0x85   :  { %2815 = vmatprep.subr.bf16.mxu0 %v3643_v27  ;;  %v3274_v27 = vld [vmem:[%s4319_s6 + $0xc] ss:$16 sps:$4 sm:$0xff]  }
  0x86   :  { %2848 = vmatpush3.bf16.msra.mxu1 %v3637_v26  ;;  %v3272_v26 = vld [vmem:[%s4319_s6 + $0x8] ss:$16 sps:$4 sm:$0xff]  }
  0x87   :  { %2849 = vmatprep.subr.bf16.mxu1 %v3649_v28  ;;  %v3277_v28 = vld [vmem:[%s4319_s6 + $0x24] ss:$16 sps:$4 sm:$0xff]  }
  0x88   :  { %2816 = vmatpush3.bf16.msra.mxu0 %v3655_v29  ;;  %v3275_v29 = vld [vmem:[%s4319_s6 + $0x20] ss:$16 sps:$4 sm:$0xff]  }
  0x89   :  { %2817 = vmatprep.subr.bf16.mxu0 %v3667_v31  ;;  %v3280_v31 = vld [vmem:[%s4319_s6 + $0x2c] ss:$16 sps:$4 sm:$0xff]  }
  0x8a   :  { %2850 = vmatpush3.bf16.msra.mxu1 %v3661_v30  ;;  %v3278_v30 = vld [vmem:[%s4319_s6 + $0x28] ss:$16 sps:$4 sm:$0xff]  }
  0x8b   :  { %3149 = vmatprep.subr.msk.bf16.mxu1 %vm399_vm0, %v3673_v32  ;;  %v3283_v32 = vld [vmem:[%s4319_s6 + $0x44] ss:$16 sps:$4 sm:$0xff]  }
  0x8c   :  { %2818 = vmatpush3.bf16.msra.mxu0 %v3678_v33  ;;  %v3286_v33 = vld [vmem:[%s4319_s6 + $0x4c] ss:$16 sps:$4 sm:$0xff]  }
  0x8d   :  { %1203 = vmatprep.subr.bf16.mxu0 %v3271_v25 }
  0x8e   :  { %2852 = vmatpush3.bf16.msra.mxu1 %v3686_v34  ;;  %v3281_v34 = vld [vmem:[%s4319_s6 + $0x40] ss:$16 sps:$4 sm:$0xff]  }
  0x8f   :  { %987 = vmatmul.mubr.bf16.vlgmr.msra.gmra.mrb[36].mxu0 %v3253_v12  ;;  %1264 = vmatprep.subr.bf16.mxu1 %v3274_v27 }
  0x90   :  { %994 = vmatprep.mubr.bf16.mxu0 %v3259_v13  ;;  %1204 = vmatpush1.bf16.msra.mxu0 %v3269_v24 }
  0x91   :  { %1043 = vmatmul.mubr.bf16.vlgmr.msra.gmra.mrb[36].mxu1 %v3256_v14  ;;  %1205 = vmatprep.subr.bf16.mxu0 %v3277_v28 }
  0x92   :  { %2548 = vmatprep.mubr.msk.bf16.mxu1 %vm389_vm1, %v3261_v15  ;;  %1265 = vmatpush1.bf16.msra.mxu1 %v3272_v26 }
  0x93   :  { %1266 = vmatprep.subr.bf16.mxu1 %v3280_v31 }
  0x94   :  { %1206 = vmatpush1.bf16.msra.mxu0 %v3275_v29 }
  0x95   :  { %1207 = vmatprep.subr.bf16.mxu0 %v3283_v32 }
  0x96   :  { %1267 = vmatpush1.bf16.msra.mxu1 %v3278_v30 }
  0x97   :  { %995 = vmatmul.mubr.bf16.gmra.mrb[40].mxu0 %v3263_v17  ;;  %1268 = vmatprep.subr.bf16.mxu1 %v3286_v33 }
  0x98   :  { %1002 = vmatprep.mubr.bf16.mxu0 %v2544_v19  ;;  %1208 = vmatpush1.bf16.msra.mxu0 %v3281_v34 }
  0x99   :  { %1051 = vmatmul.mubr.bf16.gmra.mrb[40].mxu1 %v3264_v20  ;;  %2567 = vmatprep.subr.msk.bf16.mxu0 %vm1190_vm2, %v2564_v41 }
  0x9a   :  { %2549 = vmatprep.mubr.msk.bf16.mxu1 %vm389_vm1, %v2546_v21  ;;  %1269 = vmatpush1.bf16.msra.mxu1 %v3284_v38 }
  0x9b   :  { %2571 = vmatprep.subr.msk.bf16.mxu1 %vm1190_vm2, %v2566_v43 }
  0x9c   :  { %1210 = vmatpush1.bf16.msra.mxu0 %v1192_v45 }
  0x9e   :  { %1271 = vmatpush1.bf16.msra.mxu1 %v1198_v46 }
  0x9f   :  { %1003 = vmatmul.mubr.bf16.gmra.mrb[44].mxu0 %v2543_v22 }
  0xa0   :  { %1235 = vmatprep.mubr.bf16.mxu0 %v3363_v47 }
  0xa1   :  { %1059 = vmatmul.mubr.bf16.gmra.mrb[44].mxu1 %v2545_v23 }
  0xa2   :  { %1296 = vmatprep.mubr.bf16.mxu1 %v3363_v47 }
 0x102   :  { %v2615_v48 = vpop.f32.mrb[0].mxu0 }
 0x103   :  { %v2616_v49 = vpop.f32.mrb[1].mxu0  ;;  %v2649_v50 = vpop.f32.mrb[0].mxu1 }
 0x104   :  { %v2617_v51 = vadd.f32 %v2616_v49, %v2615_v48  ;;  %v2618_v52 = vpop.f32.mrb[2].mxu0  ;;  %v2650_v53 = vpop.f32.mrb[1].mxu1 }
 0x105   :  { %v2619_v54 = vpop.f32.mrb[3].mxu0  ;;  %v2651_v55 = vadd.f32 %v2650_v53, %v2649_v50  ;;  %v2652_v56 = vpop.f32.mrb[2].mxu1 }
 0x106   :  { %v2620_v57 = vadd.f32 %v2619_v54, %v2618_v52  ;;  %v2653_v58 = vpop.f32.mrb[3].mxu1 }
 0x107   :  { %v3971_v59 = vadd.f32 %v2651_v55, %v2617_v51  ;;  %v2654_v60 = vadd.f32 %v2653_v58, %v2652_v56 }
 0x109   :  { %v3973_v61 = vadd.f32 %v2654_v60, %v2620_v57 }
 0x10a   :  { %v2621_v62 = vpop.f32.mrb[4].mxu0 }
 0x10b   :  { %v2622_v63 = vpop.f32.mrb[5].mxu0 }
 0x10c   :  { %v2655_v0 = vpop.f32.mrb[4].mxu1  ;;  %v2623_v1 = vadd.f32 %v2622_v63, %v2621_v62  ;;  %v2624_v2 = vpop.f32.mrb[6].mxu0 }
 0x10d   :  { %v2656_v35 = vpop.f32.mrb[5].mxu1  ;;  %v2625_v36 = vpop.f32.mrb[7].mxu0 }
 0x10e   :  { %v2657_v37 = vadd.f32 %v2656_v35, %v2655_v0  ;;  %v2658_v3 = vpop.f32.mrb[6].mxu1  ;;  %v2626_v4 = vadd.f32 %v2625_v36, %v2624_v2 }
 0x10f   :  { %v2659_v5 = vpop.f32.mrb[7].mxu1 }
 0x110   :  { %v3975_v6 = vadd.f32 %v2657_v37, %v2623_v1  ;;  %v2660_v7 = vadd.f32 %v2659_v5, %v2658_v3 }
 0x112   :  { %v3977_v8 = vadd.f32 %v2660_v7, %v2626_v4  ;;  %v2627_v9 = vpop.f32.mrb[8].mxu0 }
 0x113   :  { %v2628_v10 = vpop.f32.mrb[9].mxu0 }
 0x114   :  { %v2661_v11 = vpop.f32.mrb[8].mxu1  ;;  %v2629_v12 = vadd.f32 %v2628_v10, %v2627_v9  ;;  %v2630_v13 = vpop.f32.mrb[10].mxu0 }
 0x115   :  { %v2662_v14 = vpop.f32.mrb[9].mxu1  ;;  %v2631_v15 = vpop.f32.mrb[11].mxu0 }
 0x116   :  { %v2663_v16 = vadd.f32 %v2662_v14, %v2661_v11  ;;  %v2664_v17 = vpop.f32.mrb[10].mxu1 }
 0x117   :  { %v2665_v18 = vpop.f32.mrb[11].mxu1 }
 0x118   :  { %v3979_v19 = vadd.f32 %v2663_v16, %v2629_v12 }
 0x122   :  { %v2683_v20 = vpop.f32.mrb[12].mxu0 }
 0x123   :  { %v2684_v21 = vpop.f32.mrb[13].mxu0 }
 0x124   :  { %v2717_v22 = vpop.f32.mrb[12].mxu1  ;;  %v2685_v23 = vadd.f32 %v2684_v21, %v2683_v20  ;;  %v2686_v24 = vpop.f32.mrb[14].mxu0 }
 0x125   :  { %v2718_v25 = vpop.f32.mrb[13].mxu1  ;;  %v2687_v26 = vpop.f32.mrb[15].mxu0 }
 0x126   :  { %v2719_v27 = vadd.f32 %v2718_v25, %v2717_v22  ;;  %v2720_v28 = vpop.f32.mrb[14].mxu1  ;;  %v2688_v29 = vadd.f32 %v2687_v26, %v2686_v24 }
 0x127   :  { %v2721_v30 = vpop.f32.mrb[15].mxu1 }
 0x128   :  { %v3981_v31 = vadd.f32 %v2719_v27, %v2685_v23  ;;  %v2722_v32 = vadd.f32 %v2721_v30, %v2720_v28 }
 0x12a   :  { %v697_v33 = vmax.f32 %v3971_v59, %v3981_v31  ;;  %v3985_v34 = vadd.f32 %v2722_v32, %v2688_v29  ;;  %v2689_v38 = vpop.f32.mrb[16].mxu0 }
 0x12b   :  { %v2690_v39 = vpop.f32.mrb[17].mxu0 }
 0x12c   :  { %v698_v40 = vmax.f32 %v3973_v61, %v3985_v34  ;;  %v2723_v41 = vpop.f32.mrb[16].mxu1  ;;  %v2691_v42 = vadd.f32 %v2690_v39, %v2689_v38  ;;  %v2692_v43 = vpop.f32.mrb[18].mxu0 }
 0x12d   :  { %v2724_v44 = vpop.f32.mrb[17].mxu1  ;;  %v2693_v45 = vpop.f32.mrb[19].mxu0 }
 0x12e   :  { %v2725_v46 = vadd.f32 %v2724_v44, %v2723_v41  ;;  %v2726_v48 = vpop.f32.mrb[18].mxu1  ;;  %v2694_v49 = vadd.f32 %v2693_v45, %v2692_v43 }
 0x12f   :  { %v2727_v50 = vpop.f32.mrb[19].mxu1 }
 0x130   :  { %v3989_v51 = vadd.f32 %v2725_v46, %v2691_v42  ;;  %v2728_v52 = vadd.f32 %v2727_v50, %v2726_v48 }
 0x132   :  { %v699_v53 = vmax.f32 %v3975_v6, %v3989_v51  ;;  %v3993_v54 = vadd.f32 %v2728_v52, %v2694_v49  ;;  %v2695_v55 = vpop.f32.mrb[20].mxu0 }
 0x133   :  { %v2696_v56 = vpop.f32.mrb[21].mxu0 }
 0x134   :  { %v700_v57 = vmax.f32 %v3977_v8, %v3993_v54  ;;  %v2729_v58 = vpop.f32.mrb[20].mxu1  ;;  %v2697_v60 = vadd.f32 %v2696_v56, %v2695_v55  ;;  %v2698_v62 = vpop.f32.mrb[22].mxu0 }
 0x135   :  { %v2730_v63 = vpop.f32.mrb[21].mxu1  ;;  %v2699_v0 = vpop.f32.mrb[23].mxu0 }
 0x136   :  { %v2731_v1 = vadd.f32 %v2730_v63, %v2729_v58  ;;  %v2732_v2 = vpop.f32.mrb[22].mxu1 }
 0x137   :  { %v2733_v35 = vpop.f32.mrb[23].mxu1 }
 0x138   :  { %v3997_v36 = vadd.f32 %v2731_v1, %v2697_v60 }
 0x13a   :  { %v701_v37 = vmax.f32 %v3979_v19, %v3997_v36 }
 0x142   :  { %v2751_v3 = vpop.f32.mrb[24].mxu0 }
 0x143   :  { %v2752_v4 = vpop.f32.mrb[25].mxu0 }
 0x144   :  { %v2785_v5 = vpop.f32.mrb[24].mxu1  ;;  %v2753_v7 = vadd.f32 %v2752_v4, %v2751_v3  ;;  %v2754_v9 = vpop.f32.mrb[26].mxu0 }
 0x145   :  { %v2786_v10 = vpop.f32.mrb[25].mxu1  ;;  %v2755_v11 = vpop.f32.mrb[27].mxu0 }
 0x146   :  { %v2787_v12 = vadd.f32 %v2786_v10, %v2785_v5  ;;  %v2788_v13 = vpop.f32.mrb[26].mxu1  ;;  %v2756_v14 = vadd.f32 %v2755_v11, %v2754_v9 }
 0x147   :  { %v2789_v15 = vpop.f32.mrb[27].mxu1 }
 0x148   :  { %v863_v16 = vadd.f32 %v2787_v12, %v2753_v7  ;;  %v2790_v17 = vadd.f32 %v2789_v15, %v2788_v13  ;;  %v2550_v12 = vld [vmem:[%s4351_s30] ss:$0 sm:$0xff]  ;;  %s3369_s30 = smov 84  }
 0x14a   :  { %v866_v18 = vadd.f32 %v2790_v17, %v2756_v14  ;;  %v2757_v20 = vpop.f32.mrb[28].mxu0 }
 0x14b   :  { %v2758_v21 = vpop.f32.mrb[29].mxu0 }
 0x14c   :  { %v2791_v22 = vpop.f32.mrb[28].mxu1  ;;  %v2759_v23 = vadd.f32 %v2758_v21, %v2757_v20  ;;  %v2760_v24 = vpop.f32.mrb[30].mxu0 }
 0x14d   :  { %v2792_v25 = vpop.f32.mrb[29].mxu1  ;;  %v2761_v26 = vpop.f32.mrb[31].mxu0 }
 0x14e   :  { %v2793_v27 = vadd.f32 %v2792_v25, %v2791_v22  ;;  %v2794_v28 = vpop.f32.mrb[30].mxu1  ;;  %v2762_v29 = vadd.f32 %v2761_v26, %v2760_v24 }
 0x14f   :  { %v2795_v30 = vpop.f32.mrb[31].mxu1 }
 0x150   :  { %v871_v32 = vadd.f32 %v2793_v27, %v2759_v23  ;;  %v2796_v38 = vadd.f32 %v2795_v30, %v2794_v28 }
 0x152   :  { %v4001_v39 = vadd.f32 %v2796_v38, %v2762_v29  ;;  %v2763_v41 = vpop.f32.mrb[32].mxu0 }
 0x153   :  { %v2764_v42 = vpop.f32.mrb[33].mxu0 }
 0x154   :  { %v2797_v43 = vpop.f32.mrb[32].mxu1  ;;  %v2765_v44 = vadd.f32 %v2764_v42, %v2763_v41  ;;  %v2766_v45 = vpop.f32.mrb[34].mxu0 }
 0x155   :  { %v2798_v46 = vpop.f32.mrb[33].mxu1  ;;  %v2767_v48 = vpop.f32.mrb[35].mxu0 }
 0x156   :  { %v2799_v49 = vadd.f32 %v2798_v46, %v2797_v43  ;;  %v2800_v50 = vpop.f32.mrb[34].mxu1 }
 0x157   :  { %v2801_v52 = vpop.f32.mrb[35].mxu1 }
 0x158   :  { %v4003_v55 = vadd.f32 %v2799_v49, %v2765_v44 }
 0x162   :  { %v2819_v56 = vpop.f32.mrb[36].mxu0 }
 0x163   :  { %v2820_v58 = vpop.f32.mrb[37].mxu0 }
 0x164   :  { %v2853_v60 = vpop.f32.mrb[36].mxu1  ;;  %v2821_v62 = vadd.f32 %v2820_v58, %v2819_v56  ;;  %v2822_v63 = vpop.f32.mrb[38].mxu0 }
 0x165   :  { %v2854_v0 = vpop.f32.mrb[37].mxu1  ;;  %v2823_v1 = vpop.f32.mrb[39].mxu0 }
 0x166   :  { %v2855_v2 = vadd.f32 %v2854_v0, %v2853_v60  ;;  %v2856_v35 = vpop.f32.mrb[38].mxu1  ;;  %v2824_v3 = vadd.f32 %v2823_v1, %v2822_v63 }
 0x167   :  { %v2857_v4 = vpop.f32.mrb[39].mxu1 }
 0x168   :  { %v1045_v5 = vadd.f32 %v2855_v2, %v2821_v62  ;;  %v2858_v7 = vadd.f32 %v2857_v4, %v2856_v35  ;;  %v3364_v4 = vmov 0.0|0.0  }
 0x169   :  { %3085 = vmatprep.subr.bf16.mxu1 %v3364_v4  ;;  %3076 = vmatprep.subr.bf16.mxu0 %v3364_v4 }
 0x16a   :  { %v1066_v9 = vmax.f32 %v863_v16, %v1045_v5  ;;  %v1048_v10 = vadd.f32 %v2858_v7, %v2824_v3  ;;  %v2825_v11 = vpop.f32.mrb[40].mxu0 }
 0x16b   :  { %v2826_v13 = vpop.f32.mrb[41].mxu0 }
 0x16c   :  { %v1071_v14 = vmax.f32 %v697_v33, %v1066_v9  ;;  %v1067_v15 = vmax.f32 %v866_v18, %v1048_v10  ;;  %v2859_v17 = vpop.f32.mrb[40].mxu1  ;;  %v2827_v20 = vadd.f32 %v2826_v13, %v2825_v11  ;;  %v2828_v21 = vpop.f32.mrb[42].mxu0  ;;  %v1521_v10 = vld [vmem:[%s4322_s9] sm:$0xff]  ;;  %v1522_v11 = vld [vmem:[%s4322_s9 + $0x8] sm:$0xff] }
 0x16d   :  { %v2860_v22 = vpop.f32.mrb[41].mxu1  ;;  %v2829_v23 = vpop.f32.mrb[43].mxu0 }
 0x16e   :  { %v1083_v24 = vadd.f32 %v2550_v12, %v1071_v14  ;;  %v1072_v16 = vmax.f32 %v698_v40, %v1067_v15  ;;  %v2861_v25 = vadd.f32 %v2860_v22, %v2859_v17  ;;  %v2862_v26 = vpop.f32.mrb[42].mxu1  ;;  %v2830_v27 = vadd.f32 %v2829_v23, %v2828_v21  ;;  %v1523_v22 = vld [vmem:[%s4322_s9 + $0x10] sm:$0xff]  ;;  %v1524_v23 = vld [vmem:[%s4322_s9 + $0x18] sm:$0xff] }
 0x16f   :  { %v2863_v28 = vpop.f32.mrb[43].mxu1  ;;  %v4043_v14 = vpack.c.bf16 %v1522_v11, %v1521_v10 }
 0x170   :  { %v1084_v29 = vadd.f32 %v2550_v12, %v1072_v16  ;;  %v1053_v30 = vadd.f32 %v2861_v25, %v2827_v20  ;;  %v2864_v38 = vadd.f32 %v2863_v28, %v2862_v26  ;;  %v1088_v59 = vmax.f32 %v1083_v24, 0.0  ;;  %v1438_v26 = vld [vmem:[%s4321_s8] sm:$0xff] }
 0x171   :  { %v4054_v24 = vpack.c.bf16 %v1524_v23, %v1523_v22  ;;  %v1700_v23 = vld [vmem:[%s4325_s12] sm:$0xff] }
 0x172   :  { %v1089_v31 = vmax.f32 %v1084_v29, 0.0  ;;  %v1068_v33 = vmax.f32 %v871_v32, %v1053_v30  ;;  %v1056_v18 = vadd.f32 %v2864_v38, %v2830_v27  ;;  %v2831_v41 = vpop.f32.mrb[44].mxu0  ;;  %v1439_v27 = vld [vmem:[%s4321_s8 + $0x8] sm:$0xff] }
 0x173   :  { %v2832_v42 = vpop.f32.mrb[45].mxu0  ;;  %v4063_v30 = vpack.c.bf16 %v1439_v27, %v1438_v26 }
 0x174   :  { %v1093_v43 = vpack.c.bf16 %v1089_v31, %v1088_v59  ;;  %v1073_v61 = vmax.f32 %v699_v53, %v1068_v33  ;;  %v1069_v34 = vmax.f32 %v4001_v39, %v1056_v18  ;;  %v2865_v40 = vpop.f32.mrb[44].mxu1  ;;  %v2833_v44 = vadd.f32 %v2832_v42, %v2831_v41  ;;  %v2834_v45 = vpop.f32.mrb[46].mxu0 }
 0x175   :  { %v2866_v46 = vpop.f32.mrb[45].mxu1  ;;  %v2835_v48 = vpop.f32.mrb[47].mxu0 }
 0x176   :  { %v1085_v49 = vadd.f32 %v2550_v12, %v1073_v61  ;;  %v1074_v32 = vmax.f32 %v700_v57, %v1069_v34  ;;  %v2867_v50 = vadd.f32 %v2866_v46, %v2865_v40  ;;  %2568 = vmatmul.mubr.msk.bf16.vlgmr.msra.gmra.mrb[48].mxu0 %vm1180_vm3, %v1093_v43  ;;  %2572 = vmatmul.mubr.msk.bf16.vlgmr.msra.gmra.mrb[48].mxu1 %vm1180_vm3, %v1093_v43  ;;  %v2868_v52 = vpop.f32.mrb[46].mxu1  ;;  %v1525_v40 = vld [vmem:[%s4322_s9 + $0x20] sm:$0xff] }
 0x177   :  { %v2869_v6 = vpop.f32.mrb[47].mxu1  ;;  %1245 = vmatprep.mubr.bf16.mxu0 %v3363_v47  ;;  %1306 = vmatprep.mubr.bf16.mxu1 %v3363_v47  ;;  %v4081_v52 = vld [vmem:[%s4322_s9 + $0x30] sm:$0x3] }
 0x178   :  { %v1086_v51 = vadd.f32 %v2550_v12, %v1074_v32  ;;  %v1061_v53 = vadd.f32 %v2867_v50, %v2833_v44  ;;  %v1090_v39 = vmax.f32 %v1085_v49, 0.0  ;;  %3087 = vmatpush3.bf16.msra.mxu1 %v4043_v14  ;;  %3078 = vmatpush3.bf16.msra.mxu0 %v4063_v30  ;;  %v1526_v44 = vld [vmem:[%s4322_s9 + $0x28] sm:$0xff]  ;;  %v3371_v50 = vmov 0.0   ;;  %s3374_s9 = smov 112  }
 0x179   :  { %3088 = vmatprep.subr.bf16.mxu1 %v3364_v4  ;;  %3079 = vmatprep.subr.bf16.mxu0 %v3364_v4  ;;  %v4074_v46 = vpack.c.bf16 %v1526_v44, %v1525_v40  ;;  %v1620_v40 = vld [vmem:[%s4324_s11] sm:$0xff]  ;;  %v1621_v44 = vld [vmem:[%s4324_s11 + $0x8] sm:$0xff] }
 0x17a   :  { %v1091_v56 = vmax.f32 %v1086_v51, 0.0  ;;  %v1070_v58 = vmax.f32 %v4003_v55, %v1061_v53  ;;  %v1440_v53 = vld [vmem:[%s4321_s8 + $0x10] sm:$0xff] }
 0x17c   :  { %v1075_v8 = vmax.f32 %v701_v37, %v1070_v58  ;;  %v1094_v54 = vpack.c.bf16 %v1091_v56, %v1090_v39  ;;  %3090 = vmatpush3.bf16.msra.mxu1 %v4054_v24  ;;  %v1441_v39 = vld [vmem:[%s4321_s8 + $0x18] sm:$0xff] }
 0x17d   :  { %3091 = vmatprep.subr.bf16.mxu1 %v3364_v4  ;;  %v4095_v56 = vpack.c.bf16 %v1441_v39, %v1440_v53  ;;  %v1624_v39 = vld [vmem:[%s4324_s11 + $0x20] sm:$0xff] }
 0x17e   :  { %2569 = vmatmul.mubr.msk.bf16.gmra.mrb[52].mxu0 %vm1180_vm3, %v1094_v54  ;;  %2573 = vmatmul.mubr.msk.bf16.gmra.mrb[52].mxu1 %vm1180_vm3, %v1094_v54  ;;  %v1087_v57 = vadd.f32 %v2550_v12, %v1075_v8  ;;  %v1442_v8 = vld [vmem:[%s4321_s8 + $0x20] sm:$0xff]  ;;  %v1443_v54 = vld [vmem:[%s4321_s8 + $0x28] sm:$0xff] }
 0x17f   :  { %1255 = vmatprep.mubr.bf16.mxu0 %v3363_v47  ;;  %1316 = vmatprep.mubr.bf16.mxu1 %v3363_v47 }
 0x180   :  { %v1092_v60 = vmax.f32 %v1087_v57, 0.0  ;;  %3093 = vmatpush3.bf16.msra.mxu1 %v4074_v46  ;;  %3081 = vmatpush3.bf16.msra.mxu0 %v4095_v56  ;;  %v4106_v57 = vpack.c.bf16 %v1443_v54, %v1442_v8  ;;  %v1626_v54 = vld [vmem:[%s4324_s11 + $0x30] sm:$0x3] }
 0x181   :  { %2965 = vmatprep.subr.mxu1 %v3371_v50  ;;  %3082 = vmatprep.subr.bf16.mxu0 %v3364_v4 }
 0x182   :  { %v1095_v62 = vpack.c.bf16 %v1092_v60, %v1092_v60  ;;  %v4113_v60 = vld [vmem:[%s4321_s8 + $0x30] sm:$0x3] }
 0x184   :  { %2966 = vmatpush3.msk.msra.mxu1 %vm399_vm0, %v4081_v52  ;;  %3084 = vmatpush3.bf16.msra.mxu0 %v4106_v57 }
 0x185   :  { %3103 = vmatprep.subr.bf16.mxu1 %v3364_v4  ;;  %2948 = vmatprep.subr.mxu0 %v3371_v50 }
 0x186   :  { %2570 = vmatmul.mubr.msk.bf16.gmra.mrb[56].mxu0 %vm1180_vm3, %v1095_v62  ;;  %2574 = vmatmul.mubr.msk.bf16.gmra.mrb[56].mxu1 %vm1180_vm3, %v1095_v62 }
 0x187   :  { %2967 = vmatprep.mubr.msk.f32.mxu1 %vm3372_vm6, %v3371_v50  ;;  %2950 = vmatprep.mubr.msk.f32.mxu0 %vm3372_vm6, %v3371_v50 }
 0x188   :  { %2949 = vmatpush3.msk.msra.mxu0 %vm399_vm0, %v4113_v60 }
 0x189   :  { %3094 = vmatprep.subr.bf16.mxu0 %v3364_v4 }
 0x249   :  { %v1237_v55 = vpop.f32.mrb[48].mxu0  ;;  %v1298_v19 = vpop.f32.mrb[48].mxu1 }
 0x24a   :  { %1325 = vst [vmem:[#allocation2] sm:$0xff] %v1237_v55  ;;  %v1239_v36 = vpop.f32.mrb[49].mxu0  ;;  %v1300_v37 = vpop.f32.mrb[49].mxu1 }
 0x24b   :  { %v1241_v63 = vpop.f32.mrb[50].mxu0  ;;  %v1302_v0 = vpop.f32.mrb[50].mxu1 }
 0x24c   :  { %1330 = vst [vmem:[#allocation2 + $0x20] sm:$0xff] %v1241_v63  ;;  %v1243_v1 = vpop.f32.mrb[51].mxu0  ;;  %v1304_v2 = vpop.f32.mrb[51].mxu1 }
 0x24d   :  { %1331 = vst [vmem:[#allocation2 + $0x28] sm:$0xff] %v1243_v1 }
 0x251   :  { %v1247_v35 = vpop.f32.mrb[52].mxu0  ;;  %v1308_v47 = vpop.f32.mrb[52].mxu1  ;;  %v1348_v3 = vld [vmem:[#allocation2] sm:$0xf0]  ;;  %v1347_v19 = vld [vmem:[#allocation2] sm:$0xf] }
 0x252   :  { %1336 = vst [vmem:[#allocation2 + $0x50] sm:$0xff] %v1308_v47  ;;  %v1249_v5 = vpop.f32.mrb[53].mxu0  ;;  %v1310_v7 = vpop.f32.mrb[53].mxu1  ;;  %v1350_v9 = vrot.slane %v1348_v3, 4 }
 0x253   :  { %1335 = vst [vmem:[#allocation2 + $0x48] sm:$0xff] %v1249_v5  ;;  %v1251_v12 = vpop.f32.mrb[54].mxu0  ;;  %v1312_v13 = vpop.f32.mrb[54].mxu1  ;;  %v1355_v16 = vld [vmem:[#allocation2 + $0x20] sm:$0xf] }
 0x254   :  { %1340 = vst [vmem:[#allocation2 + $0x70] sm:$0xff] %v1312_v13  ;;  %v1314_v15 = vpop.f32.mrb[55].mxu1  ;;  %1351 = vrot.lane.b32.xlu0 %v1350_v9, %s3365_s14  ;;  %v1253_v17 = vpop.f32.mrb[55].mxu0  ;;  %v1356_v20 = vld [vmem:[#allocation2 + $0x28] sm:$0xf] }
 0x255   :  { %v1367_v21 = vld [vmem:[#allocation2 + $0x28] sm:$0xf0]  ;;  %1341 = vst.msk [vmem:[#allocation2 + $0x78] sm:$0xff] %vm1328_vm4, %v1314_v15  ;;  %1361 = vrot.lane.b32.xlu1 %v1356_v20, %s3366_s22  ;;  %v2575_v20 = vld [vmem:[%s4320_s7] ss:$0 sm:$0xff]  ;;  %vm2208_vm4 = vcmask 401408  }
 0x256   :  { %v1369_v25 = vrot.slane %v1367_v21, 4 }
 0x258   :  { %1359 = vrot.lane.b32.xlu0 %v1355_v16, %s3366_s22  ;;  %s3373_s22 = smov 34   ;;  %v1701_v16 = vld [vmem:[%s4325_s12 + $0x8] sm:$0xff] }
 0x259   :  { %v1318_v28 = vpop.f32.mrb[56].mxu1  ;;  %1370 = vrot.lane.b32.xlu1 %v1369_v25, %s3367_s28  ;;  %v1257_v29 = vpop.f32.mrb[56].mxu0  ;;  %v1381_v42 = vld [vmem:[#allocation2 + $0x50] sm:$0xf0]  ;;  %v3104_v26 = vpack.c.bf16 %v1701_v16, %v1700_v23 }
 0x25a   :  { %v1259_v38 = vpop.f32.mrb[57].mxu0  ;;  %v1320_v59 = vpop.f32.mrb[57].mxu1  ;;  %v1374_v31 = vld [vmem:[#allocation2 + $0x48] sm:$0xf]  ;;  %v1380_v34 = vld [vmem:[#allocation2 + $0x48] sm:$0xf0] }
 0x25b   :  { %1346 = vst.msk [vmem:[#allocation2 + $0x98] sm:$0xf] %vm1345_vm5, %v1320_v59  ;;  %v1261_v33 = vpop.f32.mrb[58].mxu0  ;;  %v1322_v18 = vpop.f32.mrb[58].mxu1  ;;  %v1394_v41 = vld [vmem:[#allocation2 + $0x70] sm:$0xf] }
 0x25c   :  { %v1323_v43 = vpop.f32.mrb[59].mxu1  ;;  %1376 = vrot.lane.b32.xlu0 %v1374_v31, %s3368_s3  ;;  %v1262_v61 = vpop.f32.mrb[59].mxu0  ;;  %v1385_v45 = vrot.slane %v1381_v42, 4  ;;  %v1384_v48 = vrot.slane %v1380_v34, 4  ;;  %v1400_v49 = vld [vmem:[#allocation2 + $0x70] sm:$0xf0] }
 0x25d   :  { %1396 = vrot.lane.b32.xlu1 %v1394_v41, %s3369_s30  ;;  %v1401_v32 = vld [vmem:[#allocation2 + $0x78] sm:$0xf0]  ;;  %v1404_v6 = vrot.slane %v1400_v49, 4  ;;  %v1702_v28 = vld [vmem:[%s4325_s12 + $0x10] sm:$0xff]  ;;  %v1704_v33 = vld [vmem:[%s4325_s12 + $0x20] sm:$0xff]  ;;  %v3095_v49 = vpack.c.bf16 %v1621_v44, %v1620_v40 }
 0x25e   :  { %v1405_v51 = vrot.slane %v1401_v32, 4  ;;  %v1703_v29 = vld [vmem:[%s4325_s12 + $0x18] sm:$0xff]  ;;  %v1705_v18 = vld [vmem:[%s4325_s12 + $0x28] sm:$0xff] }
 0x25f   :  { %v3107_v31 = vpack.c.bf16 %v1703_v29, %v1702_v28  ;;  %v3110_v43 = vpack.c.bf16 %v1705_v18, %v1704_v33 }
 0x260   :  { %1388 = vrot.lane.b32.xlu0 %v1385_v45, %s3370_s13  ;;  %v1706_v45 = vld [vmem:[%s4325_s12 + $0x30] sm:$0x3] }
 0x261   :  { %1386 = vrot.lane.b32.xlu1 %v1384_v48, %s3370_s13 }
 0x262   :  { %v1414_v58 = vld [vmem:[#allocation2 + $0x98] sm:$0xf] }
 0x264   :  { %1406 = vrot.lane.b32.xlu0 %v1404_v6, %s3373_s22  ;;  %v1622_v6 = vld [vmem:[%s4324_s11 + $0x10] sm:$0xff] }
 0x265   :  { %1408 = vrot.lane.b32.xlu1 %v1405_v51, %s3373_s22  ;;  %v1623_v51 = vld [vmem:[%s4324_s11 + $0x18] sm:$0xff] }
 0x266   :  { %v3098_v53 = vpack.c.bf16 %v1623_v51, %v1622_v6 }
 0x268   :  { %1416 = vrot.lane.b32.xlu0 %v1414_v58, %s3374_s9  ;;  %v1625_v58 = vld [vmem:[%s4324_s11 + $0x28] sm:$0xff] }
 0x269   :  { %v3101_v8 = vpack.c.bf16 %v1625_v58, %v1624_v39 }
 0x2c6   :  { %v1352_v62 = vpop.permute.xlu0 %1351 }
 0x2c7   :  { %v1362_v55 = vpop.permute.xlu1 %1361  ;;  %v1354_v36 = vadd.f32 %v1352_v62, %v1347_v19 }
 0x2ca   :  { %v1360_v37 = vpop.permute.xlu0 %1359 }
 0x2cb   :  { %v1364_v63 = vsel %vm1363_vm7, %v1360_v37, %v1362_v55  ;;  %v1371_v0 = vpop.permute.xlu1 %1370  ;;  %v1604_v55 = vlaneseq  ;;  %vm2413_vm7 = vcmask 8192  }
 0x2cc   :  { %v1366_v1 = vadd.f32 %v1364_v63, %v1354_v36 }
 0x2cd   :  { %v1605_v19 = vshrl.u32 %v1604_v55, 7 }
 0x2ce   :  { %v1377_v2 = vpop.permute.xlu0 %1376  ;;  %v1373_v35 = vadd.f32 %v1371_v0, %v1366_v1 }
 0x2cf   :  { %v1397_v47 = vpop.permute.xlu1 %1396  ;;  %v1606_v36 = vsub.s32 0, %v1605_v19 }
 0x2d0   :  { %v1379_v5 = vadd.f32 %v1377_v2, %v1373_v35 }
 0x2d2   :  { %v1389_v3 = vpop.permute.xlu0 %1388 }
 0x2d3   :  { %v1387_v7 = vpop.permute.xlu1 %1386 }
 0x2d4   :  { %v1391_v9 = vsel %vm1390_vm8, %v1387_v7, %v1389_v3  ;;  %vm1901_vm8 = vcmask 27648  }
 0x2d5   :  { %v1393_v10 = vadd.f32 %v1391_v9, %v1379_v5 }
 0x2d6   :  { %v1407_v11 = vpop.permute.xlu0 %1406 }
 0x2d7   :  { %v1409_v12 = vpop.permute.xlu1 %1408  ;;  %v1399_v13 = vadd.f32 %v1397_v47, %v1393_v10 }
 0x2d8   :  { %v1411_v15 = vsel %vm1410_vm9, %v1407_v11, %v1409_v12  ;;  %v2584_v11 = vld [vmem:[#allocation3] ss:$0 sm:$0xff] }
 0x2d9   :  { %v1413_v17 = vadd.f32 %v1411_v15, %v1399_v13 }
 0x2da   :  { %v1417_v21 = vpop.permute.xlu0 %1416 }
 0x2db   :  { %v1419_v22 = vadd.f32 %v1417_v21, %v1413_v17  ;;  %v2585_v17 = vld [vmem:[#allocation4] ss:$0 sm:$0xff]  ;;  %v2586_v21 = vld [vmem:[#allocation5] ss:$0 sm:$0xff] }
 0x2dd   :  { %v1427_v25 = vadd.f32 %v2575_v20, %v1419_v22 }
 0x2df   :  { %v1428_v27 = vmax.f32 %v1427_v25, 0.0 }
 0x2e1   :  { %v1430_v38 = vsel %vm1429_vm10, %v1428_v27, 0.0  ;;  %2968 = vmatmul.mubr.msk.f32.vlgmr.msra.gmra.mrb[60].mxu1 %vm1180_vm3, %v1428_v27 }
 0x2e2   :  { %v1431_v59 = vrot.slane %v1430_v38, 4  ;;  %3105 = vmatpush3.bf16.msra.mxu1 %v3104_v26  ;;  %3001 = vmatprep.mubr.msk.f32.mxu1 %vm3372_vm6, %v3371_v50 }
 0x2e3   :  { %3106 = vmatprep.subr.bf16.mxu1 %v3364_v4 }
 0x2e4   :  { %v1432_v41 = vadd.f32 %v1431_v59, %v1430_v38 }
 0x2e6   :  { %v1433_v42 = vrot.slane %v1432_v41, 2  ;;  %3108 = vmatpush3.bf16.msra.mxu1 %v3107_v31 }
 0x2e7   :  { %3109 = vmatprep.subr.bf16.mxu1 %v3364_v4 }
 0x2e8   :  { %v1434_v61 = vadd.f32 %v1433_v42, %v1432_v41 }
 0x2ea   :  { %v1435_v34 = vrot.slane %v1434_v61, 1  ;;  %3111 = vmatpush3.bf16.msra.mxu1 %v3110_v43 }
 0x2eb   :  { %2999 = vmatprep.subr.mxu1 %v3371_v50 }
 0x2ec   :  { %v1436_v48 = vadd.f32 %v1435_v34, %v1434_v61 }
 0x2ee   :  { %v1437_v32 = vmul.f32 0.25, %v1436_v48  ;;  %3000 = vmatpush3.msk.msra.mxu1 %vm399_vm0, %v1706_v45 }
 0x2ef   :  { %3002 = vmatmul.mubr.msk.f32.vlgmr.msra.gmra.mrb[62].mxu1 %vm1180_vm3, %v1428_v27  ;;  %3004 = vmatprep.subr.mxu1 %v3371_v50 }
 0x2f0   :  { %2951 = vmatmul.mubr.msk.f32.vlgmr.msra.gmra.mrb[60].mxu0 %vm1180_vm3, %v1437_v32  ;;  %3006 = vmatprep.mubr.msk.f32.mxu1 %vm3372_vm6, %v3371_v50 }
 0x2f1   :  { %3096 = vmatpush3.bf16.msra.mxu0 %v3095_v49  ;;  %2984 = vmatprep.mubr.msk.f32.mxu0 %vm3372_vm6, %v3371_v50 }
 0x2f2   :  { %3097 = vmatprep.subr.bf16.mxu0 %v3364_v4 }
 0x2f5   :  { %3099 = vmatpush3.bf16.msra.mxu0 %v3098_v53 }
 0x2f6   :  { %3100 = vmatprep.subr.bf16.mxu0 %v3364_v4 }
 0x2f9   :  { %3102 = vmatpush3.bf16.msra.mxu0 %v3101_v8 }
 0x2fa   :  { %2982 = vmatprep.subr.mxu0 %v3371_v50 }
 0x2fd   :  { %2983 = vmatpush3.msk.msra.mxu0 %vm399_vm0, %v1626_v54 }
 0x2fe   :  { %2985 = vmatmul.mubr.msk.f32.vlgmr.msra.gmra.mrb[62].mxu0 %vm1180_vm3, %v1437_v32  ;;  %3112 = vmatprep.subr.bf16.mxu0 %v3364_v4 }
 0x2ff   :  { %3114 = vmatpush3.bf16.msra.mxu0 %v4043_v14  ;;  %3028 = vmatprep.mubr.msk.f32.mxu0 %vm3372_vm6, %v3371_v50 }
 0x300   :  { %3115 = vmatprep.subr.bf16.mxu0 %v3364_v4 }
 0x303   :  { %3117 = vmatpush3.bf16.msra.mxu0 %v4054_v24  ;;  %v4198_v24 = vld [vmem:[%s4323_s10] sm:$0x1]  ;;  %s3376_s10 = smov [#allocation8]  }
 0x304   :  { %3118 = vmatprep.subr.bf16.mxu0 %v3364_v4  ;;  %v1614_v1 = vrot.slane %v4198_v24, %v1606_v36  ;;  %s2446_s14 = sshll.u32 %s3376_s10, 4  ;;  %s2447_s14 = int_to_ptr.vmem [resolvable:$true] %s2446_s14 }
 0x305   :  { %s3315_s7 = scalar_lea.vmem %s2447_s14, 16  ;;  %s3319_s22 = scalar_lea.vmem %s2447_s14, 32 }
 0x306   :  { %p3316_p0 = scmp.ne.s32.totalorder %s2447_s14, %s3315_s7  ;;  %p3320_p1 = scmp.lt.s32.totalorder %s2447_s14, %s2447_s14 }
 0x307   :  { %3120 = vmatpush3.bf16.msra.mxu0 %v4074_v46  ;;  %p3321_p2 = scmp.lt.s32.totalorder %s3319_s22, %s3315_s7 }
 0x308   :  { %3026 = vmatprep.subr.mxu0 %v3371_v50 }
 0x309   :  { %p3322_p3 = por %p3321_p2, %p3320_p1 }
 0x30b   :  { %3027 = vmatpush3.msk.msra.mxu0 %vm399_vm0, %v4081_v52  ;;  %p3323_p4 = pnand %p3322_p3, %p3316_p0 }
 0x30c   :  { %3130 = vmatprep.subr.bf16.mxu0 %v3364_v4 }
 0x3b4   :  { %v1600_v62 = vpop.f32.mrb[60].mxu1 }
 0x3b5   :  { %v2969_v14 = vpop.f32.mrb[61].mxu1 }
 0x3c2   :  { %v1776_v37 = vpop.f32.mrb[62].mxu1 }
 0x3c3   :  { %v3003_v63 = vpop.f32.mrb[63].mxu1  ;;  %v1517_v46 = vpop.f32.mrb[60].mxu0 }
 0x3c4   :  { %v1607_v0 = vrot.slane %v1517_v46, %v1606_v36  ;;  %v2952_v2 = vpop.f32.mrb[61].mxu0 }
 0x3c6   :  { %v1608_v52 = vadd.f32 %v1607_v0, %v1600_v62  ;;  %v2243_v0 = vld [vmem:[%s4327_s16 + $0x10] sm:$0xff] }
 0x3c8   :  { %v1616_v35 = vadd.f32 %v1614_v1, %v1608_v52  ;;  %v2244_v1 = vld [vmem:[%s4327_s16 + $0x18] sm:$0xff]  ;;  %v2245_v52 = vld [vmem:[%s4327_s16 + $0x20] sm:$0xff] }
 0x3c9   :  { %v3134_v2 = vpack.c.bf16 %v2244_v1, %v2243_v0 }
 0x3ca   :  { %vm1617_vm11 = vcmp.gt.f32.partialorder %v1616_v35, 0.0  ;;  %v1618_v47 = vmul.f32 0.01, %v1616_v35 }
 0x3cc   :  { %v1619_v3 = vsel %vm1617_vm11, %v1616_v35, %v1618_v47  ;;  %v2246_v35 = vld [vmem:[%s4327_s16 + $0x28] sm:$0xff] }
 0x3cd   :  { %v1815_v5 = vsel %vm1429_vm10, %v1619_v3, -inf  ;;  %v3137_v47 = vpack.c.bf16 %v2246_v35, %v2245_v52 }
 0x3ce   :  { %1816 = vmax.xlane.f32.xlu1 %v1815_v5 }
 0x3d1   :  { %v1696_v7 = vpop.f32.mrb[62].mxu0 }
 0x3d2   :  { %v1783_v9 = vrot.slane %v1696_v7, %v1606_v36  ;;  %v2986_v10 = vpop.f32.mrb[63].mxu0 }
 0x3d4   :  { %v1784_v12 = vadd.f32 %v1783_v9, %v1776_v37 }
 0x3d6   :  { %v1792_v13 = vadd.f32 %v2584_v11, %v1784_v12 }
 0x3d8   :  { %vm1793_vm12 = vcmp.gt.f32.partialorder %v1792_v13, 0.0  ;;  %v1794_v15 = vmul.f32 0.01, %v1792_v13 }
 0x3da   :  { %v1795_v20 = vsel %vm1793_vm12, %v1792_v13, %v1794_v15 }
 0x3db   :  { %v1803_v22 = vmul.f32 %v2585_v17, %v1795_v20 }
 0x3dd   :  { %v1811_v23 = vadd.f32 %v2586_v21, %v1803_v22 }
 0x3df   :  { %vm1812_vm13 = vcmp.gt.f32.partialorder %v1811_v23, 0.0  ;;  %v1813_v16 = vmul.f32 0.01, %v1811_v23 }
 0x3e1   :  { %v1814_v25 = vsel %vm1812_vm13, %v1811_v23, %v1813_v16  ;;  %v2328_v23 = vld [vmem:[%s4329_s18] sm:$0xff]  ;;  %v2329_v16 = vld [vmem:[%s4329_s18 + $0x8] sm:$0xff] }
 0x3e2   :  { %v1922_v26 = vsub.f32 %v1814_v25, %v1814_v25  ;;  %v3140_v25 = vpack.c.bf16 %v2329_v16, %v2328_v23 }
 0x3e4   :  { %v1923_v27 = vmul.f32 1.442695, %v1922_v26  ;;  %v2331_v26 = vld [vmem:[%s4329_s18 + $0x18] sm:$0x1] }
 0x3e6   :  { %3291 = vpow2.f32 %v1923_v27 }
 0x3f0   :  { %v3292_v28 = vpop.eup %3291 }
 0x3f1   :  { %3293 = vrcp.f32 %v3292_v28 }
 0x3fb   :  { %v3294_v29 = vpop.eup %3293 }
 0x3fc   :  { %v1927_v38 = vmul.f32 %v3294_v29, %v3292_v28 }
 0x3fe   :  { %v1942_v59 = vsel %vm1941_vm14, %v1927_v38, 0.0 }
 0x3ff   :  { %v1943_v31 = vrot.slane %v1942_v59, 4 }
 0x401   :  { %v1944_v33 = vadd.f32 %v1943_v31, %v1942_v59  ;;  %v2248_v31 = vld [vmem:[%s4328_s17] sm:$0x1] }
 0x403   :  { %v1945_v18 = vrot.slane %v1944_v33, 2 }
 0x405   :  { %v1946_v41 = vadd.f32 %v1945_v18, %v1944_v33 }
 0x407   :  { %v1947_v42 = vrot.slane %v1946_v41, 1 }
 0x409   :  { %v1948_v43 = vadd.f32 %v1947_v42, %v1946_v41 }
 0x40b   :  { %v4202_v61 = vmul.f32 %v1948_v43, %v1948_v43 }
 0x40d   :  { %v2044_v34 = vmax.f32 %v4202_v61, 1.0 }
 0x40f   :  { %2053 = vperm.xlu1 %3172, %v2044_v34  }
 0x413   :  { %2047 = vperm.xlu1 %3172, %v4202_v61  }
 0x45b   :  { %v1817_v40 = vpop.xlane.xlu1 %1816 }
 0x45c   :  { %v1818_v44 = vsub.f32 %v1619_v3, %v1817_v40  ;;  %v2332_v40 = vld [vmem:[%s4330_s19] sm:$0x1] }
 0x45e   :  { %v1819_v45 = vmul.f32 1.442695, %v1818_v44 }
 0x460   :  { %3295 = vpow2.f32 %v1819_v45 }
 0x46a   :  { %v3296_v48 = vpop.eup %3295 }
 0x46b   :  { %v1821_v49 = vsel %vm1429_vm10, %v3296_v48, 0.0 }
 0x46c   :  { %1822 = vadd.xlane.f32.xlu0 %v1821_v49 }
 0x482   :  { %1930 = vperm.xlu0 %3171, %v1927_v38  }
 0x48e   :  { %v2054_v55 = vpop.permute.xlu1 %2053 }
 0x492   :  { %v2048_v37 = vpop.permute.xlu1 %2047 }
 0x4f9   :  { %v1823_v32 = vpop.xlane.xlu0 %1822 }
 0x4fa   :  { %3297 = vrcp.f32 %v1823_v32 }
 0x4fb   :  { %3299 = vrcp.f32 %v2054_v55 }
 0x501   :  { %v1931_v6 = vpop.permute.xlu0 %1930 }
 0x502   :  { %v1933_v51 = vmul.f32 %v1931_v6, %v1619_v3  ;;  %v2247_v3 = vld [vmem:[%s4327_s16 + $0x30] sm:$0x3] }
 0x504   :  { %v3298_v53 = vpop.eup %3297  ;;  %v1934_v39 = vsel %vm1429_vm10, %v1933_v51, 0.0 }
 0x505   :  { %v1825_v58 = vmul.f32 %v3298_v53, %v3296_v48  ;;  %v1935_v8 = vrot.slane %v1934_v39, 4 }
 0x507   :  { %v1936_v54 = vadd.f32 %v1935_v8, %v1934_v39  ;;  %3005 = vmatpush3.xpose.msk.msra.mxu1 %vm1180_vm3, %v1825_v58 }
 0x508   :  { %3009 = vmatprep.subr.mxu1 %v3371_v50 }
 0x509   :  { %v1937_v62 = vrot.slane %v1936_v54, 2 }
 0x50a   :  { %3007 = vmatmul.mubr.msk.f32.vlgmr.msra.gmra.mrb[64].mxu1 %vm1180_vm3, %v1825_v58 }
 0x50b   :  { %v1938_v14 = vadd.f32 %v1937_v62, %v1936_v54  ;;  %3010 = vmatpush3.xpose.msk.msra.mxu1 %vm1950_vm15, %v1927_v38  ;;  %3011 = vmatprep.mubr.msk.f32.mxu1 %vm3372_vm6, %v3371_v50 }
 0x50c   :  { %3121 = vmatprep.subr.bf16.mxu1 %v3364_v4 }
 0x50d   :  { %v1939_v19 = vrot.slane %v1938_v14, 1 }
 0x50e   :  { %3012 = vmatmul.mubr.msk.f32.vlgmr.msra.gmra.mrb[66].mxu1 %vm1950_vm15, %v1927_v38  ;;  %vm2428_vm15 = vcmask 0  }
 0x50f   :  { %v1940_v36 = vadd.f32 %v1939_v19, %v1938_v14  ;;  %3123 = vmatpush3.bf16.msra.mxu1 %v4063_v30  ;;  %3045 = vmatprep.mubr.msk.f32.mxu1 %vm3372_vm6, %v3371_v50  ;;  %v3300_v30 = vpop.eup %3299 }
 0x510   :  { %3124 = vmatprep.subr.bf16.mxu1 %v3364_v4 }
 0x511   :  { %3029 = vmatmul.mubr.msk.f32.vlgmr.msra.gmra.mrb[64].mxu0 %vm1180_vm3, %v1940_v36  ;;  %v2050_v63 = vmul.f32 %v2048_v37, %v1940_v36 }
 0x512   :  { %3062 = vmatprep.mubr.msk.f32.mxu0 %vm3372_vm6, %v3371_v50 }
 0x513   :  { %3126 = vmatpush3.bf16.msra.mxu1 %v4095_v56  ;;  %v2057_v46 = vmul.f32 %v3300_v30, %v2050_v63  ;;  %v2241_v56 = vld [vmem:[%s4327_s16] sm:$0xff] }
 0x514   :  { %3127 = vmatprep.subr.bf16.mxu1 %v3364_v4 }
 0x517   :  { %3129 = vmatpush3.bf16.msra.mxu1 %v4106_v57  ;;  %v2242_v57 = vld [vmem:[%s4327_s16 + $0x8] sm:$0xff] }
 0x518   :  { %3043 = vmatprep.subr.mxu1 %v3371_v50 }
 0x51b   :  { %3044 = vmatpush3.msk.msra.mxu1 %vm399_vm0, %v4113_v60  ;;  %v3131_v60 = vpack.c.bf16 %v2242_v57, %v2241_v56 }
 0x51c   :  { %3046 = vmatmul.mubr.msk.f32.vlgmr.msra.gmra.mrb[68].mxu1 %vm1180_vm3, %v2057_v46  ;;  %3139 = vmatprep.subr.bf16.mxu1 %v3364_v4 }
 0x51d   :  { %3073 = vmatprep.mubr.msk.f32.mxu1 %vm3372_vm6, %v3371_v50  ;;  %3132 = vmatpush3.bf16.msra.mxu0 %v3131_v60  ;;  %vm2333_vm6 = vcmask 203776  }
 0x51e   :  { %3133 = vmatprep.subr.bf16.mxu0 %v3364_v4  ;;  %3141 = vmatpush3.bf16.msra.mxu1 %v3140_v25 }
 0x51f   :  { %3142 = vmatprep.subr.bf16.mxu1 %v3364_v4 }
 0x521   :  { %3135 = vmatpush3.bf16.msra.mxu0 %v3134_v2 }
 0x522   :  { %3136 = vmatprep.subr.bf16.mxu0 %v3364_v4 }
 0x525   :  { %3138 = vmatpush3.bf16.msra.mxu0 %v3137_v47 }
 0x526   :  { %3060 = vmatprep.subr.mxu0 %v3371_v50 }
 0x529   :  { %3061 = vmatpush3.msk.msra.mxu0 %vm399_vm0, %v2247_v3  ;;  %vm3375_vm0 = vmmov 1  }
 0x5dd   :  { %v1895_v5 = vpop.f32.mrb[64].mxu1 }
 0x5de   :  { %v3008_v7 = vpop.f32.mrb[65].mxu1  ;;  %v1899_v49 = vsub.f32 1.0, %v1895_v5 }
 0x5e0   :  { %v1900_v51 = vmul.f32 %v1899_v49, %v1899_v49 }
 0x5e1   :  { %v2019_v9 = vpop.f32.mrb[66].mxu1 }
 0x5e2   :  { %v3013_v10 = vpop.f32.mrb[67].mxu1  ;;  %v2023_v53 = vsub.f32 1.0, %v2019_v9  ;;  %v1902_v54 = vsel %vm1901_vm8, %v1900_v51, 0.0 }
 0x5e4   :  { %v2127_v11 = vpop.f32.mrb[64].mxu0  ;;  %v2024_v8 = vmul.f32 %v2023_v53, %v2023_v53 }
 0x5e5   :  { %v3030_v12 = vpop.f32.mrb[65].mxu0 }
 0x5e6   :  { %v2025_v14 = vsel %vm1901_vm8, %v2024_v8, 0.0 }
 0x5ef   :  { %v2200_v13 = vpop.f32.mrb[68].mxu1 }
 0x5f0   :  { %v2201_v15 = vadd.f32 %v2200_v13, %v2127_v11  ;;  %v3047_v17 = vpop.f32.mrb[69].mxu1 }
 0x5f2   :  { %v2204_v20 = vadd.f32 %v2201_v15, %v4198_v24  ;;  %v2330_v24 = vld [vmem:[%s4329_s18 + $0x10] sm:$0xff] }
 0x5f3   :  { %v3143_v27 = vpack.c.bf16 %v2331_v26, %v2330_v24 }
 0x5f4   :  { %vm2205_vm1 = vcmp.gt.f32.partialorder %v2204_v20, 0.0  ;;  %v2206_v21 = vmul.f32 0.01, %v2204_v20 }
 0x5f6   :  { %v2207_v50 = vsel %vm2205_vm1, %v2204_v20, %v2206_v21 }
 0x5f7   :  { %3063 = vmatmul.mubr.msk.f32.vlgmr.msra.gmra.mrb[66].mxu0 %vm1180_vm3, %v2207_v50  ;;  %v2209_v22 = vsel %vm2208_vm4, %v2207_v50, -inf  ;;  %vm3144_vm3 = vmpackc.low %vm1190_vm2, %vm3375_vm0 }
 0x5f8   :  { %2210 = vmax.xlane.f32.xlu1 %v2209_v22  ;;  %3145 = vmatpush3.bf16.msk.msra.mxu1 %vm3144_vm3, %v3143_v27 }
 0x685   :  { %v2211_v28 = vpop.xlane.xlu1 %2210 }
 0x686   :  { %v2212_v29 = vsub.f32 %v2207_v50, %v2211_v28 }
 0x688   :  { %v2213_v38 = vmul.f32 1.442695, %v2212_v29 }
 0x68a   :  { %3301 = vpow2.f32 %v2213_v38 }
 0x694   :  { %v3302_v59 = vpop.eup %3301 }
 0x695   :  { %v2215_v4 = vsel %vm2208_vm4, %v3302_v59, 0.0 }
 0x696   :  { %2216 = vadd.xlane.f32.xlu0 %v2215_v4 }
 0x6ca   :  { %v2321_v33 = vpop.f32.mrb[66].mxu0 }
 0x6cb   :  { %v2322_v18 = vadd.f32 %v2321_v33, %v2248_v31  ;;  %v3064_v41 = vpop.f32.mrb[67].mxu0 }
 0x6cd   :  { %vm2325_vm5 = vcmp.gt.f32.partialorder %v2322_v18, 0.0  ;;  %v2326_v42 = vmul.f32 0.01, %v2322_v18 }
 0x6cf   :  { %v2327_v43 = vsel %vm2325_vm5, %v2322_v18, %v2326_v42 }
 0x6d0   :  { %3074 = vmatmul.mubr.msk.f32.vlgmr.msra.gmra.mrb[70].mxu1 %vm2333_vm6, %v2327_v43 }
 0x723   :  { %v2217_v34 = vpop.xlane.xlu0 %2216 }
 0x724   :  { %3303 = vrcp.f32 %v2217_v34 }
 0x72e   :  { %v3304_v58 = vpop.eup %3303 }
 0x72f   :  { %v2219_v62 = vmul.f32 %v3304_v58, %v3302_v59 }
 0x731   :  { %v2220_v55 = vmul.f32 %v2219_v62, %v2219_v62 }
 0x733   :  { %v2221_v19 = vsel %vm2208_vm4, %v2220_v55, 0.0 }
 0x7a3   :  { %v2406_v44 = vpop.f32.mrb[70].mxu1 }
 0x7a4   :  { %v2407_v45 = vadd.f32 %v2406_v44, %v2332_v40  ;;  %v3075_v48 = vpop.f32.mrb[71].mxu1 }
 0x7a6   :  { %v2411_v32 = vmul.f32 0.01, %v2407_v45  ;;  %vm2410_vm2 = vcmp.gt.f32.partialorder %v2407_v45, 0.0 }
 0x7a8   :  { %v2412_v6 = vsel %vm2410_vm2, %v2407_v45, %v2411_v32 }
 0x7a9   :  { %v2414_v39 = vsel %vm2413_vm7, %v2412_v6, -inf }
 0x7aa   :  { %2415 = vmax.xlane.f32.xlu1 %v2414_v39 }
 0x7ae   :  { %1903 = vadd.xlane.f32.xlu1 %v1902_v54 }
 0x7b2   :  { %2026 = vadd.xlane.f32.xlu1 %v2025_v14 }
 0x7b6   :  { %2222 = vadd.xlane.f32.xlu1 %v2221_v19 }
 0x837   :  { %v2416_v36 = vpop.xlane.xlu1 %2415 }
 0x838   :  { %v2417_v37 = vsub.f32 %v2412_v6, %v2416_v36 }
 0x83a   :  { %v2418_v63 = vmul.f32 1.442695, %v2417_v37 }
 0x83b   :  { %v1904_v30 = vpop.xlane.xlu1 %1903 }
 0x83c   :  { %3305 = vpow2.f32 %v2418_v63  ;;  %v1905_v46 = vrot.slane %v1904_v30, 4 }
 0x83e   :  { %v1906_v56 = vadd.f32 %v1905_v46, %v1904_v30 }
 0x83f   :  { %v2027_v57 = vpop.xlane.xlu1 %2026 }
 0x840   :  { %v1907_v0 = vrot.slane %v1906_v56, 2  ;;  %v2028_v60 = vrot.slane %v2027_v57, 4 }
 0x842   :  { %v2029_v1 = vadd.f32 %v2028_v60, %v2027_v57  ;;  %v1908_v2 = vadd.f32 %v1907_v0, %v1906_v56 }
 0x843   :  { %v2223_v52 = vpop.xlane.xlu1 %2222 }
 0x844   :  { %v2030_v35 = vrot.slane %v2029_v1, 2  ;;  %v2224_v47 = vrot.slane %v2223_v52, 4  ;;  %v1909_v3 = vrot.slane %v1908_v2, 1 }
 0x846   :  { %v4282_v5 = vpop.eup %3305  ;;  %v2225_v7 = vadd.f32 %v2224_v47, %v2223_v52  ;;  %v1910_v9 = vadd.f32 %v1909_v3, %v1908_v2  ;;  %v2031_v10 = vadd.f32 %v2030_v35, %v2029_v1 }
 0x847   :  { %v2420_v11 = vsel %vm2413_vm7, %v4282_v5, 0.0 }
 0x848   :  { %v2226_v12 = vrot.slane %v2225_v7, 2  ;;  %2421 = vadd.xlane.f32.xlu1 %v2420_v11  ;;  %3150 = vpush %v1910_v9  ;;  %v2032_v13 = vrot.slane %v2031_v10, 1 }
 0x84a   :  { %v2033_v15 = vadd.f32 %v2032_v13, %v2031_v10  ;;  %v2227_v17 = vadd.f32 %v2226_v12, %v2225_v7 }
 0x84c   :  { %3152 = vpush %v2033_v15  ;;  %v2228_v20 = vrot.slane %v2227_v17, 1 }
 0x84e   :  { %v2229_v21 = vadd.f32 %v2228_v20, %v2227_v17 }
 0x850   :  { %3154 = vpush %v2229_v21 }
 0x879   :  { %s3151_s17 = spop %3150 }
 0x87a   :  { %v1912_v50 = vstv %s3151_s17 }
 0x87b   :  { %3307 = vrsqrt.f32 %v1912_v50  ;;  %vm1915_vm9 = vcmp.eq.f32.partialorder %v1912_v50, inf  ;;  %v1918_v4 = vand.u32 2147483648, %v1912_v50  ;;  %vm1917_vm12 = vcmp.eq.f32.partialorder %v1912_v50, 0.0 }
 0x87d   :  { %s3153_s19 = spop %3152 }
 0x87e   :  { %v2035_v22 = vstv %s3153_s19 }
 0x87f   :  { %3309 = vrsqrt.f32 %v2035_v22  ;;  %vm2038_vm10 = vcmp.eq.f32.partialorder %v2035_v22, inf  ;;  %v2041_v29 = vand.u32 2147483648, %v2035_v22  ;;  %vm2040_vm11 = vcmp.eq.f32.partialorder %v2035_v22, 0.0 }
 0x881   :  { %s3155_s5 = spop %3154 }
 0x882   :  { %v2231_v23 = vstv %s3155_s5 }
 0x883   :  { %v2232_v16 = vsub.f32 %v4202_v61, %v2231_v23 }
 0x885   :  { %v3308_v25 = vpop.eup %3307  ;;  %v2233_v24 = vmul.f32 %v2232_v16, %v2232_v16 }
 0x886   :  { %v1914_v26 = vmul.f32 %v3308_v25, %v1912_v50 }
 0x887   :  { %3311 = vrsqrt.f32 %v2233_v24  ;;  %vm2236_vm13 = vcmp.eq.f32.partialorder %v2233_v24, inf  ;;  %v2239_v43 = vand.u32 2147483648, %v2233_v24  ;;  %vm2238_vm14 = vcmp.eq.f32.partialorder %v2233_v24, 0.0 }
 0x888   :  { %v1916_v38 = vsel %vm1915_vm9, %v1912_v50, %v1914_v26 }
 0x889   :  { %v3310_v27 = vpop.eup %3309  ;;  %v1919_v33 = vsel %vm1917_vm12, %v1918_v4, %v1916_v38 }
 0x88a   :  { %v2037_v28 = vmul.f32 %v3310_v27, %v2035_v22  ;;  %v1921_v42 = vmul.f32 0.0625, %v1919_v33 }
 0x88c   :  { %v2039_v59 = vsel %vm2038_vm10, %v2035_v22, %v2037_v28 }
 0x88d   :  { %v2042_v31 = vsel %vm2040_vm11, %v2041_v29, %v2039_v59 }
 0x88e   :  { %v2043_v18 = vmul.f32 0.0625, %v2042_v31 }
 0x890   :  { %v2426_v40 = vadd.f32 %v2043_v18, %v1921_v42 }
 0x891   :  { %v3312_v41 = vpop.eup %3311 }
 0x892   :  { %v2235_v61 = vmul.f32 %v3312_v41, %v2233_v24 }
 0x894   :  { %v2237_v34 = vsel %vm2236_vm13, %v2233_v24, %v2235_v61 }
 0x895   :  { %v2240_v44 = vsel %vm2238_vm14, %v2239_v43, %v2237_v34 }
 0x896   :  { %v2427_v45 = vadd.f32 %v2426_v40, %v2240_v44 }
 0x898   :  { %2429 = vst.msk [vmem:[#allocation8] sm:$0x1] %vm2428_vm15, %v2427_v45 }
 0x899   :  { %3326 = shalt.err (!%p3323_p4)
}
 0x89a   :  { %s3327_s24 = scalar_lea.hbm %s4332_s21, 16 }
 0x89b   :  { %p3328_p5 = scmp.ne.s32.totalorder %s4332_s21, %s3327_s24  ;;  %p3331_p6 = scmp.lt.u32.totalorder %s3327_s24, %s4332_s21 }
 0x89d   :  { %p3333_p7 = pnand %p3331_p6, %p3328_p5 }
 0x89f   :  { %3336 = shalt.err (!%p3333_p7)
}
 0x8a0   :  { %2449 = dma.vmem_to_hbm [thread:$0]  %s2447_s14, 16, %s4332_s21, [#allocation9]  }
 0x8a1   :  { %s3377_s28 = smov [#allocation6]  }
 0x8a2   :  { %s2436_s16 = sshll.u32 %s3377_s28, 4  ;;  %s2437_s16 = int_to_ptr.vmem [resolvable:$true] %s2436_s16 }
 0x8a3   :  { %s3337_s3 = scalar_lea.vmem %s2437_s16, 16  ;;  %s3341_s8 = scalar_lea.vmem %s2437_s16, 32 }
 0x8a4   :  { %p3338_p8 = scmp.ne.s32.totalorder %s2437_s16, %s3337_s3  ;;  %p3342_p9 = scmp.lt.s32.totalorder %s2437_s16, %s2437_s16 }
 0x8a5   :  { %p3343_p10 = scmp.lt.s32.totalorder %s3341_s8, %s3337_s3 }
 0x8a7   :  { %p3344_p11 = por %p3343_p10, %p3342_p9 }
 0x8a9   :  { %p3345_p12 = pnand %p3344_p11, %p3338_p8 }
 0x8d5   :  { %v2422_v48 = vpop.xlane.xlu1 %2421 }
 0x8d6   :  { %3313 = vrcp.f32 %v2422_v48 }
 0x8e0   :  { %v3314_v49 = vpop.eup %3313 }
 0x8e1   :  { %v2424_v32 = vmul.f32 %v3314_v49, %v4282_v5 }
 0x8e3   :  { %2425 = vst.msk [vmem:[#allocation6] sm:$0x1] %vm2413_vm7, %v2424_v32 }
 0x8e4   :  { %3348 = shalt.err (!%p3345_p12)
}
 0x8e5   :  { %s3349_s12 = scalar_lea.hbm %s4331_s20, 16 }
 0x8e6   :  { %p3350_p13 = scmp.ne.s32.totalorder %s4331_s20, %s3349_s12  ;;  %p3353_p0 = scmp.lt.u32.totalorder %s3349_s12, %s4331_s20 }
 0x8e8   :  { %p3355_p1 = pnand %p3353_p0, %p3350_p13 }
 0x8ea   :  { %3358 = shalt.err (!%p3355_p1)
}
 0x8eb   :  { %2439 = dma.vmem_to_hbm [thread:$0]  %s2437_s16, 16, %s4331_s20, [#allocation7]  }
 0x8ec   :  { %3359 = dma.done.wait [#allocation7], 16  }
 0x8ed   :  { %3360 = vsyncadd [#allocation7], 4294967280 }
 0x8ee   :  { %3361 = dma.done.wait [#allocation9], 16  }
 0x8ef   :  { %3362 = vsyncadd [#allocation9], 4294967280 }
 0x8f0   :  { %2456 = vsyncpa [#allocation7], 1 }
 0x8f1   :  { %2457 = vsyncpa [#allocation9], 1 }

</bundles_post_ra>
